<compile_context>
chip_gen: v7x
topology: tpu7x:2x2x1
jax: 0.10.0
libtpu: 0.0.40
codegen_flags: <defaults>
</compile_context>

<pallas_src>
import functools
import math

import jax
import jax.numpy as jnp
from jax.experimental import pallas as pl
from jax.experimental.pallas import tpu as pltpu


NEG_INF = -1e9
LN_EPS = 1e-5


# ----------------------------------------------------------------------------
# Helpers
# ----------------------------------------------------------------------------

def _rep_spec(shape):
    """Full-array block reused unchanged at every grid step (weights / biases)."""
    nd = len(shape)
    return pl.BlockSpec(shape, lambda *_: (0,) * nd)


def _layernorm(y, g, b, eps):
    mu = jnp.mean(y, axis=-1, keepdims=True)
    var = jnp.mean((y - mu) * (y - mu), axis=-1, keepdims=True)
    return (y - mu) * jax.lax.rsqrt(var + eps) * g + b


def _mha(q, k, v, keep, n_heads, scale):
    """Multi-head softmax attention on VMEM-resident (T,D)/(S,D) f32 tensors."""
    D = q.shape[-1]
    Dh = D // n_heads
    # TODO(synk): for long S this should become an online-softmax (flash) loop over
    # KV tiles; full (S, D) blocks are fine at these sizes.
    heads = []
    for h in range(n_heads):                         # static unroll (small H)
        sl = slice(h * Dh, (h + 1) * Dh)
        qh = q[:, sl].astype(jnp.bfloat16)           # (T, Dh)
        kh = k[:, sl].astype(jnp.bfloat16)           # (S, Dh)
        vh = v[:, sl].astype(jnp.bfloat16)           # (S, Dh)
        # contract the last axes of q and k: no explicit k.T / XLU transpose.
        s = jax.lax.dot_general(qh, kh, (((1,), (1,)), ((), ())),
                                preferred_element_type=jnp.float32) * scale  # (T, S)
        s = jnp.where(keep, s, NEG_INF)
        m = jnp.max(s, axis=-1, keepdims=True)
        p = jnp.exp(s - m)
        denom = jnp.sum(p, axis=-1, keepdims=True)
        p = p * pl.reciprocal(denom, approx=True)    # divide goes to the EUP slot
        heads.append(jnp.dot(p.astype(jnp.bfloat16), vh,
                             preferred_element_type=jnp.float32))            # (T, Dh)
    return jnp.concatenate(heads, axis=-1)           # (T, D)  lane-dense


# ----------------------------------------------------------------------------
# Fused decoder-layer kernel:
#   x = LN(x + SelfAttn(x))  ->  x = LN(x + CrossAttn(x, enc))  ->  LN(x + FFN(x))
# ----------------------------------------------------------------------------

def _decoder_layer_kernel(x_ref, enc_ref, trg_ref, ctx_ref,
                          wqkv_ref, bqkv_ref, wo1_ref, bo1_ref, g1_ref, be1_ref,
                          wq2_ref, bq2_ref, wkv2_ref, bkv2_ref, wo2_ref, bo2_ref,
                          g2_ref, be2_ref,
                          w1_ref, b1_ref, w2_ref, b2_ref, g3_ref, be3_ref,
                          o_ref, *, n_heads, scale, eps):
    x = x_ref[...]                                   # (T, D)  f32
    enc = enc_ref[...]                               # (S, D)  f32
    trg_keep = trg_ref[...] > 0.0                    # (T, T)  1 = attend
    ctx_keep = ctx_ref[...] > 0.0                    # (T, S)
    D = x.shape[-1]

    # ---- 1) masked self-attention (single fused QKV projection) + Add&Norm ----
    qkv = jnp.dot(x.astype(jnp.bfloat16), wqkv_ref[...],
                  preferred_element_type=jnp.float32) + bqkv_ref[...]        # (T, 3D)
    attn = _mha(qkv[:, :D], qkv[:, D:2 * D], qkv[:, 2 * D:],
                trg_keep, n_heads, scale)                                    # (T, D)
    out = jnp.dot(attn.astype(jnp.bfloat16), wo1_ref[...],
                  preferred_element_type=jnp.float32) + bo1_ref[...]
    x = _layernorm(x + out, g1_ref[...], be1_ref[...], eps)

    # ---- 2) encoder-decoder cross-attention (fused KV projection) + Add&Norm ---
    q = jnp.dot(x.astype(jnp.bfloat16), wq2_ref[...],
                preferred_element_type=jnp.float32) + bq2_ref[...]           # (T, D)
    kvp = jnp.dot(enc.astype(jnp.bfloat16), wkv2_ref[...],
                  preferred_element_type=jnp.float32) + bkv2_ref[...]        # (S, 2D)
    attn = _mha(q, kvp[:, :D], kvp[:, D:], ctx_keep, n_heads, scale)         # (T, D)
    out = jnp.dot(attn.astype(jnp.bfloat16), wo2_ref[...],
                  preferred_element_type=jnp.float32) + bo2_ref[...]
    x = _layernorm(x + out, g2_ref[...], be2_ref[...], eps)

    # ---- 3) position-wise FFN + Add&Norm (hidden never leaves VMEM) ------------
    h = jnp.dot(x.astype(jnp.bfloat16), w1_ref[...],
                preferred_element_type=jnp.float32) + b1_ref[...]            # (T, F)
    h = jnp.maximum(h, 0.0)                          # ReLU
    y = jnp.dot(h.astype(jnp.bfloat16), w2_ref[...],
                preferred_element_type=jnp.float32) + b2_ref[...]            # (T, D)
    o_ref[...] = _layernorm(x + y, g3_ref[...], be3_ref[...], eps).astype(o_ref.dtype)


def decoder_layer(x, enc_out, ctx_mask, trg_mask, p, n_heads, eps=LN_EPS):
    """x: [B, T, D], enc_out: [B, S, D], masks: [B, T, {T,S}] 0/1 keep-masks."""
    B, T, D = x.shape
    S = enc_out.shape[1]
    assert D % n_heads == 0
    Dh = D // n_heads
    F = p["w1"][0].shape[1]
    kernel = functools.partial(_decoder_layer_kernel, n_heads=n_heads,
                               scale=1.0 / math.sqrt(Dh), eps=eps)
    return pl.pallas_call(
        kernel,
        out_shape=jax.ShapeDtypeStruct((B, T, D), jnp.float32),
        grid=(B,),
        in_specs=[
            pl.BlockSpec((None, T, D), lambda b: (b, 0, 0)),   # x
            pl.BlockSpec((None, S, D), lambda b: (b, 0, 0)),   # enc_out
            pl.BlockSpec((None, T, T), lambda b: (b, 0, 0)),   # trg mask (0/1)
            pl.BlockSpec((None, T, S), lambda b: (b, 0, 0)),   # ctx mask (0/1)
            # self-attention weights (resident across grid steps)
            _rep_spec((D, 3 * D)), _rep_spec((1, 3 * D)),      # Wqkv (fused), bqkv
            _rep_spec((D, D)), _rep_spec((1, D)),              # Wo1, bo1
            _rep_spec((1, D)), _rep_spec((1, D)),              # LN1 gamma, beta
            # cross-attention weights
            _rep_spec((D, D)), _rep_spec((1, D)),              # Wq2, bq2
            _rep_spec((D, 2 * D)), _rep_spec((1, 2 * D)),      # Wkv2 (fused), bkv2
            _rep_spec((D, D)), _rep_spec((1, D)),              # Wo2, bo2
            _rep_spec((1, D)), _rep_spec((1, D)),              # LN2 gamma, beta
            # FFN weights
            _rep_spec((D, F)), _rep_spec((1, F)),              # W1, b1
            _rep_spec((F, D)), _rep_spec((1, D)),              # W2, b2
            _rep_spec((1, D)), _rep_spec((1, D)),              # LN3 gamma, beta
        ],
        out_specs=pl.BlockSpec((None, T, D), lambda b: (b, 0, 0)),
        compiler_params=pltpu.CompilerParams(
            dimension_semantics=("parallel",)),
    )(x, enc_out, trg_mask, ctx_mask,
      p["wqkv1"][0], p["wqkv1"][1].reshape(1, 3 * D),
      p["wo1"][0], p["wo1"][1].reshape(1, D),
      p["ln1"][0].reshape(1, D), p["ln1"][1].reshape(1, D),
      p["wq2"][0], p["wq2"][1].reshape(1, D),
      p["wkv2"][0], p["wkv2"][1].reshape(1, 2 * D),
      p["wo2"][0], p["wo2"][1].reshape(1, D),
      p["ln2"][0].reshape(1, D), p["ln2"][1].reshape(1, D),
      p["w1"][0], p["w1"][1].reshape(1, F),
      p["w2"][0], p["w2"][1].reshape(1, D),
      p["ln3"][0].reshape(1, D), p["ln3"][1].reshape(1, D))


# ----------------------------------------------------------------------------
# Decoder: parameters + forward
# ----------------------------------------------------------------------------

def sinusoidal_pe(max_len, d_model):
    pos = jnp.arange(max_len, dtype=jnp.float32)[:, None]
    i = jnp.arange(0, d_model, 2, dtype=jnp.float32)
    div = jnp.exp(-math.log(10000.0) * i / d_model)
    pe = jnp.zeros((max_len, d_model), jnp.float32)
    pe = pe.at[:, 0::2].set(jnp.sin(pos * div))
    pe = pe.at[:, 1::2].set(jnp.cos(pos * div))
    return pe


def _init_linear(key, d_in, d_out):
    # Weight matrices stored in bf16 (MXU operands); biases stay f32.
    w = jax.random.normal(key, (d_in, d_out), jnp.float32) / math.sqrt(d_in)
    return (w.astype(jnp.bfloat16), jnp.zeros((d_out,), jnp.float32))


def init_decoder_params(key, n_layers, d_model, d_ff, n_heads, max_seq_len, vocab):
    del n_heads
    keys = jax.random.split(key, 1 + n_layers)
    params = {
        "emb": jax.random.normal(keys[0], (vocab, d_model), jnp.float32) * 0.02,
        "pe": sinusoidal_pe(max_seq_len, d_model),
        "layers": [],
    }
    for l in range(n_layers):
        k = jax.random.split(keys[1 + l], 7)
        ones = jnp.ones((d_model,), jnp.float32)
        zeros = jnp.zeros((d_model,), jnp.float32)
        layer = {
            "wqkv1": _init_linear(k[0], d_model, 3 * d_model),  # fused Q|K|V (self)
            "wo1": _init_linear(k[1], d_model, d_model),
            "wq2": _init_linear(k[2], d_model, d_model),
            "wkv2": _init_linear(k[3], d_model, 2 * d_model),   # fused K|V (cross)
            "wo2": _init_linear(k[4], d_model, d_model),
            "w1": _init_linear(k[5], d_model, d_ff),
            "w2": _init_linear(k[6], d_ff, d_model),
            "ln1": (ones, zeros), "ln2": (ones, zeros), "ln3": (ones, zeros),
        }
        params["layers"].append(layer)
    return params


def decoder_forward(params, dec_inputs, enc_outputs, context_mask, trg_mask, n_heads):
    B, T = dec_inputs.shape
    d_model = params["emb"].shape[1]
    # Embeddings: lookup * sqrt(d_model)   (gather is plain-JAX glue)
    x = params["emb"][dec_inputs] * math.sqrt(d_model)
    # PositionalEncoding: add sinusoidal PE; dropout is identity in eval.
    x = x + params["pe"][:T][None, :, :]
    trg = trg_mask.astype(jnp.float32)        # 1 = attend, 0 = masked
    ctx = context_mask.astype(jnp.float32)
    for layer in params["layers"]:
        x = decoder_layer(x, enc_outputs, ctx, trg, layer, n_heads)
    return x
# TODO(synk): dropout omitted (inference/eval semantics); masks assumed 1=keep, 0=mask.


# ----------------------------------------------------------------------------
# Main
# ----------------------------------------------------------------------------

if __name__ == "__main__":
    n_layers, d_model, d_ff, n_heads = 2, 32, 64, 4
    max_seq_len, trg_vocab_size = 16, 50
    B, T, S = 2, 8, 8

    key = jax.random.PRNGKey(0)
    k_params, k_tok, k_enc = jax.random.split(key, 3)

    params = init_decoder_params(k_params, n_layers, d_model, d_ff,
                                 n_heads, max_seq_len, trg_vocab_size)

    dec_inputs = jax.random.randint(k_tok, (B, T), 0, trg_vocab_size)
    enc_outputs = jax.random.normal(k_enc, (B, S, d_model), jnp.float32)
    # causal mask for decoder self-attention, full-attend mask for cross-attention
    trg_mask = jnp.tril(jnp.ones((T, T), jnp.float32))[None, :, :].repeat(B, axis=0)
    context_mask = jnp.ones((B, T, S), jnp.float32)

    fwd = jax.jit(functools.partial(decoder_forward, n_heads=n_heads))
    out = fwd(params, dec_inputs, enc_outputs, context_mask, trg_mask)
    out = jax.block_until_ready(out)

    assert out.shape == (B, T, d_model) and out.dtype == jnp.float32
    assert bool(jnp.all(jnp.isfinite(out)))
    print("KERNEL_OK")
</pallas_src>

<mosaic_0001>
module attributes {stable_mosaic.version = 11 : i64} {
  func.func @_decoder_layer_kernel(%arg0: i32, %arg1: memref<1x8x32xf32, #tpu.memory_space<vmem>>, %arg2: memref<1x8x32xf32, #tpu.memory_space<vmem>>, %arg3: memref<1x8x8xf32, #tpu.memory_space<vmem>>, %arg4: memref<1x8x8xf32, #tpu.memory_space<vmem>>, %arg5: memref<32x96xbf16, #tpu.memory_space<vmem>>, %arg6: memref<1x96xf32, #tpu.memory_space<vmem>>, %arg7: memref<32x32xbf16, #tpu.memory_space<vmem>>, %arg8: memref<1x32xf32, #tpu.memory_space<vmem>>, %arg9: memref<1x32xf32, #tpu.memory_space<vmem>>, %arg10: memref<1x32xf32, #tpu.memory_space<vmem>>, %arg11: memref<32x32xbf16, #tpu.memory_space<vmem>>, %arg12: memref<1x32xf32, #tpu.memory_space<vmem>>, %arg13: memref<32x64xbf16, #tpu.memory_space<vmem>>, %arg14: memref<1x64xf32, #tpu.memory_space<vmem>>, %arg15: memref<32x32xbf16, #tpu.memory_space<vmem>>, %arg16: memref<1x32xf32, #tpu.memory_space<vmem>>, %arg17: memref<1x32xf32, #tpu.memory_space<vmem>>, %arg18: memref<1x32xf32, #tpu.memory_space<vmem>>, %arg19: memref<32x64xbf16, #tpu.memory_space<vmem>>, %arg20: memref<1x64xf32, #tpu.memory_space<vmem>>, %arg21: memref<64x32xbf16, #tpu.memory_space<vmem>>, %arg22: memref<1x32xf32, #tpu.memory_space<vmem>>, %arg23: memref<1x32xf32, #tpu.memory_space<vmem>>, %arg24: memref<1x32xf32, #tpu.memory_space<vmem>>, %arg25: memref<1x8x32xf32, #tpu.memory_space<vmem>>) attributes {dimension_semantics = [#tpu.dimension_semantics<parallel>], iteration_bounds = array<i64: 2>, scalar_prefetch = 0 : i64, scratch_operands = 0 : i64, tpu.core_type = #tpu.core_type<tc>, window_params = [{transform_indices = @transform_0, window_bounds = array<i64: 1, 8, 32>}, {transform_indices = @transform_1, window_bounds = array<i64: 1, 8, 32>}, {transform_indices = @transform_2, window_bounds = array<i64: 1, 8, 8>}, {transform_indices = @transform_3, window_bounds = array<i64: 1, 8, 8>}, {pipeline_mode = #tpu.pipeline_mode<synchronous>, transform_indices = @transform_4, window_bounds = array<i64: 32, 96>}, {pipeline_mode = #tpu.pipeline_mode<synchronous>, transform_indices = @transform_5, window_bounds = array<i64: 1, 96>}, {pipeline_mode = #tpu.pipeline_mode<synchronous>, transform_indices = @transform_6, window_bounds = array<i64: 32, 32>}, {pipeline_mode = #tpu.pipeline_mode<synchronous>, transform_indices = @transform_7, window_bounds = array<i64: 1, 32>}, {pipeline_mode = #tpu.pipeline_mode<synchronous>, transform_indices = @transform_8, window_bounds = array<i64: 1, 32>}, {pipeline_mode = #tpu.pipeline_mode<synchronous>, transform_indices = @transform_9, window_bounds = array<i64: 1, 32>}, {pipeline_mode = #tpu.pipeline_mode<synchronous>, transform_indices = @transform_10, window_bounds = array<i64: 32, 32>}, {pipeline_mode = #tpu.pipeline_mode<synchronous>, transform_indices = @transform_11, window_bounds = array<i64: 1, 32>}, {pipeline_mode = #tpu.pipeline_mode<synchronous>, transform_indices = @transform_12, window_bounds = array<i64: 32, 64>}, {pipeline_mode = #tpu.pipeline_mode<synchronous>, transform_indices = @transform_13, window_bounds = array<i64: 1, 64>}, {pipeline_mode = #tpu.pipeline_mode<synchronous>, transform_indices = @transform_14, window_bounds = array<i64: 32, 32>}, {pipeline_mode = #tpu.pipeline_mode<synchronous>, transform_indices = @transform_15, window_bounds = array<i64: 1, 32>}, {pipeline_mode = #tpu.pipeline_mode<synchronous>, transform_indices = @transform_16, window_bounds = array<i64: 1, 32>}, {pipeline_mode = #tpu.pipeline_mode<synchronous>, transform_indices = @transform_17, window_bounds = array<i64: 1, 32>}, {pipeline_mode = #tpu.pipeline_mode<synchronous>, transform_indices = @transform_18, window_bounds = array<i64: 32, 64>}, {pipeline_mode = #tpu.pipeline_mode<synchronous>, transform_indices = @transform_19, window_bounds = array<i64: 1, 64>}, {pipeline_mode = #tpu.pipeline_mode<synchronous>, transform_indices = @transform_20, window_bounds = array<i64: 64, 32>}, {pipeline_mode = #tpu.pipeline_mode<synchronous>, transform_indices = @transform_21, window_bounds = array<i64: 1, 32>}, {pipeline_mode = #tpu.pipeline_mode<synchronous>, transform_indices = @transform_22, window_bounds = array<i64: 1, 32>}, {pipeline_mode = #tpu.pipeline_mode<synchronous>, transform_indices = @transform_23, window_bounds = array<i64: 1, 32>}, {transform_indices = @transform_24, window_bounds = array<i64: 1, 8, 32>}]} {
    %c0 = arith.constant 0 : index
    %c0_0 = arith.constant 0 : index
    %c0_1 = arith.constant 0 : index
    %0 = vector.load %arg1[%c0, %c0_0, %c0_1] : memref<1x8x32xf32, #tpu.memory_space<vmem>>, vector<1x8x32xf32>
    %1 = vector.shape_cast %0 : vector<1x8x32xf32> to vector<8x32xf32>
    %c0_2 = arith.constant 0 : index
    %c0_3 = arith.constant 0 : index
    %c0_4 = arith.constant 0 : index
    %2 = vector.load %arg2[%c0_2, %c0_3, %c0_4] : memref<1x8x32xf32, #tpu.memory_space<vmem>>, vector<1x8x32xf32>
    %3 = vector.shape_cast %2 : vector<1x8x32xf32> to vector<8x32xf32>
    %c0_5 = arith.constant 0 : index
    %c0_6 = arith.constant 0 : index
    %c0_7 = arith.constant 0 : index
    %4 = vector.load %arg3[%c0_5, %c0_6, %c0_7] : memref<1x8x8xf32, #tpu.memory_space<vmem>>, vector<1x8x8xf32>
    %5 = vector.shape_cast %4 : vector<1x8x8xf32> to vector<8x8xf32>
    %cst = arith.constant 0.000000e+00 : f32
    %6 = vector.broadcast %cst : f32 to vector<8x8xf32>
    %7 = arith.cmpf ogt, %5, %6 : vector<8x8xf32>
    %c0_8 = arith.constant 0 : index
    %c0_9 = arith.constant 0 : index
    %c0_10 = arith.constant 0 : index
    %8 = vector.load %arg4[%c0_8, %c0_9, %c0_10] : memref<1x8x8xf32, #tpu.memory_space<vmem>>, vector<1x8x8xf32>
    %9 = vector.shape_cast %8 : vector<1x8x8xf32> to vector<8x8xf32>
    %cst_11 = arith.constant 0.000000e+00 : f32
    %10 = vector.broadcast %cst_11 : f32 to vector<8x8xf32>
    %11 = arith.cmpf ogt, %9, %10 : vector<8x8xf32>
    %12 = arith.truncf %1 : vector<8x32xf32> to vector<8x32xbf16>
    %c0_12 = arith.constant 0 : index
    %c0_13 = arith.constant 0 : index
    %13 = vector.load %arg5[%c0_12, %c0_13] : memref<32x96xbf16, #tpu.memory_space<vmem>>, vector<32x96xbf16>
    %cst_14 = arith.constant dense<0.000000e+00> : vector<8x96xf32>
    %14 = tpu.matmul %12, %13, %cst_14 {dimension_numbers = #tpu.dot_dimension_numbers<[1], [0], [0], [1], [0, 0, 1, 1], [], []>} : vector<8x32xbf16>, vector<32x96xbf16>, vector<8x96xf32> -> vector<8x96xf32>
    %c0_15 = arith.constant 0 : index
    %c0_16 = arith.constant 0 : index
    %15 = vector.load %arg6[%c0_15, %c0_16] : memref<1x96xf32, #tpu.memory_space<vmem>>, vector<1x96xf32>
    %16 = vector.broadcast %15 : vector<1x96xf32> to vector<8x96xf32>
    %17 = arith.addf %14, %16 : vector<8x96xf32>
    %18 = vector.extract_strided_slice %17 {offsets = [0, 0], sizes = [8, 32], strides = [1, 1]} : vector<8x96xf32> to vector<8x32xf32>
    %19 = vector.extract_strided_slice %17 {offsets = [0, 32], sizes = [8, 32], strides = [1, 1]} : vector<8x96xf32> to vector<8x32xf32>
    %20 = vector.extract_strided_slice %17 {offsets = [0, 64], sizes = [8, 32], strides = [1, 1]} : vector<8x96xf32> to vector<8x32xf32>
    %21 = vector.extract_strided_slice %18 {offsets = [0, 0], sizes = [8, 8], strides = [1, 1]} : vector<8x32xf32> to vector<8x8xf32>
    %22 = arith.truncf %21 : vector<8x8xf32> to vector<8x8xbf16>
    %23 = vector.extract_strided_slice %19 {offsets = [0, 0], sizes = [8, 8], strides = [1, 1]} : vector<8x32xf32> to vector<8x8xf32>
    %24 = arith.truncf %23 : vector<8x8xf32> to vector<8x8xbf16>
    %25 = vector.extract_strided_slice %20 {offsets = [0, 0], sizes = [8, 8], strides = [1, 1]} : vector<8x32xf32> to vector<8x8xf32>
    %26 = arith.truncf %25 : vector<8x8xf32> to vector<8x8xbf16>
    %cst_17 = arith.constant dense<0.000000e+00> : vector<8x8xf32>
    %27 = tpu.matmul %22, %24, %cst_17 {dimension_numbers = #tpu.dot_dimension_numbers<[1], [1], [0], [0], [0, 0, 1, 0], [], []>} : vector<8x8xbf16>, vector<8x8xbf16>, vector<8x8xf32> -> vector<8x8xf32>
    %cst_18 = arith.constant 0.353553385 : f32
    %28 = vector.broadcast %cst_18 : f32 to vector<8x8xf32>
    %29 = arith.mulf %27, %28 : vector<8x8xf32>
    %cst_19 = arith.constant -1.000000e+09 : f32
    %30 = vector.broadcast %cst_19 : f32 to vector<8x8xf32>
    %31 = arith.select %7, %29, %30 : vector<8x8xi1>, vector<8x8xf32>
    %cst_20 = arith.constant dense<0xFF800000> : vector<8xf32>
    %32 = vector.multi_reduction <maximumf>, %31, %cst_20 [1] : vector<8x8xf32> to vector<8xf32>
    %33 = vector.shape_cast %32 : vector<8xf32> to vector<8x1xf32>
    %34 = vector.broadcast %33 : vector<8x1xf32> to vector<8x8xf32>
    %35 = arith.subf %31, %34 : vector<8x8xf32>
    %36 = math.exp %35 : vector<8x8xf32>
    %cst_21 = arith.constant dense<0.000000e+00> : vector<8xf32>
    %37 = vector.multi_reduction <add>, %36, %cst_21 [1] : vector<8x8xf32> to vector<8xf32>
    %38 = vector.shape_cast %37 : vector<8xf32> to vector<8x1xf32>
    %39 = tpu.reciprocal %38 {approx = true} : vector<8x1xf32> -> vector<8x1xf32>
    %40 = vector.broadcast %39 : vector<8x1xf32> to vector<8x8xf32>
    %41 = arith.mulf %36, %40 : vector<8x8xf32>
    %42 = arith.truncf %41 : vector<8x8xf32> to vector<8x8xbf16>
    %cst_22 = arith.constant dense<0.000000e+00> : vector<8x8xf32>
    %43 = tpu.matmul %42, %26, %cst_22 {dimension_numbers = #tpu.dot_dimension_numbers<[1], [0], [0], [1], [0, 0, 1, 1], [], []>} : vector<8x8xbf16>, vector<8x8xbf16>, vector<8x8xf32> -> vector<8x8xf32>
    %44 = vector.extract_strided_slice %18 {offsets = [0, 8], sizes = [8, 8], strides = [1, 1]} : vector<8x32xf32> to vector<8x8xf32>
    %45 = arith.truncf %44 : vector<8x8xf32> to vector<8x8xbf16>
    %46 = vector.extract_strided_slice %19 {offsets = [0, 8], sizes = [8, 8], strides = [1, 1]} : vector<8x32xf32> to vector<8x8xf32>
    %47 = arith.truncf %46 : vector<8x8xf32> to vector<8x8xbf16>
    %48 = vector.extract_strided_slice %20 {offsets = [0, 8], sizes = [8, 8], strides = [1, 1]} : vector<8x32xf32> to vector<8x8xf32>
    %49 = arith.truncf %48 : vector<8x8xf32> to vector<8x8xbf16>
    %cst_23 = arith.constant dense<0.000000e+00> : vector<8x8xf32>
    %50 = tpu.matmul %45, %47, %cst_23 {dimension_numbers = #tpu.dot_dimension_numbers<[1], [1], [0], [0], [0, 0, 1, 0], [], []>} : vector<8x8xbf16>, vector<8x8xbf16>, vector<8x8xf32> -> vector<8x8xf32>
    %cst_24 = arith.constant 0.353553385 : f32
    %51 = vector.broadcast %cst_24 : f32 to vector<8x8xf32>
    %52 = arith.mulf %50, %51 : vector<8x8xf32>
    %cst_25 = arith.constant -1.000000e+09 : f32
    %53 = vector.broadcast %cst_25 : f32 to vector<8x8xf32>
    %54 = arith.select %7, %52, %53 : vector<8x8xi1>, vector<8x8xf32>
    %cst_26 = arith.constant dense<0xFF800000> : vector<8xf32>
    %55 = vector.multi_reduction <maximumf>, %54, %cst_26 [1] : vector<8x8xf32> to vector<8xf32>
    %56 = vector.shape_cast %55 : vector<8xf32> to vector<8x1xf32>
    %57 = vector.broadcast %56 : vector<8x1xf32> to vector<8x8xf32>
    %58 = arith.subf %54, %57 : vector<8x8xf32>
    %59 = math.exp %58 : vector<8x8xf32>
    %cst_27 = arith.constant dense<0.000000e+00> : vector<8xf32>
    %60 = vector.multi_reduction <add>, %59, %cst_27 [1] : vector<8x8xf32> to vector<8xf32>
    %61 = vector.shape_cast %60 : vector<8xf32> to vector<8x1xf32>
    %62 = tpu.reciprocal %61 {approx = true} : vector<8x1xf32> -> vector<8x1xf32>
    %63 = vector.broadcast %62 : vector<8x1xf32> to vector<8x8xf32>
    %64 = arith.mulf %59, %63 : vector<8x8xf32>
    %65 = arith.truncf %64 : vector<8x8xf32> to vector<8x8xbf16>
    %cst_28 = arith.constant dense<0.000000e+00> : vector<8x8xf32>
    %66 = tpu.matmul %65, %49, %cst_28 {dimension_numbers = #tpu.dot_dimension_numbers<[1], [0], [0], [1], [0, 0, 1, 1], [], []>} : vector<8x8xbf16>, vector<8x8xbf16>, vector<8x8xf32> -> vector<8x8xf32>
    %67 = vector.extract_strided_slice %18 {offsets = [0, 16], sizes = [8, 8], strides = [1, 1]} : vector<8x32xf32> to vector<8x8xf32>
    %68 = arith.truncf %67 : vector<8x8xf32> to vector<8x8xbf16>
    %69 = vector.extract_strided_slice %19 {offsets = [0, 16], sizes = [8, 8], strides = [1, 1]} : vector<8x32xf32> to vector<8x8xf32>
    %70 = arith.truncf %69 : vector<8x8xf32> to vector<8x8xbf16>
    %71 = vector.extract_strided_slice %20 {offsets = [0, 16], sizes = [8, 8], strides = [1, 1]} : vector<8x32xf32> to vector<8x8xf32>
    %72 = arith.truncf %71 : vector<8x8xf32> to vector<8x8xbf16>
    %cst_29 = arith.constant dense<0.000000e+00> : vector<8x8xf32>
    %73 = tpu.matmul %68, %70, %cst_29 {dimension_numbers = #tpu.dot_dimension_numbers<[1], [1], [0], [0], [0, 0, 1, 0], [], []>} : vector<8x8xbf16>, vector<8x8xbf16>, vector<8x8xf32> -> vector<8x8xf32>
    %cst_30 = arith.constant 0.353553385 : f32
    %74 = vector.broadcast %cst_30 : f32 to vector<8x8xf32>
    %75 = arith.mulf %73, %74 : vector<8x8xf32>
    %cst_31 = arith.constant -1.000000e+09 : f32
    %76 = vector.broadcast %cst_31 : f32 to vector<8x8xf32>
    %77 = arith.select %7, %75, %76 : vector<8x8xi1>, vector<8x8xf32>
    %cst_32 = arith.constant dense<0xFF800000> : vector<8xf32>
    %78 = vector.multi_reduction <maximumf>, %77, %cst_32 [1] : vector<8x8xf32> to vector<8xf32>
    %79 = vector.shape_cast %78 : vector<8xf32> to vector<8x1xf32>
    %80 = vector.broadcast %79 : vector<8x1xf32> to vector<8x8xf32>
    %81 = arith.subf %77, %80 : vector<8x8xf32>
    %82 = math.exp %81 : vector<8x8xf32>
    %cst_33 = arith.constant dense<0.000000e+00> : vector<8xf32>
    %83 = vector.multi_reduction <add>, %82, %cst_33 [1] : vector<8x8xf32> to vector<8xf32>
    %84 = vector.shape_cast %83 : vector<8xf32> to vector<8x1xf32>
    %85 = tpu.reciprocal %84 {approx = true} : vector<8x1xf32> -> vector<8x1xf32>
    %86 = vector.broadcast %85 : vector<8x1xf32> to vector<8x8xf32>
    %87 = arith.mulf %82, %86 : vector<8x8xf32>
    %88 = arith.truncf %87 : vector<8x8xf32> to vector<8x8xbf16>
    %cst_34 = arith.constant dense<0.000000e+00> : vector<8x8xf32>
    %89 = tpu.matmul %88, %72, %cst_34 {dimension_numbers = #tpu.dot_dimension_numbers<[1], [0], [0], [1], [0, 0, 1, 1], [], []>} : vector<8x8xbf16>, vector<8x8xbf16>, vector<8x8xf32> -> vector<8x8xf32>
    %90 = vector.extract_strided_slice %18 {offsets = [0, 24], sizes = [8, 8], strides = [1, 1]} : vector<8x32xf32> to vector<8x8xf32>
    %91 = arith.truncf %90 : vector<8x8xf32> to vector<8x8xbf16>
    %92 = vector.extract_strided_slice %19 {offsets = [0, 24], sizes = [8, 8], strides = [1, 1]} : vector<8x32xf32> to vector<8x8xf32>
    %93 = arith.truncf %92 : vector<8x8xf32> to vector<8x8xbf16>
    %94 = vector.extract_strided_slice %20 {offsets = [0, 24], sizes = [8, 8], strides = [1, 1]} : vector<8x32xf32> to vector<8x8xf32>
    %95 = arith.truncf %94 : vector<8x8xf32> to vector<8x8xbf16>
    %cst_35 = arith.constant dense<0.000000e+00> : vector<8x8xf32>
    %96 = tpu.matmul %91, %93, %cst_35 {dimension_numbers = #tpu.dot_dimension_numbers<[1], [1], [0], [0], [0, 0, 1, 0], [], []>} : vector<8x8xbf16>, vector<8x8xbf16>, vector<8x8xf32> -> vector<8x8xf32>
    %cst_36 = arith.constant 0.353553385 : f32
    %97 = vector.broadcast %cst_36 : f32 to vector<8x8xf32>
    %98 = arith.mulf %96, %97 : vector<8x8xf32>
    %cst_37 = arith.constant -1.000000e+09 : f32
    %99 = vector.broadcast %cst_37 : f32 to vector<8x8xf32>
    %100 = arith.select %7, %98, %99 : vector<8x8xi1>, vector<8x8xf32>
    %cst_38 = arith.constant dense<0xFF800000> : vector<8xf32>
    %101 = vector.multi_reduction <maximumf>, %100, %cst_38 [1] : vector<8x8xf32> to vector<8xf32>
    %102 = vector.shape_cast %101 : vector<8xf32> to vector<8x1xf32>
    %103 = vector.broadcast %102 : vector<8x1xf32> to vector<8x8xf32>
    %104 = arith.subf %100, %103 : vector<8x8xf32>
    %105 = math.exp %104 : vector<8x8xf32>
    %cst_39 = arith.constant dense<0.000000e+00> : vector<8xf32>
    %106 = vector.multi_reduction <add>, %105, %cst_39 [1] : vector<8x8xf32> to vector<8xf32>
    %107 = vector.shape_cast %106 : vector<8xf32> to vector<8x1xf32>
    %108 = tpu.reciprocal %107 {approx = true} : vector<8x1xf32> -> vector<8x1xf32>
    %109 = vector.broadcast %108 : vector<8x1xf32> to vector<8x8xf32>
    %110 = arith.mulf %105, %109 : vector<8x8xf32>
    %111 = arith.truncf %110 : vector<8x8xf32> to vector<8x8xbf16>
    %cst_40 = arith.constant dense<0.000000e+00> : vector<8x8xf32>
    %112 = tpu.matmul %111, %95, %cst_40 {dimension_numbers = #tpu.dot_dimension_numbers<[1], [0], [0], [1], [0, 0, 1, 1], [], []>} : vector<8x8xbf16>, vector<8x8xbf16>, vector<8x8xf32> -> vector<8x8xf32>
    %113 = tpu.concatenate %43, %66, %89, %112 in 1 : vector<8x8xf32>, vector<8x8xf32>, vector<8x8xf32>, vector<8x8xf32> -> vector<8x32xf32>
    %114 = arith.truncf %113 : vector<8x32xf32> to vector<8x32xbf16>
    %c0_41 = arith.constant 0 : index
    %c0_42 = arith.constant 0 : index
    %115 = vector.load %arg7[%c0_41, %c0_42] : memref<32x32xbf16, #tpu.memory_space<vmem>>, vector<32x32xbf16>
    %cst_43 = arith.constant dense<0.000000e+00> : vector<8x32xf32>
    %116 = tpu.matmul %114, %115, %cst_43 {dimension_numbers = #tpu.dot_dimension_numbers<[1], [0], [0], [1], [0, 0, 1, 1], [], []>} : vector<8x32xbf16>, vector<32x32xbf16>, vector<8x32xf32> -> vector<8x32xf32>
    %c0_44 = arith.constant 0 : index
    %c0_45 = arith.constant 0 : index
    %117 = vector.load %arg8[%c0_44, %c0_45] : memref<1x32xf32, #tpu.memory_space<vmem>>, vector<1x32xf32>
    %118 = vector.broadcast %117 : vector<1x32xf32> to vector<8x32xf32>
    %119 = arith.addf %116, %118 : vector<8x32xf32>
    %120 = arith.addf %1, %119 : vector<8x32xf32>
    %c0_46 = arith.constant 0 : index
    %c0_47 = arith.constant 0 : index
    %121 = vector.load %arg9[%c0_46, %c0_47] : memref<1x32xf32, #tpu.memory_space<vmem>>, vector<1x32xf32>
    %c0_48 = arith.constant 0 : index
    %c0_49 = arith.constant 0 : index
    %122 = vector.load %arg10[%c0_48, %c0_49] : memref<1x32xf32, #tpu.memory_space<vmem>>, vector<1x32xf32>
    %cst_50 = arith.constant dense<0.000000e+00> : vector<8xf32>
    %123 = vector.multi_reduction <add>, %120, %cst_50 [1] : vector<8x32xf32> to vector<8xf32>
    %124 = vector.shape_cast %123 : vector<8xf32> to vector<8x1xf32>
    %cst_51 = arith.constant 3.200000e+01 : f32
    %125 = vector.broadcast %cst_51 : f32 to vector<8x1xf32>
    %126 = arith.divf %124, %125 : vector<8x1xf32>
    %127 = vector.broadcast %126 : vector<8x1xf32> to vector<8x32xf32>
    %128 = arith.subf %120, %127 : vector<8x32xf32>
    %129 = vector.broadcast %126 : vector<8x1xf32> to vector<8x32xf32>
    %130 = arith.subf %120, %129 : vector<8x32xf32>
    %131 = arith.mulf %128, %130 : vector<8x32xf32>
    %cst_52 = arith.constant dense<0.000000e+00> : vector<8xf32>
    %132 = vector.multi_reduction <add>, %131, %cst_52 [1] : vector<8x32xf32> to vector<8xf32>
    %133 = vector.shape_cast %132 : vector<8xf32> to vector<8x1xf32>
    %cst_53 = arith.constant 3.200000e+01 : f32
    %134 = vector.broadcast %cst_53 : f32 to vector<8x1xf32>
    %135 = arith.divf %133, %134 : vector<8x1xf32>
    %136 = vector.broadcast %126 : vector<8x1xf32> to vector<8x32xf32>
    %137 = arith.subf %120, %136 : vector<8x32xf32>
    %cst_54 = arith.constant 9.99999974E-6 : f32
    %138 = vector.broadcast %cst_54 : f32 to vector<8x1xf32>
    %139 = arith.addf %135, %138 : vector<8x1xf32>
    %140 = math.rsqrt %139 : vector<8x1xf32>
    %141 = vector.broadcast %140 : vector<8x1xf32> to vector<8x32xf32>
    %142 = arith.mulf %137, %141 : vector<8x32xf32>
    %143 = vector.broadcast %121 : vector<1x32xf32> to vector<8x32xf32>
    %144 = arith.mulf %142, %143 : vector<8x32xf32>
    %145 = vector.broadcast %122 : vector<1x32xf32> to vector<8x32xf32>
    %146 = arith.addf %144, %145 : vector<8x32xf32>
    %147 = arith.truncf %146 : vector<8x32xf32> to vector<8x32xbf16>
    %c0_55 = arith.constant 0 : index
    %c0_56 = arith.constant 0 : index
    %148 = vector.load %arg11[%c0_55, %c0_56] : memref<32x32xbf16, #tpu.memory_space<vmem>>, vector<32x32xbf16>
    %cst_57 = arith.constant dense<0.000000e+00> : vector<8x32xf32>
    %149 = tpu.matmul %147, %148, %cst_57 {dimension_numbers = #tpu.dot_dimension_numbers<[1], [0], [0], [1], [0, 0, 1, 1], [], []>} : vector<8x32xbf16>, vector<32x32xbf16>, vector<8x32xf32> -> vector<8x32xf32>
    %c0_58 = arith.constant 0 : index
    %c0_59 = arith.constant 0 : index
    %150 = vector.load %arg12[%c0_58, %c0_59] : memref<1x32xf32, #tpu.memory_space<vmem>>, vector<1x32xf32>
    %151 = vector.broadcast %150 : vector<1x32xf32> to vector<8x32xf32>
    %152 = arith.addf %149, %151 : vector<8x32xf32>
    %153 = arith.truncf %3 : vector<8x32xf32> to vector<8x32xbf16>
    %c0_60 = arith.constant 0 : index
    %c0_61 = arith.constant 0 : index
    %154 = vector.load %arg13[%c0_60, %c0_61] : memref<32x64xbf16, #tpu.memory_space<vmem>>, vector<32x64xbf16>
    %cst_62 = arith.constant dense<0.000000e+00> : vector<8x64xf32>
    %155 = tpu.matmul %153, %154, %cst_62 {dimension_numbers = #tpu.dot_dimension_numbers<[1], [0], [0], [1], [0, 0, 1, 1], [], []>} : vector<8x32xbf16>, vector<32x64xbf16>, vector<8x64xf32> -> vector<8x64xf32>
    %c0_63 = arith.constant 0 : index
    %c0_64 = arith.constant 0 : index
    %156 = vector.load %arg14[%c0_63, %c0_64] : memref<1x64xf32, #tpu.memory_space<vmem>>, vector<1x64xf32>
    %157 = vector.broadcast %156 : vector<1x64xf32> to vector<8x64xf32>
    %158 = arith.addf %155, %157 : vector<8x64xf32>
    %159 = vector.extract_strided_slice %158 {offsets = [0, 0], sizes = [8, 32], strides = [1, 1]} : vector<8x64xf32> to vector<8x32xf32>
    %160 = vector.extract_strided_slice %158 {offsets = [0, 32], sizes = [8, 32], strides = [1, 1]} : vector<8x64xf32> to vector<8x32xf32>
    %161 = vector.extract_strided_slice %152 {offsets = [0, 0], sizes = [8, 8], strides = [1, 1]} : vector<8x32xf32> to vector<8x8xf32>
    %162 = arith.truncf %161 : vector<8x8xf32> to vector<8x8xbf16>
    %163 = vector.extract_strided_slice %159 {offsets = [0, 0], sizes = [8, 8], strides = [1, 1]} : vector<8x32xf32> to vector<8x8xf32>
    %164 = arith.truncf %163 : vector<8x8xf32> to vector<8x8xbf16>
    %165 = vector.extract_strided_slice %160 {offsets = [0, 0], sizes = [8, 8], strides = [1, 1]} : vector<8x32xf32> to vector<8x8xf32>
    %166 = arith.truncf %165 : vector<8x8xf32> to vector<8x8xbf16>
    %cst_65 = arith.constant dense<0.000000e+00> : vector<8x8xf32>
    %167 = tpu.matmul %162, %164, %cst_65 {dimension_numbers = #tpu.dot_dimension_numbers<[1], [1], [0], [0], [0, 0, 1, 0], [], []>} : vector<8x8xbf16>, vector<8x8xbf16>, vector<8x8xf32> -> vector<8x8xf32>
    %cst_66 = arith.constant 0.353553385 : f32
    %168 = vector.broadcast %cst_66 : f32 to vector<8x8xf32>
    %169 = arith.mulf %167, %168 : vector<8x8xf32>
    %cst_67 = arith.constant -1.000000e+09 : f32
    %170 = vector.broadcast %cst_67 : f32 to vector<8x8xf32>
    %171 = arith.select %11, %169, %170 : vector<8x8xi1>, vector<8x8xf32>
    %cst_68 = arith.constant dense<0xFF800000> : vector<8xf32>
    %172 = vector.multi_reduction <maximumf>, %171, %cst_68 [1] : vector<8x8xf32> to vector<8xf32>
    %173 = vector.shape_cast %172 : vector<8xf32> to vector<8x1xf32>
    %174 = vector.broadcast %173 : vector<8x1xf32> to vector<8x8xf32>
    %175 = arith.subf %171, %174 : vector<8x8xf32>
    %176 = math.exp %175 : vector<8x8xf32>
    %cst_69 = arith.constant dense<0.000000e+00> : vector<8xf32>
    %177 = vector.multi_reduction <add>, %176, %cst_69 [1] : vector<8x8xf32> to vector<8xf32>
    %178 = vector.shape_cast %177 : vector<8xf32> to vector<8x1xf32>
    %179 = tpu.reciprocal %178 {approx = true} : vector<8x1xf32> -> vector<8x1xf32>
    %180 = vector.broadcast %179 : vector<8x1xf32> to vector<8x8xf32>
    %181 = arith.mulf %176, %180 : vector<8x8xf32>
    %182 = arith.truncf %181 : vector<8x8xf32> to vector<8x8xbf16>
    %cst_70 = arith.constant dense<0.000000e+00> : vector<8x8xf32>
    %183 = tpu.matmul %182, %166, %cst_70 {dimension_numbers = #tpu.dot_dimension_numbers<[1], [0], [0], [1], [0, 0, 1, 1], [], []>} : vector<8x8xbf16>, vector<8x8xbf16>, vector<8x8xf32> -> vector<8x8xf32>
    %184 = vector.extract_strided_slice %152 {offsets = [0, 8], sizes = [8, 8], strides = [1, 1]} : vector<8x32xf32> to vector<8x8xf32>
    %185 = arith.truncf %184 : vector<8x8xf32> to vector<8x8xbf16>
    %186 = vector.extract_strided_slice %159 {offsets = [0, 8], sizes = [8, 8], strides = [1, 1]} : vector<8x32xf32> to vector<8x8xf32>
    %187 = arith.truncf %186 : vector<8x8xf32> to vector<8x8xbf16>
    %188 = vector.extract_strided_slice %160 {offsets = [0, 8], sizes = [8, 8], strides = [1, 1]} : vector<8x32xf32> to vector<8x8xf32>
    %189 = arith.truncf %188 : vector<8x8xf32> to vector<8x8xbf16>
    %cst_71 = arith.constant dense<0.000000e+00> : vector<8x8xf32>
    %190 = tpu.matmul %185, %187, %cst_71 {dimension_numbers = #tpu.dot_dimension_numbers<[1], [1], [0], [0], [0, 0, 1, 0], [], []>} : vector<8x8xbf16>, vector<8x8xbf16>, vector<8x8xf32> -> vector<8x8xf32>
    %cst_72 = arith.constant 0.353553385 : f32
    %191 = vector.broadcast %cst_72 : f32 to vector<8x8xf32>
    %192 = arith.mulf %190, %191 : vector<8x8xf32>
    %cst_73 = arith.constant -1.000000e+09 : f32
    %193 = vector.broadcast %cst_73 : f32 to vector<8x8xf32>
    %194 = arith.select %11, %192, %193 : vector<8x8xi1>, vector<8x8xf32>
    %cst_74 = arith.constant dense<0xFF800000> : vector<8xf32>
    %195 = vector.multi_reduction <maximumf>, %194, %cst_74 [1] : vector<8x8xf32> to vector<8xf32>
    %196 = vector.shape_cast %195 : vector<8xf32> to vector<8x1xf32>
    %197 = vector.broadcast %196 : vector<8x1xf32> to vector<8x8xf32>
    %198 = arith.subf %194, %197 : vector<8x8xf32>
    %199 = math.exp %198 : vector<8x8xf32>
    %cst_75 = arith.constant dense<0.000000e+00> : vector<8xf32>
    %200 = vector.multi_reduction <add>, %199, %cst_75 [1] : vector<8x8xf32> to vector<8xf32>
    %201 = vector.shape_cast %200 : vector<8xf32> to vector<8x1xf32>
    %202 = tpu.reciprocal %201 {approx = true} : vector<8x1xf32> -> vector<8x1xf32>
    %203 = vector.broadcast %202 : vector<8x1xf32> to vector<8x8xf32>
    %204 = arith.mulf %199, %203 : vector<8x8xf32>
    %205 = arith.truncf %204 : vector<8x8xf32> to vector<8x8xbf16>
    %cst_76 = arith.constant dense<0.000000e+00> : vector<8x8xf32>
    %206 = tpu.matmul %205, %189, %cst_76 {dimension_numbers = #tpu.dot_dimension_numbers<[1], [0], [0], [1], [0, 0, 1, 1], [], []>} : vector<8x8xbf16>, vector<8x8xbf16>, vector<8x8xf32> -> vector<8x8xf32>
    %207 = vector.extract_strided_slice %152 {offsets = [0, 16], sizes = [8, 8], strides = [1, 1]} : vector<8x32xf32> to vector<8x8xf32>
    %208 = arith.truncf %207 : vector<8x8xf32> to vector<8x8xbf16>
    %209 = vector.extract_strided_slice %159 {offsets = [0, 16], sizes = [8, 8], strides = [1, 1]} : vector<8x32xf32> to vector<8x8xf32>
    %210 = arith.truncf %209 : vector<8x8xf32> to vector<8x8xbf16>
    %211 = vector.extract_strided_slice %160 {offsets = [0, 16], sizes = [8, 8], strides = [1, 1]} : vector<8x32xf32> to vector<8x8xf32>
    %212 = arith.truncf %211 : vector<8x8xf32> to vector<8x8xbf16>
    %cst_77 = arith.constant dense<0.000000e+00> : vector<8x8xf32>
    %213 = tpu.matmul %208, %210, %cst_77 {dimension_numbers = #tpu.dot_dimension_numbers<[1], [1], [0], [0], [0, 0, 1, 0], [], []>} : vector<8x8xbf16>, vector<8x8xbf16>, vector<8x8xf32> -> vector<8x8xf32>
    %cst_78 = arith.constant 0.353553385 : f32
    %214 = vector.broadcast %cst_78 : f32 to vector<8x8xf32>
    %215 = arith.mulf %213, %214 : vector<8x8xf32>
    %cst_79 = arith.constant -1.000000e+09 : f32
    %216 = vector.broadcast %cst_79 : f32 to vector<8x8xf32>
    %217 = arith.select %11, %215, %216 : vector<8x8xi1>, vector<8x8xf32>
    %cst_80 = arith.constant dense<0xFF800000> : vector<8xf32>
    %218 = vector.multi_reduction <maximumf>, %217, %cst_80 [1] : vector<8x8xf32> to vector<8xf32>
    %219 = vector.shape_cast %218 : vector<8xf32> to vector<8x1xf32>
    %220 = vector.broadcast %219 : vector<8x1xf32> to vector<8x8xf32>
    %221 = arith.subf %217, %220 : vector<8x8xf32>
    %222 = math.exp %221 : vector<8x8xf32>
    %cst_81 = arith.constant dense<0.000000e+00> : vector<8xf32>
    %223 = vector.multi_reduction <add>, %222, %cst_81 [1] : vector<8x8xf32> to vector<8xf32>
    %224 = vector.shape_cast %223 : vector<8xf32> to vector<8x1xf32>
    %225 = tpu.reciprocal %224 {approx = true} : vector<8x1xf32> -> vector<8x1xf32>
    %226 = vector.broadcast %225 : vector<8x1xf32> to vector<8x8xf32>
    %227 = arith.mulf %222, %226 : vector<8x8xf32>
    %228 = arith.truncf %227 : vector<8x8xf32> to vector<8x8xbf16>
    %cst_82 = arith.constant dense<0.000000e+00> : vector<8x8xf32>
    %229 = tpu.matmul %228, %212, %cst_82 {dimension_numbers = #tpu.dot_dimension_numbers<[1], [0], [0], [1], [0, 0, 1, 1], [], []>} : vector<8x8xbf16>, vector<8x8xbf16>, vector<8x8xf32> -> vector<8x8xf32>
    %230 = vector.extract_strided_slice %152 {offsets = [0, 24], sizes = [8, 8], strides = [1, 1]} : vector<8x32xf32> to vector<8x8xf32>
    %231 = arith.truncf %230 : vector<8x8xf32> to vector<8x8xbf16>
    %232 = vector.extract_strided_slice %159 {offsets = [0, 24], sizes = [8, 8], strides = [1, 1]} : vector<8x32xf32> to vector<8x8xf32>
    %233 = arith.truncf %232 : vector<8x8xf32> to vector<8x8xbf16>
    %234 = vector.extract_strided_slice %160 {offsets = [0, 24], sizes = [8, 8], strides = [1, 1]} : vector<8x32xf32> to vector<8x8xf32>
    %235 = arith.truncf %234 : vector<8x8xf32> to vector<8x8xbf16>
    %cst_83 = arith.constant dense<0.000000e+00> : vector<8x8xf32>
    %236 = tpu.matmul %231, %233, %cst_83 {dimension_numbers = #tpu.dot_dimension_numbers<[1], [1], [0], [0], [0, 0, 1, 0], [], []>} : vector<8x8xbf16>, vector<8x8xbf16>, vector<8x8xf32> -> vector<8x8xf32>
    %cst_84 = arith.constant 0.353553385 : f32
    %237 = vector.broadcast %cst_84 : f32 to vector<8x8xf32>
    %238 = arith.mulf %236, %237 : vector<8x8xf32>
    %cst_85 = arith.constant -1.000000e+09 : f32
    %239 = vector.broadcast %cst_85 : f32 to vector<8x8xf32>
    %240 = arith.select %11, %238, %239 : vector<8x8xi1>, vector<8x8xf32>
    %cst_86 = arith.constant dense<0xFF800000> : vector<8xf32>
    %241 = vector.multi_reduction <maximumf>, %240, %cst_86 [1] : vector<8x8xf32> to vector<8xf32>
    %242 = vector.shape_cast %241 : vector<8xf32> to vector<8x1xf32>
    %243 = vector.broadcast %242 : vector<8x1xf32> to vector<8x8xf32>
    %244 = arith.subf %240, %243 : vector<8x8xf32>
    %245 = math.exp %244 : vector<8x8xf32>
    %cst_87 = arith.constant dense<0.000000e+00> : vector<8xf32>
    %246 = vector.multi_reduction <add>, %245, %cst_87 [1] : vector<8x8xf32> to vector<8xf32>
    %247 = vector.shape_cast %246 : vector<8xf32> to vector<8x1xf32>
    %248 = tpu.reciprocal %247 {approx = true} : vector<8x1xf32> -> vector<8x1xf32>
    %249 = vector.broadcast %248 : vector<8x1xf32> to vector<8x8xf32>
    %250 = arith.mulf %245, %249 : vector<8x8xf32>
    %251 = arith.truncf %250 : vector<8x8xf32> to vector<8x8xbf16>
    %cst_88 = arith.constant dense<0.000000e+00> : vector<8x8xf32>
    %252 = tpu.matmul %251, %235, %cst_88 {dimension_numbers = #tpu.dot_dimension_numbers<[1], [0], [0], [1], [0, 0, 1, 1], [], []>} : vector<8x8xbf16>, vector<8x8xbf16>, vector<8x8xf32> -> vector<8x8xf32>
    %253 = tpu.concatenate %183, %206, %229, %252 in 1 : vector<8x8xf32>, vector<8x8xf32>, vector<8x8xf32>, vector<8x8xf32> -> vector<8x32xf32>
    %254 = arith.truncf %253 : vector<8x32xf32> to vector<8x32xbf16>
    %c0_89 = arith.constant 0 : index
    %c0_90 = arith.constant 0 : index
    %255 = vector.load %arg15[%c0_89, %c0_90] : memref<32x32xbf16, #tpu.memory_space<vmem>>, vector<32x32xbf16>
    %cst_91 = arith.constant dense<0.000000e+00> : vector<8x32xf32>
    %256 = tpu.matmul %254, %255, %cst_91 {dimension_numbers = #tpu.dot_dimension_numbers<[1], [0], [0], [1], [0, 0, 1, 1], [], []>} : vector<8x32xbf16>, vector<32x32xbf16>, vector<8x32xf32> -> vector<8x32xf32>
    %c0_92 = arith.constant 0 : index
    %c0_93 = arith.constant 0 : index
    %257 = vector.load %arg16[%c0_92, %c0_93] : memref<1x32xf32, #tpu.memory_space<vmem>>, vector<1x32xf32>
    %258 = vector.broadcast %257 : vector<1x32xf32> to vector<8x32xf32>
    %259 = arith.addf %256, %258 : vector<8x32xf32>
    %260 = arith.addf %146, %259 : vector<8x32xf32>
    %c0_94 = arith.constant 0 : index
    %c0_95 = arith.constant 0 : index
    %261 = vector.load %arg17[%c0_94, %c0_95] : memref<1x32xf32, #tpu.memory_space<vmem>>, vector<1x32xf32>
    %c0_96 = arith.constant 0 : index
    %c0_97 = arith.constant 0 : index
    %262 = vector.load %arg18[%c0_96, %c0_97] : memref<1x32xf32, #tpu.memory_space<vmem>>, vector<1x32xf32>
    %cst_98 = arith.constant dense<0.000000e+00> : vector<8xf32>
    %263 = vector.multi_reduction <add>, %260, %cst_98 [1] : vector<8x32xf32> to vector<8xf32>
    %264 = vector.shape_cast %263 : vector<8xf32> to vector<8x1xf32>
    %cst_99 = arith.constant 3.200000e+01 : f32
    %265 = vector.broadcast %cst_99 : f32 to vector<8x1xf32>
    %266 = arith.divf %264, %265 : vector<8x1xf32>
    %267 = vector.broadcast %266 : vector<8x1xf32> to vector<8x32xf32>
    %268 = arith.subf %260, %267 : vector<8x32xf32>
    %269 = vector.broadcast %266 : vector<8x1xf32> to vector<8x32xf32>
    %270 = arith.subf %260, %269 : vector<8x32xf32>
    %271 = arith.mulf %268, %270 : vector<8x32xf32>
    %cst_100 = arith.constant dense<0.000000e+00> : vector<8xf32>
    %272 = vector.multi_reduction <add>, %271, %cst_100 [1] : vector<8x32xf32> to vector<8xf32>
    %273 = vector.shape_cast %272 : vector<8xf32> to vector<8x1xf32>
    %cst_101 = arith.constant 3.200000e+01 : f32
    %274 = vector.broadcast %cst_101 : f32 to vector<8x1xf32>
    %275 = arith.divf %273, %274 : vector<8x1xf32>
    %276 = vector.broadcast %266 : vector<8x1xf32> to vector<8x32xf32>
    %277 = arith.subf %260, %276 : vector<8x32xf32>
    %cst_102 = arith.constant 9.99999974E-6 : f32
    %278 = vector.broadcast %cst_102 : f32 to vector<8x1xf32>
    %279 = arith.addf %275, %278 : vector<8x1xf32>
    %280 = math.rsqrt %279 : vector<8x1xf32>
    %281 = vector.broadcast %280 : vector<8x1xf32> to vector<8x32xf32>
    %282 = arith.mulf %277, %281 : vector<8x32xf32>
    %283 = vector.broadcast %261 : vector<1x32xf32> to vector<8x32xf32>
    %284 = arith.mulf %282, %283 : vector<8x32xf32>
    %285 = vector.broadcast %262 : vector<1x32xf32> to vector<8x32xf32>
    %286 = arith.addf %284, %285 : vector<8x32xf32>
    %287 = arith.truncf %286 : vector<8x32xf32> to vector<8x32xbf16>
    %c0_103 = arith.constant 0 : index
    %c0_104 = arith.constant 0 : index
    %288 = vector.load %arg19[%c0_103, %c0_104] : memref<32x64xbf16, #tpu.memory_space<vmem>>, vector<32x64xbf16>
    %cst_105 = arith.constant dense<0.000000e+00> : vector<8x64xf32>
    %289 = tpu.matmul %287, %288, %cst_105 {dimension_numbers = #tpu.dot_dimension_numbers<[1], [0], [0], [1], [0, 0, 1, 1], [], []>} : vector<8x32xbf16>, vector<32x64xbf16>, vector<8x64xf32> -> vector<8x64xf32>
    %c0_106 = arith.constant 0 : index
    %c0_107 = arith.constant 0 : index
    %290 = vector.load %arg20[%c0_106, %c0_107] : memref<1x64xf32, #tpu.memory_space<vmem>>, vector<1x64xf32>
    %291 = vector.broadcast %290 : vector<1x64xf32> to vector<8x64xf32>
    %292 = arith.addf %289, %291 : vector<8x64xf32>
    %cst_108 = arith.constant 0.000000e+00 : f32
    %293 = vector.broadcast %cst_108 : f32 to vector<8x64xf32>
    %294 = arith.maximumf %292, %293 : vector<8x64xf32>
    %295 = arith.truncf %294 : vector<8x64xf32> to vector<8x64xbf16>
    %c0_109 = arith.constant 0 : index
    %c0_110 = arith.constant 0 : index
    %296 = vector.load %arg21[%c0_109, %c0_110] : memref<64x32xbf16, #tpu.memory_space<vmem>>, vector<64x32xbf16>
    %cst_111 = arith.constant dense<0.000000e+00> : vector<8x32xf32>
    %297 = tpu.matmul %295, %296, %cst_111 {dimension_numbers = #tpu.dot_dimension_numbers<[1], [0], [0], [1], [0, 0, 1, 1], [], []>} : vector<8x64xbf16>, vector<64x32xbf16>, vector<8x32xf32> -> vector<8x32xf32>
    %c0_112 = arith.constant 0 : index
    %c0_113 = arith.constant 0 : index
    %298 = vector.load %arg22[%c0_112, %c0_113] : memref<1x32xf32, #tpu.memory_space<vmem>>, vector<1x32xf32>
    %299 = vector.broadcast %298 : vector<1x32xf32> to vector<8x32xf32>
    %300 = arith.addf %297, %299 : vector<8x32xf32>
    %301 = arith.addf %286, %300 : vector<8x32xf32>
    %c0_114 = arith.constant 0 : index
    %c0_115 = arith.constant 0 : index
    %302 = vector.load %arg23[%c0_114, %c0_115] : memref<1x32xf32, #tpu.memory_space<vmem>>, vector<1x32xf32>
    %c0_116 = arith.constant 0 : index
    %c0_117 = arith.constant 0 : index
    %303 = vector.load %arg24[%c0_116, %c0_117] : memref<1x32xf32, #tpu.memory_space<vmem>>, vector<1x32xf32>
    %cst_118 = arith.constant dense<0.000000e+00> : vector<8xf32>
    %304 = vector.multi_reduction <add>, %301, %cst_118 [1] : vector<8x32xf32> to vector<8xf32>
    %305 = vector.shape_cast %304 : vector<8xf32> to vector<8x1xf32>
    %cst_119 = arith.constant 3.200000e+01 : f32
    %306 = vector.broadcast %cst_119 : f32 to vector<8x1xf32>
    %307 = arith.divf %305, %306 : vector<8x1xf32>
    %308 = vector.broadcast %307 : vector<8x1xf32> to vector<8x32xf32>
    %309 = arith.subf %301, %308 : vector<8x32xf32>
    %310 = vector.broadcast %307 : vector<8x1xf32> to vector<8x32xf32>
    %311 = arith.subf %301, %310 : vector<8x32xf32>
    %312 = arith.mulf %309, %311 : vector<8x32xf32>
    %cst_120 = arith.constant dense<0.000000e+00> : vector<8xf32>
    %313 = vector.multi_reduction <add>, %312, %cst_120 [1] : vector<8x32xf32> to vector<8xf32>
    %314 = vector.shape_cast %313 : vector<8xf32> to vector<8x1xf32>
    %cst_121 = arith.constant 3.200000e+01 : f32
    %315 = vector.broadcast %cst_121 : f32 to vector<8x1xf32>
    %316 = arith.divf %314, %315 : vector<8x1xf32>
    %317 = vector.broadcast %307 : vector<8x1xf32> to vector<8x32xf32>
    %318 = arith.subf %301, %317 : vector<8x32xf32>
    %cst_122 = arith.constant 9.99999974E-6 : f32
    %319 = vector.broadcast %cst_122 : f32 to vector<8x1xf32>
    %320 = arith.addf %316, %319 : vector<8x1xf32>
    %321 = math.rsqrt %320 : vector<8x1xf32>
    %322 = vector.broadcast %321 : vector<8x1xf32> to vector<8x32xf32>
    %323 = arith.mulf %318, %322 : vector<8x32xf32>
    %324 = vector.broadcast %302 : vector<1x32xf32> to vector<8x32xf32>
    %325 = arith.mulf %323, %324 : vector<8x32xf32>
    %326 = vector.broadcast %303 : vector<1x32xf32> to vector<8x32xf32>
    %327 = arith.addf %325, %326 : vector<8x32xf32>
    %c0_123 = arith.constant 0 : index
    %c0_124 = arith.constant 0 : index
    %c0_125 = arith.constant 0 : index
    %328 = vector.load %arg25[%c0_123, %c0_124, %c0_125] : memref<1x8x32xf32, #tpu.memory_space<vmem>>, vector<1x8x32xf32>
    %329 = vector.shape_cast %328 : vector<1x8x32xf32> to vector<8x32xf32>
    %330 = vector.shape_cast %327 : vector<8x32xf32> to vector<1x8x32xf32>
    tpu.vector_store %arg25[%c0_123, %c0_124, %c0_125], %330 {strides = array<i32>} : memref<1x8x32xf32, #tpu.memory_space<vmem>>, vector<1x8x32xf32>,
    return
  }
  func.func @transform_0(%arg0: i32) -> (i32, i32, i32) {
    %c0_i32 = arith.constant 0 : i32
    %c0_i32_0 = arith.constant 0 : i32
    %c0_i32_1 = arith.constant 0 : i32
    return %arg0, %c0_i32, %c0_i32_0 : i32, i32, i32
  }
  func.func @transform_1(%arg0: i32) -> (i32, i32, i32) {
    %c0_i32 = arith.constant 0 : i32
    %c0_i32_0 = arith.constant 0 : i32
    %c0_i32_1 = arith.constant 0 : i32
    return %arg0, %c0_i32, %c0_i32_0 : i32, i32, i32
  }
  func.func @transform_2(%arg0: i32) -> (i32, i32, i32) {
    %c0_i32 = arith.constant 0 : i32
    %c0_i32_0 = arith.constant 0 : i32
    %c0_i32_1 = arith.constant 0 : i32
    return %arg0, %c0_i32, %c0_i32_0 : i32, i32, i32
  }
  func.func @transform_3(%arg0: i32) -> (i32, i32, i32) {
    %c0_i32 = arith.constant 0 : i32
    %c0_i32_0 = arith.constant 0 : i32
    %c0_i32_1 = arith.constant 0 : i32
    return %arg0, %c0_i32, %c0_i32_0 : i32, i32, i32
  }
  func.func @transform_4(%arg0: i32) -> (i32, i32) {
    %c0_i32 = arith.constant 0 : i32
    %c0_i32_0 = arith.constant 0 : i32
    %c0_i32_1 = arith.constant 0 : i32
    return %c0_i32, %c0_i32_0 : i32, i32
  }
  func.func @transform_5(%arg0: i32) -> (i32, i32) {
    %c0_i32 = arith.constant 0 : i32
    %c0_i32_0 = arith.constant 0 : i32
    %c0_i32_1 = arith.constant 0 : i32
    return %c0_i32, %c0_i32_0 : i32, i32
  }
  func.func @transform_6(%arg0: i32) -> (i32, i32) {
    %c0_i32 = arith.constant 0 : i32
    %c0_i32_0 = arith.constant 0 : i32
    %c0_i32_1 = arith.constant 0 : i32
    return %c0_i32, %c0_i32_0 : i32, i32
  }
  func.func @transform_7(%arg0: i32) -> (i32, i32) {
    %c0_i32 = arith.constant 0 : i32
    %c0_i32_0 = arith.constant 0 : i32
    %c0_i32_1 = arith.constant 0 : i32
    return %c0_i32, %c0_i32_0 : i32, i32
  }
  func.func @transform_8(%arg0: i32) -> (i32, i32) {
    %c0_i32 = arith.constant 0 : i32
    %c0_i32_0 = arith.constant 0 : i32
    %c0_i32_1 = arith.constant 0 : i32
    return %c0_i32, %c0_i32_0 : i32, i32
  }
  func.func @transform_9(%arg0: i32) -> (i32, i32) {
    %c0_i32 = arith.constant 0 : i32
    %c0_i32_0 = arith.constant 0 : i32
    %c0_i32_1 = arith.constant 0 : i32
    return %c0_i32, %c0_i32_0 : i32, i32
  }
  func.func @transform_10(%arg0: i32) -> (i32, i32) {
    %c0_i32 = arith.constant 0 : i32
    %c0_i32_0 = arith.constant 0 : i32
    %c0_i32_1 = arith.constant 0 : i32
    return %c0_i32, %c0_i32_0 : i32, i32
  }
  func.func @transform_11(%arg0: i32) -> (i32, i32) {
    %c0_i32 = arith.constant 0 : i32
    %c0_i32_0 = arith.constant 0 : i32
    %c0_i32_1 = arith.constant 0 : i32
    return %c0_i32, %c0_i32_0 : i32, i32
  }
  func.func @transform_12(%arg0: i32) -> (i32, i32) {
    %c0_i32 = arith.constant 0 : i32
    %c0_i32_0 = arith.constant 0 : i32
    %c0_i32_1 = arith.constant 0 : i32
    return %c0_i32, %c0_i32_0 : i32, i32
  }
  func.func @transform_13(%arg0: i32) -> (i32, i32) {
    %c0_i32 = arith.constant 0 : i32
    %c0_i32_0 = arith.constant 0 : i32
    %c0_i32_1 = arith.constant 0 : i32
    return %c0_i32, %c0_i32_0 : i32, i32
  }
  func.func @transform_14(%arg0: i32) -> (i32, i32) {
    %c0_i32 = arith.constant 0 : i32
    %c0_i32_0 = arith.constant 0 : i32
    %c0_i32_1 = arith.constant 0 : i32
    return %c0_i32, %c0_i32_0 : i32, i32
  }
  func.func @transform_15(%arg0: i32) -> (i32, i32) {
    %c0_i32 = arith.constant 0 : i32
    %c0_i32_0 = arith.constant 0 : i32
    %c0_i32_1 = arith.constant 0 : i32
    return %c0_i32, %c0_i32_0 : i32, i32
  }
  func.func @transform_16(%arg0: i32) -> (i32, i32) {
    %c0_i32 = arith.constant 0 : i32
    %c0_i32_0 = arith.constant 0 : i32
    %c0_i32_1 = arith.constant 0 : i32
    return %c0_i32, %c0_i32_0 : i32, i32
  }
  func.func @transform_17(%arg0: i32) -> (i32, i32) {
    %c0_i32 = arith.constant 0 : i32
    %c0_i32_0 = arith.constant 0 : i32
    %c0_i32_1 = arith.constant 0 : i32
    return %c0_i32, %c0_i32_0 : i32, i32
  }
  func.func @transform_18(%arg0: i32) -> (i32, i32) {
    %c0_i32 = arith.constant 0 : i32
    %c0_i32_0 = arith.constant 0 : i32
    %c0_i32_1 = arith.constant 0 : i32
    return %c0_i32, %c0_i32_0 : i32, i32
  }
  func.func @transform_19(%arg0: i32) -> (i32, i32) {
    %c0_i32 = arith.constant 0 : i32
    %c0_i32_0 = arith.constant 0 : i32
    %c0_i32_1 = arith.constant 0 : i32
    return %c0_i32, %c0_i32_0 : i32, i32
  }
  func.func @transform_20(%arg0: i32) -> (i32, i32) {
    %c0_i32 = arith.constant 0 : i32
    %c0_i32_0 = arith.constant 0 : i32
    %c0_i32_1 = arith.constant 0 : i32
    return %c0_i32, %c0_i32_0 : i32, i32
  }
  func.func @transform_21(%arg0: i32) -> (i32, i32) {
    %c0_i32 = arith.constant 0 : i32
    %c0_i32_0 = arith.constant 0 : i32
    %c0_i32_1 = arith.constant 0 : i32
    return %c0_i32, %c0_i32_0 : i32, i32
  }
  func.func @transform_22(%arg0: i32) -> (i32, i32) {
    %c0_i32 = arith.constant 0 : i32
    %c0_i32_0 = arith.constant 0 : i32
    %c0_i32_1 = arith.constant 0 : i32
    return %c0_i32, %c0_i32_0 : i32, i32
  }
  func.func @transform_23(%arg0: i32) -> (i32, i32) {
    %c0_i32 = arith.constant 0 : i32
    %c0_i32_0 = arith.constant 0 : i32
    %c0_i32_1 = arith.constant 0 : i32
    return %c0_i32, %c0_i32_0 : i32, i32
  }
  func.func @transform_24(%arg0: i32) -> (i32, i32, i32) {
    %c0_i32 = arith.constant 0 : i32
    %c0_i32_0 = arith.constant 0 : i32
    %c0_i32_1 = arith.constant 0 : i32
    return %arg0, %c0_i32, %c0_i32_0 : i32, i32, i32
  }
}

module attributes {stable_mosaic.version = 11 : i64} {
  func.func @_decoder_layer_kernel(%arg0: i32, %arg1: memref<1x8x32xf32, #tpu.memory_space<vmem>>, %arg2: memref<1x8x32xf32, #tpu.memory_space<vmem>>, %arg3: memref<1x8x8xf32, #tpu.memory_space<vmem>>, %arg4: memref<1x8x8xf32, #tpu.memory_space<vmem>>, %arg5: memref<32x96xbf16, #tpu.memory_space<vmem>>, %arg6: memref<1x96xf32, #tpu.memory_space<vmem>>, %arg7: memref<32x32xbf16, #tpu.memory_space<vmem>>, %arg8: memref<1x32xf32, #tpu.memory_space<vmem>>, %arg9: memref<1x32xf32, #tpu.memory_space<vmem>>, %arg10: memref<1x32xf32, #tpu.memory_space<vmem>>, %arg11: memref<32x32xbf16, #tpu.memory_space<vmem>>, %arg12: memref<1x32xf32, #tpu.memory_space<vmem>>, %arg13: memref<32x64xbf16, #tpu.memory_space<vmem>>, %arg14: memref<1x64xf32, #tpu.memory_space<vmem>>, %arg15: memref<32x32xbf16, #tpu.memory_space<vmem>>, %arg16: memref<1x32xf32, #tpu.memory_space<vmem>>, %arg17: memref<1x32xf32, #tpu.memory_space<vmem>>, %arg18: memref<1x32xf32, #tpu.memory_space<vmem>>, %arg19: memref<32x64xbf16, #tpu.memory_space<vmem>>, %arg20: memref<1x64xf32, #tpu.memory_space<vmem>>, %arg21: memref<64x32xbf16, #tpu.memory_space<vmem>>, %arg22: memref<1x32xf32, #tpu.memory_space<vmem>>, %arg23: memref<1x32xf32, #tpu.memory_space<vmem>>, %arg24: memref<1x32xf32, #tpu.memory_space<vmem>>, %arg25: memref<1x8x32xf32, #tpu.memory_space<vmem>>) attributes {dimension_semantics = [#tpu.dimension_semantics<parallel>], iteration_bounds = array<i64: 2>, scalar_prefetch = 0 : i64, scratch_operands = 0 : i64, tpu.core_type = #tpu.core_type<tc>, window_params = [{transform_indices = @transform_0, window_bounds = array<i64: 1, 8, 32>}, {transform_indices = @transform_1, window_bounds = array<i64: 1, 8, 32>}, {transform_indices = @transform_2, window_bounds = array<i64: 1, 8, 8>}, {transform_indices = @transform_3, window_bounds = array<i64: 1, 8, 8>}, {pipeline_mode = #tpu.pipeline_mode<synchronous>, transform_indices = @transform_4, window_bounds = array<i64: 32, 96>}, {pipeline_mode = #tpu.pipeline_mode<synchronous>, transform_indices = @transform_5, window_bounds = array<i64: 1, 96>}, {pipeline_mode = #tpu.pipeline_mode<synchronous>, transform_indices = @transform_6, window_bounds = array<i64: 32, 32>}, {pipeline_mode = #tpu.pipeline_mode<synchronous>, transform_indices = @transform_7, window_bounds = array<i64: 1, 32>}, {pipeline_mode = #tpu.pipeline_mode<synchronous>, transform_indices = @transform_8, window_bounds = array<i64: 1, 32>}, {pipeline_mode = #tpu.pipeline_mode<synchronous>, transform_indices = @transform_9, window_bounds = array<i64: 1, 32>}, {pipeline_mode = #tpu.pipeline_mode<synchronous>, transform_indices = @transform_10, window_bounds = array<i64: 32, 32>}, {pipeline_mode = #tpu.pipeline_mode<synchronous>, transform_indices = @transform_11, window_bounds = array<i64: 1, 32>}, {pipeline_mode = #tpu.pipeline_mode<synchronous>, transform_indices = @transform_12, window_bounds = array<i64: 32, 64>}, {pipeline_mode = #tpu.pipeline_mode<synchronous>, transform_indices = @transform_13, window_bounds = array<i64: 1, 64>}, {pipeline_mode = #tpu.pipeline_mode<synchronous>, transform_indices = @transform_14, window_bounds = array<i64: 32, 32>}, {pipeline_mode = #tpu.pipeline_mode<synchronous>, transform_indices = @transform_15, window_bounds = array<i64: 1, 32>}, {pipeline_mode = #tpu.pipeline_mode<synchronous>, transform_indices = @transform_16, window_bounds = array<i64: 1, 32>}, {pipeline_mode = #tpu.pipeline_mode<synchronous>, transform_indices = @transform_17, window_bounds = array<i64: 1, 32>}, {pipeline_mode = #tpu.pipeline_mode<synchronous>, transform_indices = @transform_18, window_bounds = array<i64: 32, 64>}, {pipeline_mode = #tpu.pipeline_mode<synchronous>, transform_indices = @transform_19, window_bounds = array<i64: 1, 64>}, {pipeline_mode = #tpu.pipeline_mode<synchronous>, transform_indices = @transform_20, window_bounds = array<i64: 64, 32>}, {pipeline_mode = #tpu.pipeline_mode<synchronous>, transform_indices = @transform_21, window_bounds = array<i64: 1, 32>}, {pipeline_mode = #tpu.pipeline_mode<synchronous>, transform_indices = @transform_22, window_bounds = array<i64: 1, 32>}, {pipeline_mode = #tpu.pipeline_mode<synchronous>, transform_indices = @transform_23, window_bounds = array<i64: 1, 32>}, {transform_indices = @transform_24, window_bounds = array<i64: 1, 8, 32>}]} {
    %c0 = arith.constant 0 : index
    %c0_0 = arith.constant 0 : index
    %c0_1 = arith.constant 0 : index
    %0 = vector.load %arg1[%c0, %c0_0, %c0_1] : memref<1x8x32xf32, #tpu.memory_space<vmem>>, vector<1x8x32xf32>
    %1 = vector.shape_cast %0 : vector<1x8x32xf32> to vector<8x32xf32>
    %c0_2 = arith.constant 0 : index
    %c0_3 = arith.constant 0 : index
    %c0_4 = arith.constant 0 : index
    %2 = vector.load %arg2[%c0_2, %c0_3, %c0_4] : memref<1x8x32xf32, #tpu.memory_space<vmem>>, vector<1x8x32xf32>
    %3 = vector.shape_cast %2 : vector<1x8x32xf32> to vector<8x32xf32>
    %c0_5 = arith.constant 0 : index
    %c0_6 = arith.constant 0 : index
    %c0_7 = arith.constant 0 : index
    %4 = vector.load %arg3[%c0_5, %c0_6, %c0_7] : memref<1x8x8xf32, #tpu.memory_space<vmem>>, vector<1x8x8xf32>
    %5 = vector.shape_cast %4 : vector<1x8x8xf32> to vector<8x8xf32>
    %cst = arith.constant 0.000000e+00 : f32
    %6 = vector.broadcast %cst : f32 to vector<8x8xf32>
    %7 = arith.cmpf ogt, %5, %6 : vector<8x8xf32>
    %c0_8 = arith.constant 0 : index
    %c0_9 = arith.constant 0 : index
    %c0_10 = arith.constant 0 : index
    %8 = vector.load %arg4[%c0_8, %c0_9, %c0_10] : memref<1x8x8xf32, #tpu.memory_space<vmem>>, vector<1x8x8xf32>
    %9 = vector.shape_cast %8 : vector<1x8x8xf32> to vector<8x8xf32>
    %cst_11 = arith.constant 0.000000e+00 : f32
    %10 = vector.broadcast %cst_11 : f32 to vector<8x8xf32>
    %11 = arith.cmpf ogt, %9, %10 : vector<8x8xf32>
    %12 = arith.truncf %1 : vector<8x32xf32> to vector<8x32xbf16>
    %c0_12 = arith.constant 0 : index
    %c0_13 = arith.constant 0 : index
    %13 = vector.load %arg5[%c0_12, %c0_13] : memref<32x96xbf16, #tpu.memory_space<vmem>>, vector<32x96xbf16>
    %cst_14 = arith.constant dense<0.000000e+00> : vector<8x96xf32>
    %14 = tpu.matmul %12, %13, %cst_14 {dimension_numbers = #tpu.dot_dimension_numbers<[1], [0], [0], [1], [0, 0, 1, 1], [], []>} : vector<8x32xbf16>, vector<32x96xbf16>, vector<8x96xf32> -> vector<8x96xf32>
    %c0_15 = arith.constant 0 : index
    %c0_16 = arith.constant 0 : index
    %15 = vector.load %arg6[%c0_15, %c0_16] : memref<1x96xf32, #tpu.memory_space<vmem>>, vector<1x96xf32>
    %16 = vector.broadcast %15 : vector<1x96xf32> to vector<8x96xf32>
    %17 = arith.addf %14, %16 : vector<8x96xf32>
    %18 = vector.extract_strided_slice %17 {offsets = [0, 0], sizes = [8, 32], strides = [1, 1]} : vector<8x96xf32> to vector<8x32xf32>
    %19 = vector.extract_strided_slice %17 {offsets = [0, 32], sizes = [8, 32], strides = [1, 1]} : vector<8x96xf32> to vector<8x32xf32>
    %20 = vector.extract_strided_slice %17 {offsets = [0, 64], sizes = [8, 32], strides = [1, 1]} : vector<8x96xf32> to vector<8x32xf32>
    %21 = vector.extract_strided_slice %18 {offsets = [0, 0], sizes = [8, 8], strides = [1, 1]} : vector<8x32xf32> to vector<8x8xf32>
    %22 = arith.truncf %21 : vector<8x8xf32> to vector<8x8xbf16>
    %23 = vector.extract_strided_slice %19 {offsets = [0, 0], sizes = [8, 8], strides = [1, 1]} : vector<8x32xf32> to vector<8x8xf32>
    %24 = arith.truncf %23 : vector<8x8xf32> to vector<8x8xbf16>
    %25 = vector.extract_strided_slice %20 {offsets = [0, 0], sizes = [8, 8], strides = [1, 1]} : vector<8x32xf32> to vector<8x8xf32>
    %26 = arith.truncf %25 : vector<8x8xf32> to vector<8x8xbf16>
    %cst_17 = arith.constant dense<0.000000e+00> : vector<8x8xf32>
    %27 = tpu.matmul %22, %24, %cst_17 {dimension_numbers = #tpu.dot_dimension_numbers<[1], [1], [0], [0], [0, 0, 1, 0], [], []>} : vector<8x8xbf16>, vector<8x8xbf16>, vector<8x8xf32> -> vector<8x8xf32>
    %cst_18 = arith.constant 0.353553385 : f32
    %28 = vector.broadcast %cst_18 : f32 to vector<8x8xf32>
    %29 = arith.mulf %27, %28 : vector<8x8xf32>
    %cst_19 = arith.constant -1.000000e+09 : f32
    %30 = vector.broadcast %cst_19 : f32 to vector<8x8xf32>
    %31 = arith.select %7, %29, %30 : vector<8x8xi1>, vector<8x8xf32>
    %cst_20 = arith.constant dense<0xFF800000> : vector<8xf32>
    %32 = vector.multi_reduction <maximumf>, %31, %cst_20 [1] : vector<8x8xf32> to vector<8xf32>
    %33 = vector.shape_cast %32 : vector<8xf32> to vector<8x1xf32>
    %34 = vector.broadcast %33 : vector<8x1xf32> to vector<8x8xf32>
    %35 = arith.subf %31, %34 : vector<8x8xf32>
    %36 = math.exp %35 : vector<8x8xf32>
    %cst_21 = arith.constant dense<0.000000e+00> : vector<8xf32>
    %37 = vector.multi_reduction <add>, %36, %cst_21 [1] : vector<8x8xf32> to vector<8xf32>
    %38 = vector.shape_cast %37 : vector<8xf32> to vector<8x1xf32>
    %39 = tpu.reciprocal %38 {approx = true} : vector<8x1xf32> -> vector<8x1xf32>
    %40 = vector.broadcast %39 : vector<8x1xf32> to vector<8x8xf32>
    %41 = arith.mulf %36, %40 : vector<8x8xf32>
    %42 = arith.truncf %41 : vector<8x8xf32> to vector<8x8xbf16>
    %cst_22 = arith.constant dense<0.000000e+00> : vector<8x8xf32>
    %43 = tpu.matmul %42, %26, %cst_22 {dimension_numbers = #tpu.dot_dimension_numbers<[1], [0], [0], [1], [0, 0, 1, 1], [], []>} : vector<8x8xbf16>, vector<8x8xbf16>, vector<8x8xf32> -> vector<8x8xf32>
    %44 = vector.extract_strided_slice %18 {offsets = [0, 8], sizes = [8, 8], strides = [1, 1]} : vector<8x32xf32> to vector<8x8xf32>
    %45 = arith.truncf %44 : vector<8x8xf32> to vector<8x8xbf16>
    %46 = vector.extract_strided_slice %19 {offsets = [0, 8], sizes = [8, 8], strides = [1, 1]} : vector<8x32xf32> to vector<8x8xf32>
    %47 = arith.truncf %46 : vector<8x8xf32> to vector<8x8xbf16>
    %48 = vector.extract_strided_slice %20 {offsets = [0, 8], sizes = [8, 8], strides = [1, 1]} : vector<8x32xf32> to vector<8x8xf32>
    %49 = arith.truncf %48 : vector<8x8xf32> to vector<8x8xbf16>
    %cst_23 = arith.constant dense<0.000000e+00> : vector<8x8xf32>
    %50 = tpu.matmul %45, %47, %cst_23 {dimension_numbers = #tpu.dot_dimension_numbers<[1], [1], [0], [0], [0, 0, 1, 0], [], []>} : vector<8x8xbf16>, vector<8x8xbf16>, vector<8x8xf32> -> vector<8x8xf32>
    %cst_24 = arith.constant 0.353553385 : f32
    %51 = vector.broadcast %cst_24 : f32 to vector<8x8xf32>
    %52 = arith.mulf %50, %51 : vector<8x8xf32>
    %cst_25 = arith.constant -1.000000e+09 : f32
    %53 = vector.broadcast %cst_25 : f32 to vector<8x8xf32>
    %54 = arith.select %7, %52, %53 : vector<8x8xi1>, vector<8x8xf32>
    %cst_26 = arith.constant dense<0xFF800000> : vector<8xf32>
    %55 = vector.multi_reduction <maximumf>, %54, %cst_26 [1] : vector<8x8xf32> to vector<8xf32>
    %56 = vector.shape_cast %55 : vector<8xf32> to vector<8x1xf32>
    %57 = vector.broadcast %56 : vector<8x1xf32> to vector<8x8xf32>
    %58 = arith.subf %54, %57 : vector<8x8xf32>
    %59 = math.exp %58 : vector<8x8xf32>
    %cst_27 = arith.constant dense<0.000000e+00> : vector<8xf32>
    %60 = vector.multi_reduction <add>, %59, %cst_27 [1] : vector<8x8xf32> to vector<8xf32>
    %61 = vector.shape_cast %60 : vector<8xf32> to vector<8x1xf32>
    %62 = tpu.reciprocal %61 {approx = true} : vector<8x1xf32> -> vector<8x1xf32>
    %63 = vector.broadcast %62 : vector<8x1xf32> to vector<8x8xf32>
    %64 = arith.mulf %59, %63 : vector<8x8xf32>
    %65 = arith.truncf %64 : vector<8x8xf32> to vector<8x8xbf16>
    %cst_28 = arith.constant dense<0.000000e+00> : vector<8x8xf32>
    %66 = tpu.matmul %65, %49, %cst_28 {dimension_numbers = #tpu.dot_dimension_numbers<[1], [0], [0], [1], [0, 0, 1, 1], [], []>} : vector<8x8xbf16>, vector<8x8xbf16>, vector<8x8xf32> -> vector<8x8xf32>
    %67 = vector.extract_strided_slice %18 {offsets = [0, 16], sizes = [8, 8], strides = [1, 1]} : vector<8x32xf32> to vector<8x8xf32>
    %68 = arith.truncf %67 : vector<8x8xf32> to vector<8x8xbf16>
    %69 = vector.extract_strided_slice %19 {offsets = [0, 16], sizes = [8, 8], strides = [1, 1]} : vector<8x32xf32> to vector<8x8xf32>
    %70 = arith.truncf %69 : vector<8x8xf32> to vector<8x8xbf16>
    %71 = vector.extract_strided_slice %20 {offsets = [0, 16], sizes = [8, 8], strides = [1, 1]} : vector<8x32xf32> to vector<8x8xf32>
    %72 = arith.truncf %71 : vector<8x8xf32> to vector<8x8xbf16>
    %cst_29 = arith.constant dense<0.000000e+00> : vector<8x8xf32>
    %73 = tpu.matmul %68, %70, %cst_29 {dimension_numbers = #tpu.dot_dimension_numbers<[1], [1], [0], [0], [0, 0, 1, 0], [], []>} : vector<8x8xbf16>, vector<8x8xbf16>, vector<8x8xf32> -> vector<8x8xf32>
    %cst_30 = arith.constant 0.353553385 : f32
    %74 = vector.broadcast %cst_30 : f32 to vector<8x8xf32>
    %75 = arith.mulf %73, %74 : vector<8x8xf32>
    %cst_31 = arith.constant -1.000000e+09 : f32
    %76 = vector.broadcast %cst_31 : f32 to vector<8x8xf32>
    %77 = arith.select %7, %75, %76 : vector<8x8xi1>, vector<8x8xf32>
    %cst_32 = arith.constant dense<0xFF800000> : vector<8xf32>
    %78 = vector.multi_reduction <maximumf>, %77, %cst_32 [1] : vector<8x8xf32> to vector<8xf32>
    %79 = vector.shape_cast %78 : vector<8xf32> to vector<8x1xf32>
    %80 = vector.broadcast %79 : vector<8x1xf32> to vector<8x8xf32>
    %81 = arith.subf %77, %80 : vector<8x8xf32>
    %82 = math.exp %81 : vector<8x8xf32>
    %cst_33 = arith.constant dense<0.000000e+00> : vector<8xf32>
    %83 = vector.multi_reduction <add>, %82, %cst_33 [1] : vector<8x8xf32> to vector<8xf32>
    %84 = vector.shape_cast %83 : vector<8xf32> to vector<8x1xf32>
    %85 = tpu.reciprocal %84 {approx = true} : vector<8x1xf32> -> vector<8x1xf32>
    %86 = vector.broadcast %85 : vector<8x1xf32> to vector<8x8xf32>
    %87 = arith.mulf %82, %86 : vector<8x8xf32>
    %88 = arith.truncf %87 : vector<8x8xf32> to vector<8x8xbf16>
    %cst_34 = arith.constant dense<0.000000e+00> : vector<8x8xf32>
    %89 = tpu.matmul %88, %72, %cst_34 {dimension_numbers = #tpu.dot_dimension_numbers<[1], [0], [0], [1], [0, 0, 1, 1], [], []>} : vector<8x8xbf16>, vector<8x8xbf16>, vector<8x8xf32> -> vector<8x8xf32>
    %90 = vector.extract_strided_slice %18 {offsets = [0, 24], sizes = [8, 8], strides = [1, 1]} : vector<8x32xf32> to vector<8x8xf32>
    %91 = arith.truncf %90 : vector<8x8xf32> to vector<8x8xbf16>
    %92 = vector.extract_strided_slice %19 {offsets = [0, 24], sizes = [8, 8], strides = [1, 1]} : vector<8x32xf32> to vector<8x8xf32>
    %93 = arith.truncf %92 : vector<8x8xf32> to vector<8x8xbf16>
    %94 = vector.extract_strided_slice %20 {offsets = [0, 24], sizes = [8, 8], strides = [1, 1]} : vector<8x32xf32> to vector<8x8xf32>
    %95 = arith.truncf %94 : vector<8x8xf32> to vector<8x8xbf16>
    %cst_35 = arith.constant dense<0.000000e+00> : vector<8x8xf32>
    %96 = tpu.matmul %91, %93, %cst_35 {dimension_numbers = #tpu.dot_dimension_numbers<[1], [1], [0], [0], [0, 0, 1, 0], [], []>} : vector<8x8xbf16>, vector<8x8xbf16>, vector<8x8xf32> -> vector<8x8xf32>
    %cst_36 = arith.constant 0.353553385 : f32
    %97 = vector.broadcast %cst_36 : f32 to vector<8x8xf32>
    %98 = arith.mulf %96, %97 : vector<8x8xf32>
    %cst_37 = arith.constant -1.000000e+09 : f32
    %99 = vector.broadcast %cst_37 : f32 to vector<8x8xf32>
    %100 = arith.select %7, %98, %99 : vector<8x8xi1>, vector<8x8xf32>
    %cst_38 = arith.constant dense<0xFF800000> : vector<8xf32>
    %101 = vector.multi_reduction <maximumf>, %100, %cst_38 [1] : vector<8x8xf32> to vector<8xf32>
    %102 = vector.shape_cast %101 : vector<8xf32> to vector<8x1xf32>
    %103 = vector.broadcast %102 : vector<8x1xf32> to vector<8x8xf32>
    %104 = arith.subf %100, %103 : vector<8x8xf32>
    %105 = math.exp %104 : vector<8x8xf32>
    %cst_39 = arith.constant dense<0.000000e+00> : vector<8xf32>
    %106 = vector.multi_reduction <add>, %105, %cst_39 [1] : vector<8x8xf32> to vector<8xf32>
    %107 = vector.shape_cast %106 : vector<8xf32> to vector<8x1xf32>
    %108 = tpu.reciprocal %107 {approx = true} : vector<8x1xf32> -> vector<8x1xf32>
    %109 = vector.broadcast %108 : vector<8x1xf32> to vector<8x8xf32>
    %110 = arith.mulf %105, %109 : vector<8x8xf32>
    %111 = arith.truncf %110 : vector<8x8xf32> to vector<8x8xbf16>
    %cst_40 = arith.constant dense<0.000000e+00> : vector<8x8xf32>
    %112 = tpu.matmul %111, %95, %cst_40 {dimension_numbers = #tpu.dot_dimension_numbers<[1], [0], [0], [1], [0, 0, 1, 1], [], []>} : vector<8x8xbf16>, vector<8x8xbf16>, vector<8x8xf32> -> vector<8x8xf32>
    %113 = tpu.concatenate %43, %66, %89, %112 in 1 : vector<8x8xf32>, vector<8x8xf32>, vector<8x8xf32>, vector<8x8xf32> -> vector<8x32xf32>
    %114 = arith.truncf %113 : vector<8x32xf32> to vector<8x32xbf16>
    %c0_41 = arith.constant 0 : index
    %c0_42 = arith.constant 0 : index
    %115 = vector.load %arg7[%c0_41, %c0_42] : memref<32x32xbf16, #tpu.memory_space<vmem>>, vector<32x32xbf16>
    %cst_43 = arith.constant dense<0.000000e+00> : vector<8x32xf32>
    %116 = tpu.matmul %114, %115, %cst_43 {dimension_numbers = #tpu.dot_dimension_numbers<[1], [0], [0], [1], [0, 0, 1, 1], [], []>} : vector<8x32xbf16>, vector<32x32xbf16>, vector<8x32xf32> -> vector<8x32xf32>
    %c0_44 = arith.constant 0 : index
    %c0_45 = arith.constant 0 : index
    %117 = vector.load %arg8[%c0_44, %c0_45] : memref<1x32xf32, #tpu.memory_space<vmem>>, vector<1x32xf32>
    %118 = vector.broadcast %117 : vector<1x32xf32> to vector<8x32xf32>
    %119 = arith.addf %116, %118 : vector<8x32xf32>
    %120 = arith.addf %1, %119 : vector<8x32xf32>
    %c0_46 = arith.constant 0 : index
    %c0_47 = arith.constant 0 : index
    %121 = vector.load %arg9[%c0_46, %c0_47] : memref<1x32xf32, #tpu.memory_space<vmem>>, vector<1x32xf32>
    %c0_48 = arith.constant 0 : index
    %c0_49 = arith.constant 0 : index
    %122 = vector.load %arg10[%c0_48, %c0_49] : memref<1x32xf32, #tpu.memory_space<vmem>>, vector<1x32xf32>
    %cst_50 = arith.constant dense<0.000000e+00> : vector<8xf32>
    %123 = vector.multi_reduction <add>, %120, %cst_50 [1] : vector<8x32xf32> to vector<8xf32>
    %124 = vector.shape_cast %123 : vector<8xf32> to vector<8x1xf32>
    %cst_51 = arith.constant 3.200000e+01 : f32
    %125 = vector.broadcast %cst_51 : f32 to vector<8x1xf32>
    %126 = arith.divf %124, %125 : vector<8x1xf32>
    %127 = vector.broadcast %126 : vector<8x1xf32> to vector<8x32xf32>
    %128 = arith.subf %120, %127 : vector<8x32xf32>
    %129 = vector.broadcast %126 : vector<8x1xf32> to vector<8x32xf32>
    %130 = arith.subf %120, %129 : vector<8x32xf32>
    %131 = arith.mulf %128, %130 : vector<8x32xf32>
    %cst_52 = arith.constant dense<0.000000e+00> : vector<8xf32>
    %132 = vector.multi_reduction <add>, %131, %cst_52 [1] : vector<8x32xf32> to vector<8xf32>
    %133 = vector.shape_cast %132 : vector<8xf32> to vector<8x1xf32>
    %cst_53 = arith.constant 3.200000e+01 : f32
    %134 = vector.broadcast %cst_53 : f32 to vector<8x1xf32>
    %135 = arith.divf %133, %134 : vector<8x1xf32>
    %136 = vector.broadcast %126 : vector<8x1xf32> to vector<8x32xf32>
    %137 = arith.subf %120, %136 : vector<8x32xf32>
    %cst_54 = arith.constant 9.99999974E-6 : f32
    %138 = vector.broadcast %cst_54 : f32 to vector<8x1xf32>
    %139 = arith.addf %135, %138 : vector<8x1xf32>
    %140 = math.rsqrt %139 : vector<8x1xf32>
    %141 = vector.broadcast %140 : vector<8x1xf32> to vector<8x32xf32>
    %142 = arith.mulf %137, %141 : vector<8x32xf32>
    %143 = vector.broadcast %121 : vector<1x32xf32> to vector<8x32xf32>
    %144 = arith.mulf %142, %143 : vector<8x32xf32>
    %145 = vector.broadcast %122 : vector<1x32xf32> to vector<8x32xf32>
    %146 = arith.addf %144, %145 : vector<8x32xf32>
    %147 = arith.truncf %146 : vector<8x32xf32> to vector<8x32xbf16>
    %c0_55 = arith.constant 0 : index
    %c0_56 = arith.constant 0 : index
    %148 = vector.load %arg11[%c0_55, %c0_56] : memref<32x32xbf16, #tpu.memory_space<vmem>>, vector<32x32xbf16>
    %cst_57 = arith.constant dense<0.000000e+00> : vector<8x32xf32>
    %149 = tpu.matmul %147, %148, %cst_57 {dimension_numbers = #tpu.dot_dimension_numbers<[1], [0], [0], [1], [0, 0, 1, 1], [], []>} : vector<8x32xbf16>, vector<32x32xbf16>, vector<8x32xf32> -> vector<8x32xf32>
    %c0_58 = arith.constant 0 : index
    %c0_59 = arith.constant 0 : index
    %150 = vector.load %arg12[%c0_58, %c0_59] : memref<1x32xf32, #tpu.memory_space<vmem>>, vector<1x32xf32>
    %151 = vector.broadcast %150 : vector<1x32xf32> to vector<8x32xf32>
    %152 = arith.addf %149, %151 : vector<8x32xf32>
    %153 = arith.truncf %3 : vector<8x32xf32> to vector<8x32xbf16>
    %c0_60 = arith.constant 0 : index
    %c0_61 = arith.constant 0 : index
    %154 = vector.load %arg13[%c0_60, %c0_61] : memref<32x64xbf16, #tpu.memory_space<vmem>>, vector<32x64xbf16>
    %cst_62 = arith.constant dense<0.000000e+00> : vector<8x64xf32>
    %155 = tpu.matmul %153, %154, %cst_62 {dimension_numbers = #tpu.dot_dimension_numbers<[1], [0], [0], [1], [0, 0, 1, 1], [], []>} : vector<8x32xbf16>, vector<32x64xbf16>, vector<8x64xf32> -> vector<8x64xf32>
    %c0_63 = arith.constant 0 : index
    %c0_64 = arith.constant 0 : index
    %156 = vector.load %arg14[%c0_63, %c0_64] : memref<1x64xf32, #tpu.memory_space<vmem>>, vector<1x64xf32>
    %157 = vector.broadcast %156 : vector<1x64xf32> to vector<8x64xf32>
    %158 = arith.addf %155, %157 : vector<8x64xf32>
    %159 = vector.extract_strided_slice %158 {offsets = [0, 0], sizes = [8, 32], strides = [1, 1]} : vector<8x64xf32> to vector<8x32xf32>
    %160 = vector.extract_strided_slice %158 {offsets = [0, 32], sizes = [8, 32], strides = [1, 1]} : vector<8x64xf32> to vector<8x32xf32>
    %161 = vector.extract_strided_slice %152 {offsets = [0, 0], sizes = [8, 8], strides = [1, 1]} : vector<8x32xf32> to vector<8x8xf32>
    %162 = arith.truncf %161 : vector<8x8xf32> to vector<8x8xbf16>
    %163 = vector.extract_strided_slice %159 {offsets = [0, 0], sizes = [8, 8], strides = [1, 1]} : vector<8x32xf32> to vector<8x8xf32>
    %164 = arith.truncf %163 : vector<8x8xf32> to vector<8x8xbf16>
    %165 = vector.extract_strided_slice %160 {offsets = [0, 0], sizes = [8, 8], strides = [1, 1]} : vector<8x32xf32> to vector<8x8xf32>
    %166 = arith.truncf %165 : vector<8x8xf32> to vector<8x8xbf16>
    %cst_65 = arith.constant dense<0.000000e+00> : vector<8x8xf32>
    %167 = tpu.matmul %162, %164, %cst_65 {dimension_numbers = #tpu.dot_dimension_numbers<[1], [1], [0], [0], [0, 0, 1, 0], [], []>} : vector<8x8xbf16>, vector<8x8xbf16>, vector<8x8xf32> -> vector<8x8xf32>
    %cst_66 = arith.constant 0.353553385 : f32
    %168 = vector.broadcast %cst_66 : f32 to vector<8x8xf32>
    %169 = arith.mulf %167, %168 : vector<8x8xf32>
    %cst_67 = arith.constant -1.000000e+09 : f32
    %170 = vector.broadcast %cst_67 : f32 to vector<8x8xf32>
    %171 = arith.select %11, %169, %170 : vector<8x8xi1>, vector<8x8xf32>
    %cst_68 = arith.constant dense<0xFF800000> : vector<8xf32>
    %172 = vector.multi_reduction <maximumf>, %171, %cst_68 [1] : vector<8x8xf32> to vector<8xf32>
    %173 = vector.shape_cast %172 : vector<8xf32> to vector<8x1xf32>
    %174 = vector.broadcast %173 : vector<8x1xf32> to vector<8x8xf32>
    %175 = arith.subf %171, %174 : vector<8x8xf32>
    %176 = math.exp %175 : vector<8x8xf32>
    %cst_69 = arith.constant dense<0.000000e+00> : vector<8xf32>
    %177 = vector.multi_reduction <add>, %176, %cst_69 [1] : vector<8x8xf32> to vector<8xf32>
    %178 = vector.shape_cast %177 : vector<8xf32> to vector<8x1xf32>
    %179 = tpu.reciprocal %178 {approx = true} : vector<8x1xf32> -> vector<8x1xf32>
    %180 = vector.broadcast %179 : vector<8x1xf32> to vector<8x8xf32>
    %181 = arith.mulf %176, %180 : vector<8x8xf32>
    %182 = arith.truncf %181 : vector<8x8xf32> to vector<8x8xbf16>
    %cst_70 = arith.constant dense<0.000000e+00> : vector<8x8xf32>
    %183 = tpu.matmul %182, %166, %cst_70 {dimension_numbers = #tpu.dot_dimension_numbers<[1], [0], [0], [1], [0, 0, 1, 1], [], []>} : vector<8x8xbf16>, vector<8x8xbf16>, vector<8x8xf32> -> vector<8x8xf32>
    %184 = vector.extract_strided_slice %152 {offsets = [0, 8], sizes = [8, 8], strides = [1, 1]} : vector<8x32xf32> to vector<8x8xf32>
    %185 = arith.truncf %184 : vector<8x8xf32> to vector<8x8xbf16>
    %186 = vector.extract_strided_slice %159 {offsets = [0, 8], sizes = [8, 8], strides = [1, 1]} : vector<8x32xf32> to vector<8x8xf32>
    %187 = arith.truncf %186 : vector<8x8xf32> to vector<8x8xbf16>
    %188 = vector.extract_strided_slice %160 {offsets = [0, 8], sizes = [8, 8], strides = [1, 1]} : vector<8x32xf32> to vector<8x8xf32>
    %189 = arith.truncf %188 : vector<8x8xf32> to vector<8x8xbf16>
    %cst_71 = arith.constant dense<0.000000e+00> : vector<8x8xf32>
    %190 = tpu.matmul %185, %187, %cst_71 {dimension_numbers = #tpu.dot_dimension_numbers<[1], [1], [0], [0], [0, 0, 1, 0], [], []>} : vector<8x8xbf16>, vector<8x8xbf16>, vector<8x8xf32> -> vector<8x8xf32>
    %cst_72 = arith.constant 0.353553385 : f32
    %191 = vector.broadcast %cst_72 : f32 to vector<8x8xf32>
    %192 = arith.mulf %190, %191 : vector<8x8xf32>
    %cst_73 = arith.constant -1.000000e+09 : f32
    %193 = vector.broadcast %cst_73 : f32 to vector<8x8xf32>
    %194 = arith.select %11, %192, %193 : vector<8x8xi1>, vector<8x8xf32>
    %cst_74 = arith.constant dense<0xFF800000> : vector<8xf32>
    %195 = vector.multi_reduction <maximumf>, %194, %cst_74 [1] : vector<8x8xf32> to vector<8xf32>
    %196 = vector.shape_cast %195 : vector<8xf32> to vector<8x1xf32>
    %197 = vector.broadcast %196 : vector<8x1xf32> to vector<8x8xf32>
    %198 = arith.subf %194, %197 : vector<8x8xf32>
    %199 = math.exp %198 : vector<8x8xf32>
    %cst_75 = arith.constant dense<0.000000e+00> : vector<8xf32>
    %200 = vector.multi_reduction <add>, %199, %cst_75 [1] : vector<8x8xf32> to vector<8xf32>
    %201 = vector.shape_cast %200 : vector<8xf32> to vector<8x1xf32>
    %202 = tpu.reciprocal %201 {approx = true} : vector<8x1xf32> -> vector<8x1xf32>
    %203 = vector.broadcast %202 : vector<8x1xf32> to vector<8x8xf32>
    %204 = arith.mulf %199, %203 : vector<8x8xf32>
    %205 = arith.truncf %204 : vector<8x8xf32> to vector<8x8xbf16>
    %cst_76 = arith.constant dense<0.000000e+00> : vector<8x8xf32>
    %206 = tpu.matmul %205, %189, %cst_76 {dimension_numbers = #tpu.dot_dimension_numbers<[1], [0], [0], [1], [0, 0, 1, 1], [], []>} : vector<8x8xbf16>, vector<8x8xbf16>, vector<8x8xf32> -> vector<8x8xf32>
    %207 = vector.extract_strided_slice %152 {offsets = [0, 16], sizes = [8, 8], strides = [1, 1]} : vector<8x32xf32> to vector<8x8xf32>
    %208 = arith.truncf %207 : vector<8x8xf32> to vector<8x8xbf16>
    %209 = vector.extract_strided_slice %159 {offsets = [0, 16], sizes = [8, 8], strides = [1, 1]} : vector<8x32xf32> to vector<8x8xf32>
    %210 = arith.truncf %209 : vector<8x8xf32> to vector<8x8xbf16>
    %211 = vector.extract_strided_slice %160 {offsets = [0, 16], sizes = [8, 8], strides = [1, 1]} : vector<8x32xf32> to vector<8x8xf32>
    %212 = arith.truncf %211 : vector<8x8xf32> to vector<8x8xbf16>
    %cst_77 = arith.constant dense<0.000000e+00> : vector<8x8xf32>
    %213 = tpu.matmul %208, %210, %cst_77 {dimension_numbers = #tpu.dot_dimension_numbers<[1], [1], [0], [0], [0, 0, 1, 0], [], []>} : vector<8x8xbf16>, vector<8x8xbf16>, vector<8x8xf32> -> vector<8x8xf32>
    %cst_78 = arith.constant 0.353553385 : f32
    %214 = vector.broadcast %cst_78 : f32 to vector<8x8xf32>
    %215 = arith.mulf %213, %214 : vector<8x8xf32>
    %cst_79 = arith.constant -1.000000e+09 : f32
    %216 = vector.broadcast %cst_79 : f32 to vector<8x8xf32>
    %217 = arith.select %11, %215, %216 : vector<8x8xi1>, vector<8x8xf32>
    %cst_80 = arith.constant dense<0xFF800000> : vector<8xf32>
    %218 = vector.multi_reduction <maximumf>, %217, %cst_80 [1] : vector<8x8xf32> to vector<8xf32>
    %219 = vector.shape_cast %218 : vector<8xf32> to vector<8x1xf32>
    %220 = vector.broadcast %219 : vector<8x1xf32> to vector<8x8xf32>
    %221 = arith.subf %217, %220 : vector<8x8xf32>
    %222 = math.exp %221 : vector<8x8xf32>
    %cst_81 = arith.constant dense<0.000000e+00> : vector<8xf32>
    %223 = vector.multi_reduction <add>, %222, %cst_81 [1] : vector<8x8xf32> to vector<8xf32>
    %224 = vector.shape_cast %223 : vector<8xf32> to vector<8x1xf32>
    %225 = tpu.reciprocal %224 {approx = true} : vector<8x1xf32> -> vector<8x1xf32>
    %226 = vector.broadcast %225 : vector<8x1xf32> to vector<8x8xf32>
    %227 = arith.mulf %222, %226 : vector<8x8xf32>
    %228 = arith.truncf %227 : vector<8x8xf32> to vector<8x8xbf16>
    %cst_82 = arith.constant dense<0.000000e+00> : vector<8x8xf32>
    %229 = tpu.matmul %228, %212, %cst_82 {dimension_numbers = #tpu.dot_dimension_numbers<[1], [0], [0], [1], [0, 0, 1, 1], [], []>} : vector<8x8xbf16>, vector<8x8xbf16>, vector<8x8xf32> -> vector<8x8xf32>
    %230 = vector.extract_strided_slice %152 {offsets = [0, 24], sizes = [8, 8], strides = [1, 1]} : vector<8x32xf32> to vector<8x8xf32>
    %231 = arith.truncf %230 : vector<8x8xf32> to vector<8x8xbf16>
    %232 = vector.extract_strided_slice %159 {offsets = [0, 24], sizes = [8, 8], strides = [1, 1]} : vector<8x32xf32> to vector<8x8xf32>
    %233 = arith.truncf %232 : vector<8x8xf32> to vector<8x8xbf16>
    %234 = vector.extract_strided_slice %160 {offsets = [0, 24], sizes = [8, 8], strides = [1, 1]} : vector<8x32xf32> to vector<8x8xf32>
    %235 = arith.truncf %234 : vector<8x8xf32> to vector<8x8xbf16>
    %cst_83 = arith.constant dense<0.000000e+00> : vector<8x8xf32>
    %236 = tpu.matmul %231, %233, %cst_83 {dimension_numbers = #tpu.dot_dimension_numbers<[1], [1], [0], [0], [0, 0, 1, 0], [], []>} : vector<8x8xbf16>, vector<8x8xbf16>, vector<8x8xf32> -> vector<8x8xf32>
    %cst_84 = arith.constant 0.353553385 : f32
    %237 = vector.broadcast %cst_84 : f32 to vector<8x8xf32>
    %238 = arith.mulf %236, %237 : vector<8x8xf32>
    %cst_85 = arith.constant -1.000000e+09 : f32
    %239 = vector.broadcast %cst_85 : f32 to vector<8x8xf32>
    %240 = arith.select %11, %238, %239 : vector<8x8xi1>, vector<8x8xf32>
    %cst_86 = arith.constant dense<0xFF800000> : vector<8xf32>
    %241 = vector.multi_reduction <maximumf>, %240, %cst_86 [1] : vector<8x8xf32> to vector<8xf32>
    %242 = vector.shape_cast %241 : vector<8xf32> to vector<8x1xf32>
    %243 = vector.broadcast %242 : vector<8x1xf32> to vector<8x8xf32>
    %244 = arith.subf %240, %243 : vector<8x8xf32>
    %245 = math.exp %244 : vector<8x8xf32>
    %cst_87 = arith.constant dense<0.000000e+00> : vector<8xf32>
    %246 = vector.multi_reduction <add>, %245, %cst_87 [1] : vector<8x8xf32> to vector<8xf32>
    %247 = vector.shape_cast %246 : vector<8xf32> to vector<8x1xf32>
    %248 = tpu.reciprocal %247 {approx = true} : vector<8x1xf32> -> vector<8x1xf32>
    %249 = vector.broadcast %248 : vector<8x1xf32> to vector<8x8xf32>
    %250 = arith.mulf %245, %249 : vector<8x8xf32>
    %251 = arith.truncf %250 : vector<8x8xf32> to vector<8x8xbf16>
    %cst_88 = arith.constant dense<0.000000e+00> : vector<8x8xf32>
    %252 = tpu.matmul %251, %235, %cst_88 {dimension_numbers = #tpu.dot_dimension_numbers<[1], [0], [0], [1], [0, 0, 1, 1], [], []>} : vector<8x8xbf16>, vector<8x8xbf16>, vector<8x8xf32> -> vector<8x8xf32>
    %253 = tpu.concatenate %183, %206, %229, %252 in 1 : vector<8x8xf32>, vector<8x8xf32>, vector<8x8xf32>, vector<8x8xf32> -> vector<8x32xf32>
    %254 = arith.truncf %253 : vector<8x32xf32> to vector<8x32xbf16>
    %c0_89 = arith.constant 0 : index
    %c0_90 = arith.constant 0 : index
    %255 = vector.load %arg15[%c0_89, %c0_90] : memref<32x32xbf16, #tpu.memory_space<vmem>>, vector<32x32xbf16>
    %cst_91 = arith.constant dense<0.000000e+00> : vector<8x32xf32>
    %256 = tpu.matmul %254, %255, %cst_91 {dimension_numbers = #tpu.dot_dimension_numbers<[1], [0], [0], [1], [0, 0, 1, 1], [], []>} : vector<8x32xbf16>, vector<32x32xbf16>, vector<8x32xf32> -> vector<8x32xf32>
    %c0_92 = arith.constant 0 : index
    %c0_93 = arith.constant 0 : index
    %257 = vector.load %arg16[%c0_92, %c0_93] : memref<1x32xf32, #tpu.memory_space<vmem>>, vector<1x32xf32>
    %258 = vector.broadcast %257 : vector<1x32xf32> to vector<8x32xf32>
    %259 = arith.addf %256, %258 : vector<8x32xf32>
    %260 = arith.addf %146, %259 : vector<8x32xf32>
    %c0_94 = arith.constant 0 : index
    %c0_95 = arith.constant 0 : index
    %261 = vector.load %arg17[%c0_94, %c0_95] : memref<1x32xf32, #tpu.memory_space<vmem>>, vector<1x32xf32>
    %c0_96 = arith.constant 0 : index
    %c0_97 = arith.constant 0 : index
    %262 = vector.load %arg18[%c0_96, %c0_97] : memref<1x32xf32, #tpu.memory_space<vmem>>, vector<1x32xf32>
    %cst_98 = arith.constant dense<0.000000e+00> : vector<8xf32>
    %263 = vector.multi_reduction <add>, %260, %cst_98 [1] : vector<8x32xf32> to vector<8xf32>
    %264 = vector.shape_cast %263 : vector<8xf32> to vector<8x1xf32>
    %cst_99 = arith.constant 3.200000e+01 : f32
    %265 = vector.broadcast %cst_99 : f32 to vector<8x1xf32>
    %266 = arith.divf %264, %265 : vector<8x1xf32>
    %267 = vector.broadcast %266 : vector<8x1xf32> to vector<8x32xf32>
    %268 = arith.subf %260, %267 : vector<8x32xf32>
    %269 = vector.broadcast %266 : vector<8x1xf32> to vector<8x32xf32>
    %270 = arith.subf %260, %269 : vector<8x32xf32>
    %271 = arith.mulf %268, %270 : vector<8x32xf32>
    %cst_100 = arith.constant dense<0.000000e+00> : vector<8xf32>
    %272 = vector.multi_reduction <add>, %271, %cst_100 [1] : vector<8x32xf32> to vector<8xf32>
    %273 = vector.shape_cast %272 : vector<8xf32> to vector<8x1xf32>
    %cst_101 = arith.constant 3.200000e+01 : f32
    %274 = vector.broadcast %cst_101 : f32 to vector<8x1xf32>
    %275 = arith.divf %273, %274 : vector<8x1xf32>
    %276 = vector.broadcast %266 : vector<8x1xf32> to vector<8x32xf32>
    %277 = arith.subf %260, %276 : vector<8x32xf32>
    %cst_102 = arith.constant 9.99999974E-6 : f32
    %278 = vector.broadcast %cst_102 : f32 to vector<8x1xf32>
    %279 = arith.addf %275, %278 : vector<8x1xf32>
    %280 = math.rsqrt %279 : vector<8x1xf32>
    %281 = vector.broadcast %280 : vector<8x1xf32> to vector<8x32xf32>
    %282 = arith.mulf %277, %281 : vector<8x32xf32>
    %283 = vector.broadcast %261 : vector<1x32xf32> to vector<8x32xf32>
    %284 = arith.mulf %282, %283 : vector<8x32xf32>
    %285 = vector.broadcast %262 : vector<1x32xf32> to vector<8x32xf32>
    %286 = arith.addf %284, %285 : vector<8x32xf32>
    %287 = arith.truncf %286 : vector<8x32xf32> to vector<8x32xbf16>
    %c0_103 = arith.constant 0 : index
    %c0_104 = arith.constant 0 : index
    %288 = vector.load %arg19[%c0_103, %c0_104] : memref<32x64xbf16, #tpu.memory_space<vmem>>, vector<32x64xbf16>
    %cst_105 = arith.constant dense<0.000000e+00> : vector<8x64xf32>
    %289 = tpu.matmul %287, %288, %cst_105 {dimension_numbers = #tpu.dot_dimension_numbers<[1], [0], [0], [1], [0, 0, 1, 1], [], []>} : vector<8x32xbf16>, vector<32x64xbf16>, vector<8x64xf32> -> vector<8x64xf32>
    %c0_106 = arith.constant 0 : index
    %c0_107 = arith.constant 0 : index
    %290 = vector.load %arg20[%c0_106, %c0_107] : memref<1x64xf32, #tpu.memory_space<vmem>>, vector<1x64xf32>
    %291 = vector.broadcast %290 : vector<1x64xf32> to vector<8x64xf32>
    %292 = arith.addf %289, %291 : vector<8x64xf32>
    %cst_108 = arith.constant 0.000000e+00 : f32
    %293 = vector.broadcast %cst_108 : f32 to vector<8x64xf32>
    %294 = arith.maximumf %292, %293 : vector<8x64xf32>
    %295 = arith.truncf %294 : vector<8x64xf32> to vector<8x64xbf16>
    %c0_109 = arith.constant 0 : index
    %c0_110 = arith.constant 0 : index
    %296 = vector.load %arg21[%c0_109, %c0_110] : memref<64x32xbf16, #tpu.memory_space<vmem>>, vector<64x32xbf16>
    %cst_111 = arith.constant dense<0.000000e+00> : vector<8x32xf32>
    %297 = tpu.matmul %295, %296, %cst_111 {dimension_numbers = #tpu.dot_dimension_numbers<[1], [0], [0], [1], [0, 0, 1, 1], [], []>} : vector<8x64xbf16>, vector<64x32xbf16>, vector<8x32xf32> -> vector<8x32xf32>
    %c0_112 = arith.constant 0 : index
    %c0_113 = arith.constant 0 : index
    %298 = vector.load %arg22[%c0_112, %c0_113] : memref<1x32xf32, #tpu.memory_space<vmem>>, vector<1x32xf32>
    %299 = vector.broadcast %298 : vector<1x32xf32> to vector<8x32xf32>
    %300 = arith.addf %297, %299 : vector<8x32xf32>
    %301 = arith.addf %286, %300 : vector<8x32xf32>
    %c0_114 = arith.constant 0 : index
    %c0_115 = arith.constant 0 : index
    %302 = vector.load %arg23[%c0_114, %c0_115] : memref<1x32xf32, #tpu.memory_space<vmem>>, vector<1x32xf32>
    %c0_116 = arith.constant 0 : index
    %c0_117 = arith.constant 0 : index
    %303 = vector.load %arg24[%c0_116, %c0_117] : memref<1x32xf32, #tpu.memory_space<vmem>>, vector<1x32xf32>
    %cst_118 = arith.constant dense<0.000000e+00> : vector<8xf32>
    %304 = vector.multi_reduction <add>, %301, %cst_118 [1] : vector<8x32xf32> to vector<8xf32>
    %305 = vector.shape_cast %304 : vector<8xf32> to vector<8x1xf32>
    %cst_119 = arith.constant 3.200000e+01 : f32
    %306 = vector.broadcast %cst_119 : f32 to vector<8x1xf32>
    %307 = arith.divf %305, %306 : vector<8x1xf32>
    %308 = vector.broadcast %307 : vector<8x1xf32> to vector<8x32xf32>
    %309 = arith.subf %301, %308 : vector<8x32xf32>
    %310 = vector.broadcast %307 : vector<8x1xf32> to vector<8x32xf32>
    %311 = arith.subf %301, %310 : vector<8x32xf32>
    %312 = arith.mulf %309, %311 : vector<8x32xf32>
    %cst_120 = arith.constant dense<0.000000e+00> : vector<8xf32>
    %313 = vector.multi_reduction <add>, %312, %cst_120 [1] : vector<8x32xf32> to vector<8xf32>
    %314 = vector.shape_cast %313 : vector<8xf32> to vector<8x1xf32>
    %cst_121 = arith.constant 3.200000e+01 : f32
    %315 = vector.broadcast %cst_121 : f32 to vector<8x1xf32>
    %316 = arith.divf %314, %315 : vector<8x1xf32>
    %317 = vector.broadcast %307 : vector<8x1xf32> to vector<8x32xf32>
    %318 = arith.subf %301, %317 : vector<8x32xf32>
    %cst_122 = arith.constant 9.99999974E-6 : f32
    %319 = vector.broadcast %cst_122 : f32 to vector<8x1xf32>
    %320 = arith.addf %316, %319 : vector<8x1xf32>
    %321 = math.rsqrt %320 : vector<8x1xf32>
    %322 = vector.broadcast %321 : vector<8x1xf32> to vector<8x32xf32>
    %323 = arith.mulf %318, %322 : vector<8x32xf32>
    %324 = vector.broadcast %302 : vector<1x32xf32> to vector<8x32xf32>
    %325 = arith.mulf %323, %324 : vector<8x32xf32>
    %326 = vector.broadcast %303 : vector<1x32xf32> to vector<8x32xf32>
    %327 = arith.addf %325, %326 : vector<8x32xf32>
    %c0_123 = arith.constant 0 : index
    %c0_124 = arith.constant 0 : index
    %c0_125 = arith.constant 0 : index
    %328 = vector.load %arg25[%c0_123, %c0_124, %c0_125] : memref<1x8x32xf32, #tpu.memory_space<vmem>>, vector<1x8x32xf32>
    %329 = vector.shape_cast %328 : vector<1x8x32xf32> to vector<8x32xf32>
    %330 = vector.shape_cast %327 : vector<8x32xf32> to vector<1x8x32xf32>
    tpu.vector_store %arg25[%c0_123, %c0_124, %c0_125], %330 {strides = array<i32>} : memref<1x8x32xf32, #tpu.memory_space<vmem>>, vector<1x8x32xf32>,
    return
  }
  func.func @transform_0(%arg0: i32) -> (i32, i32, i32) {
    %c0_i32 = arith.constant 0 : i32
    %c0_i32_0 = arith.constant 0 : i32
    %c0_i32_1 = arith.constant 0 : i32
    return %arg0, %c0_i32, %c0_i32_0 : i32, i32, i32
  }
  func.func @transform_1(%arg0: i32) -> (i32, i32, i32) {
    %c0_i32 = arith.constant 0 : i32
    %c0_i32_0 = arith.constant 0 : i32
    %c0_i32_1 = arith.constant 0 : i32
    return %arg0, %c0_i32, %c0_i32_0 : i32, i32, i32
  }
  func.func @transform_2(%arg0: i32) -> (i32, i32, i32) {
    %c0_i32 = arith.constant 0 : i32
    %c0_i32_0 = arith.constant 0 : i32
    %c0_i32_1 = arith.constant 0 : i32
    return %arg0, %c0_i32, %c0_i32_0 : i32, i32, i32
  }
  func.func @transform_3(%arg0: i32) -> (i32, i32, i32) {
    %c0_i32 = arith.constant 0 : i32
    %c0_i32_0 = arith.constant 0 : i32
    %c0_i32_1 = arith.constant 0 : i32
    return %arg0, %c0_i32, %c0_i32_0 : i32, i32, i32
  }
  func.func @transform_4(%arg0: i32) -> (i32, i32) {
    %c0_i32 = arith.constant 0 : i32
    %c0_i32_0 = arith.constant 0 : i32
    %c0_i32_1 = arith.constant 0 : i32
    return %c0_i32, %c0_i32_0 : i32, i32
  }
  func.func @transform_5(%arg0: i32) -> (i32, i32) {
    %c0_i32 = arith.constant 0 : i32
    %c0_i32_0 = arith.constant 0 : i32
    %c0_i32_1 = arith.constant 0 : i32
    return %c0_i32, %c0_i32_0 : i32, i32
  }
  func.func @transform_6(%arg0: i32) -> (i32, i32) {
    %c0_i32 = arith.constant 0 : i32
    %c0_i32_0 = arith.constant 0 : i32
    %c0_i32_1 = arith.constant 0 : i32
    return %c0_i32, %c0_i32_0 : i32, i32
  }
  func.func @transform_7(%arg0: i32) -> (i32, i32) {
    %c0_i32 = arith.constant 0 : i32
    %c0_i32_0 = arith.constant 0 : i32
    %c0_i32_1 = arith.constant 0 : i32
    return %c0_i32, %c0_i32_0 : i32, i32
  }
  func.func @transform_8(%arg0: i32) -> (i32, i32) {
    %c0_i32 = arith.constant 0 : i32
    %c0_i32_0 = arith.constant 0 : i32
    %c0_i32_1 = arith.constant 0 : i32
    return %c0_i32, %c0_i32_0 : i32, i32
  }
  func.func @transform_9(%arg0: i32) -> (i32, i32) {
    %c0_i32 = arith.constant 0 : i32
    %c0_i32_0 = arith.constant 0 : i32
    %c0_i32_1 = arith.constant 0 : i32
    return %c0_i32, %c0_i32_0 : i32, i32
  }
  func.func @transform_10(%arg0: i32) -> (i32, i32) {
    %c0_i32 = arith.constant 0 : i32
    %c0_i32_0 = arith.constant 0 : i32
    %c0_i32_1 = arith.constant 0 : i32
    return %c0_i32, %c0_i32_0 : i32, i32
  }
  func.func @transform_11(%arg0: i32) -> (i32, i32) {
    %c0_i32 = arith.constant 0 : i32
    %c0_i32_0 = arith.constant 0 : i32
    %c0_i32_1 = arith.constant 0 : i32
    return %c0_i32, %c0_i32_0 : i32, i32
  }
  func.func @transform_12(%arg0: i32) -> (i32, i32) {
    %c0_i32 = arith.constant 0 : i32
    %c0_i32_0 = arith.constant 0 : i32
    %c0_i32_1 = arith.constant 0 : i32
    return %c0_i32, %c0_i32_0 : i32, i32
  }
  func.func @transform_13(%arg0: i32) -> (i32, i32) {
    %c0_i32 = arith.constant 0 : i32
    %c0_i32_0 = arith.constant 0 : i32
    %c0_i32_1 = arith.constant 0 : i32
    return %c0_i32, %c0_i32_0 : i32, i32
  }
  func.func @transform_14(%arg0: i32) -> (i32, i32) {
    %c0_i32 = arith.constant 0 : i32
    %c0_i32_0 = arith.constant 0 : i32
    %c0_i32_1 = arith.constant 0 : i32
    return %c0_i32, %c0_i32_0 : i32, i32
  }
  func.func @transform_15(%arg0: i32) -> (i32, i32) {
    %c0_i32 = arith.constant 0 : i32
    %c0_i32_0 = arith.constant 0 : i32
    %c0_i32_1 = arith.constant 0 : i32
    return %c0_i32, %c0_i32_0 : i32, i32
  }
  func.func @transform_16(%arg0: i32) -> (i32, i32) {
    %c0_i32 = arith.constant 0 : i32
    %c0_i32_0 = arith.constant 0 : i32
    %c0_i32_1 = arith.constant 0 : i32
    return %c0_i32, %c0_i32_0 : i32, i32
  }
  func.func @transform_17(%arg0: i32) -> (i32, i32) {
    %c0_i32 = arith.constant 0 : i32
    %c0_i32_0 = arith.constant 0 : i32
    %c0_i32_1 = arith.constant 0 : i32
    return %c0_i32, %c0_i32_0 : i32, i32
  }
  func.func @transform_18(%arg0: i32) -> (i32, i32) {
    %c0_i32 = arith.constant 0 : i32
    %c0_i32_0 = arith.constant 0 : i32
    %c0_i32_1 = arith.constant 0 : i32
    return %c0_i32, %c0_i32_0 : i32, i32
  }
  func.func @transform_19(%arg0: i32) -> (i32, i32) {
    %c0_i32 = arith.constant 0 : i32
    %c0_i32_0 = arith.constant 0 : i32
    %c0_i32_1 = arith.constant 0 : i32
    return %c0_i32, %c0_i32_0 : i32, i32
  }
  func.func @transform_20(%arg0: i32) -> (i32, i32) {
    %c0_i32 = arith.constant 0 : i32
    %c0_i32_0 = arith.constant 0 : i32
    %c0_i32_1 = arith.constant 0 : i32
    return %c0_i32, %c0_i32_0 : i32, i32
  }
  func.func @transform_21(%arg0: i32) -> (i32, i32) {
    %c0_i32 = arith.constant 0 : i32
    %c0_i32_0 = arith.constant 0 : i32
    %c0_i32_1 = arith.constant 0 : i32
    return %c0_i32, %c0_i32_0 : i32, i32
  }
  func.func @transform_22(%arg0: i32) -> (i32, i32) {
    %c0_i32 = arith.constant 0 : i32
    %c0_i32_0 = arith.constant 0 : i32
    %c0_i32_1 = arith.constant 0 : i32
    return %c0_i32, %c0_i32_0 : i32, i32
  }
  func.func @transform_23(%arg0: i32) -> (i32, i32) {
    %c0_i32 = arith.constant 0 : i32
    %c0_i32_0 = arith.constant 0 : i32
    %c0_i32_1 = arith.constant 0 : i32
    return %c0_i32, %c0_i32_0 : i32, i32
  }
  func.func @transform_24(%arg0: i32) -> (i32, i32, i32) {
    %c0_i32 = arith.constant 0 : i32
    %c0_i32_0 = arith.constant 0 : i32
    %c0_i32_1 = arith.constant 0 : i32
    return %arg0, %c0_i32, %c0_i32_0 : i32, i32, i32
  }
}

</mosaic_0001>

<bundles_post_ra>
// kernel: decoder_forward.2
= control target key start
LH: loop header
LB: loop body
LE: loop exit
PB: predicated region body
PF: predicated region fallthrough
CT: control target
= control target key end

     0   :  { %s3222_s0 = inlined_call_operand.vmem [shape: f32[2,8,32], index: 0, kind: input, shape index: {}]   ;;  %s3223_s1 = inlined_call_operand.vmem [shape: f32[2,8,32], index: 1, kind: input, shape index: {}]   ;;  %s3224_s2 = inlined_call_operand.vmem [shape: f32[2,8,8], index: 2, kind: input, shape index: {}]   ;;  %s3225_s3 = inlined_call_operand.vmem [shape: f32[2,8,8], index: 3, kind: input, shape index: {}]   ;;  %s3226_s4 = inlined_call_operand.vmem [shape: bf16[32,96], index: 4, kind: input, shape index: {}]   ;;  %s3227_s5 = inlined_call_operand.vmem [shape: f32[1,96], index: 5, kind: input, shape index: {}]   ;;  %s3228_s6 = inlined_call_operand.vmem [shape: bf16[32,32], index: 6, kind: input, shape index: {}]   ;;  %s3229_s7 = inlined_call_operand.vmem [shape: f32[1,32], index: 7, kind: input, shape index: {}]   ;;  %s3230_s8 = inlined_call_operand.vmem [shape: f32[1,32], index: 8, kind: input, shape index: {}]   ;;  %s3231_s9 = inlined_call_operand.vmem [shape: f32[1,32], index: 9, kind: input, shape index: {}]   ;;  %s3232_s10 = inlined_call_operand.vmem [shape: bf16[32,32], index: 10, kind: input, shape index: {}]   ;;  %s3233_s11 = inlined_call_operand.vmem [shape: f32[1,32], index: 11, kind: input, shape index: {}]   ;;  %s3234_s12 = inlined_call_operand.vmem [shape: bf16[32,64], index: 12, kind: input, shape index: {}]   ;;  %s3235_s13 = inlined_call_operand.vmem [shape: f32[1,64], index: 13, kind: input, shape index: {}]   ;;  %s3236_s14 = inlined_call_operand.vmem [shape: bf16[32,32], index: 14, kind: input, shape index: {}]   ;;  %s3237_s15 = inlined_call_operand.vmem [shape: f32[1,32], index: 15, kind: input, shape index: {}]   ;;  %s3238_s16 = inlined_call_operand.vmem [shape: f32[1,32], index: 16, kind: input, shape index: {}]   ;;  %s3239_s17 = inlined_call_operand.vmem [shape: f32[1,32], index: 17, kind: input, shape index: {}]   ;;  %s3240_s18 = inlined_call_operand.vmem [shape: bf16[32,64], index: 18, kind: input, shape index: {}]   ;;  %s3241_s19 = inlined_call_operand.vmem [shape: f32[1,64], index: 19, kind: input, shape index: {}]   ;;  %s3242_s20 = inlined_call_operand.vmem [shape: bf16[64,32], index: 20, kind: input, shape index: {}]   ;;  %s3243_s21 = inlined_call_operand.vmem [shape: f32[1,32], index: 21, kind: input, shape index: {}]   ;;  %s3244_s22 = inlined_call_operand.vmem [shape: f32[1,32], index: 22, kind: input, shape index: {}]   ;;  %s3245_s23 = inlined_call_operand.vmem [shape: f32[1,32], index: 23, kind: input, shape index: {}]   ;;  %s3246_s24 = inlined_call_operand.vmem [shape: f32[2,8,32], index: 24, kind: output, shape index: {}]  }
   0x1   :  { %3256 = sst [smem:[#allocation2_spill]] %s3222_s0 }
   0x2   :  { %3257 = sst [smem:[#allocation3_spill]] %s3223_s1 }
   0x3   :  { %3258 = sst [smem:[#allocation4_spill]] %s3224_s2 }
   0x4   :  { %3259 = sst [smem:[#allocation5_spill]] %s3225_s3 }
   0x5   :  { %3260 = sst [smem:[#allocation6_spill]] %s3226_s4 }
   0x6   :  { %3261 = sst [smem:[#allocation7_spill]] %s3227_s5  ;;  %s2892_s5 = smov 0  }
   0x7   :  { %3262 = sst [smem:[#allocation8_spill]] %s3228_s6 }
   0x8   :  { %3263 = sst [smem:[#allocation9_spill]] %s3229_s7 }
   0x9   :  { %3264 = sst [smem:[#allocation10_spill]] %s3230_s8 }
   0xa LB: > { %s2390_s26 = sadd.s32 4294967295, %s2749_s5   ;;  %p2394_p0 = scmp.ge.s32.totalorder %s2749_s5, 1  ;;  %s2749_s5 = sphi %s2892_s5, %s34_s5  }
   0xb   : > { %p688_p1 = scmp.lt.s32.totalorder %s2749_s5, 3 }
   0xd   : > { %p689_p2 = pnand %p2394_p0, %p688_p1 }
   0xe   : > { %s3265_s6 = sld [smem:[#allocation6_spill]] (!%p689_p2)  ;;  %v2751_v1 = vmov (!%p689_p2), 0.0   ;;  %vm2752_vm0 = vmmov (!%p689_p2), 0   ;;  %p764_p3 = scmp.lt.s32.totalorder (!%p689_p2), %s2390_s26, 1  ;;  %vm815_vm1 = vcmask (!%p689_p2), 261120   ;;  %vm863_vm2 = vcmask (!%p689_p2), 64512  }
   0xf   : > { %692 = sbr.rel (%p689_p2) target bundleno = 4317 (0x10dd), region = 116  ;;  %2509 = vmatprep.subr.bf16.mxu1 (!%p689_p2), %v2751_v1  ;;  %2523 = vmatprep.subr.bf16.mxu0 (!%p689_p2), %v2751_v1  ;;  %s3266_s3 = sld [smem:[#allocation2_spill]] (!%p689_p2)  ;;  %vm929_vm4 = vcmask (!%p689_p2), 1043456   ;;  %vm1322_vm5 = vcmask (!%p689_p2), 130048   ;;  %vm1324_vm6 = vcmask (!%p689_p2), 195584   ;;  %vm2226_vm8 = vcmask (!%p689_p2), 523264  }
  0x10   : > { %2513 = vmatprep.mubr.msk.bf16.mxu1 (!%p689_p2), %vm2752_vm0, %v2751_v1  ;;  %2525 = vmatprep.mubr.msk.bf16.mxu0 (!%p689_p2), %vm2752_vm0, %v2751_v1  ;;  %s3267_s1 = sld [smem:[#allocation7_spill]] (!%p689_p2)  ;;  %s3255_s27 = smov (!%p689_p2), 96  }
  0x11   : > { %s3254_s28 = smov (!%p689_p2), 80   ;;  %s3249_s2 = smov (!%p689_p2), 88  }
  0x12   : > { %s3250_s29 = smov (!%p689_p2), 72   ;;  %s2758_s7 = smov (!%p689_p2), 112  }
  0x13   : > { %s2759_s30 = smov (!%p689_p2), 104   ;;  %s3268_s8 = sld [smem:[#allocation4_spill]] (!%p689_p2) }
  0x14   : > { %v2689_v0 = vld [vmem:[%s3265_s6] sm:$0xff] (!%p689_p2)   ;;  %v2690_v2 = vld [vmem:[%s3265_s6 + $0x8] sm:$0xff] (!%p689_p2)  }
  0x15   : > { %2510 = vmatpush3.bf16.msra.mxu1 (!%p689_p2), %v2689_v0 }
  0x16   : > { %2511 = vmatprep.subr.bf16.mxu1 %v2751_v1  ;;  %s3282_s26 = smov (!%p764_p3, %s2390_s26), 1  ;;  %v2400_v5 = vld [vmem:[%s3267_s1] ss:$0 sm:$0xff]  ;;  %s2760_s1 = smov 56  }
  0x17   : > { %s2913_s0 = sshll.u32 %s3282_s26, 3  ;;  %s2753_s26 = smov 120  }
  0x18   : > { %s767_s25 = scalar_lea.vmem %s3266_s3, %s2913_s0  ;;  %s2761_s3 = smov 64  }
  0x19   : > { %2512 = vmatpush3.bf16.msra.mxu1 %v2690_v2  ;;  %v2920_v3 = vld [vmem:[%s767_s25] sm:$0xff]  ;;  %s775_s4 = scalar_lea.vmem %s3268_s8, %s2913_s0  ;;  %s2762_s25 = smov 40  }
  0x1a   : > { %2517 = vmatprep.subr.bf16.mxu1 %v2751_v1  ;;  %v791_v4 = vpack.c.bf16 %v2920_v3, %v2920_v3  ;;  %v787_v23 = vld [vmem:[%s775_s4] sm:$0xff]  ;;  %s2763_s8 = smov 48   ;;  %s3253_s4 = smov 8  }
  0x1b   : > { %vm788_vm3 = vcmp.gt.f32.partialorder %v787_v23, 0.0 }
  0x1c   : > { %2514 = vmatmul.mubr.msk.bf16.vlgmr.msra.gmra.mrb[0].mxu1 %vm815_vm1, %v791_v4 }
  0x1d   : > { %2519 = vmatprep.mubr.msk.bf16.mxu1 %vm2752_vm0, %v2751_v1 }
  0xef   : > { %v853_v6 = vpop.f32.mrb[0].mxu1 }
  0xf0   : > { %v854_v7 = vadd.f32 %v2400_v5, %v853_v6  ;;  %v2515_v8 = vpop.f32.mrb[1].mxu1 }
  0xf1   : > { %v856_v9 = vpop.f32.mrb[2].mxu1 }
  0xf2   : > { %v2930_v10 = vpack.c.bf16 %v854_v7, %v854_v7  ;;  %v2516_v11 = vpop.f32.mrb[3].mxu1 }
  0xf4   : > { %973 = vrot.lane.b32.xlu1 %v2930_v10, %s2753_s26  ;;  %861 = vrot.lane.b32.xlu0 %v2930_v10, %s3255_s27 }
  0xf8   : > { %1087 = vrot.lane.b32.xlu1 %v2930_v10, %s3254_s28  ;;  %975 = vrot.lane.b32.xlu0 %v2930_v10, %s3249_s2  ;;  %s3271_s28 = sld [smem:[#allocation3_spill]]  ;;  %s3276_s2 = smov 72  }
  0xfc   : > { %1199 = vrot.lane.b32.xlu1 %v2930_v10, %s3250_s29  ;;  %1085 = vrot.lane.b32.xlu0 %v2930_v10, %s2758_s7  ;;  %s3252_s29 = smov 16  }
  0xfe   : > { %s771_s27 = scalar_lea.vmem %s3271_s28, %s2913_s0 }
 0x100   : > { %1197 = vrot.lane.b32.xlu0 %v2930_v10, %s2759_s30 }
 0x166   : > { %v862_v12 = vpop.permute.xlu0 %861  ;;  %v974_v15 = vpop.permute.xlu1 %973 }
 0x167   : > { %v868_v13 = vsel %vm863_vm2, %v862_v12, 0 }
 0x168   : > { %2518 = vmatpush3.bf16.xpose.msra.mxu1 %v868_v13 }
 0x169   : > { %2529 = vmatprep.subr.bf16.mxu1 %v2751_v1 }
 0x16a   : > { %v976_v14 = vpop.permute.xlu0 %975  ;;  %v1088_v17 = vpop.permute.xlu1 %1087 }
 0x16b   : > { %v981_v16 = vsel %vm863_vm2, %v976_v14, 0  ;;  %v1093_v18 = vsel %vm863_vm2, %v1088_v17, 0 }
 0x16e   : > { %v1200_v19 = vpop.permute.xlu1 %1199  ;;  %v1086_v20 = vpop.permute.xlu0 %1085 }
 0x16f   : > { %2520 = vmatmul.mubr.msk.bf16.vlgmr.msra.gmra.mrb[4].mxu1 %vm863_vm2, %v2930_v10  ;;  %v1205_v21 = vsel %vm863_vm2, %v1200_v19, 0 }
 0x170   : > { %2530 = vmatpush3.bf16.xpose.msra.mxu1 %v981_v16  ;;  %2531 = vmatprep.mubr.msk.bf16.mxu1 %vm2752_vm0, %v2751_v1 }
 0x171   : > { %2541 = vmatprep.subr.bf16.mxu1 %v2751_v1 }
 0x172   : > { %v1198_v22 = vpop.permute.xlu0 %1197 }
 0x177   : > { %2532 = vmatmul.mubr.msk.bf16.vlgmr.msra.gmra.mrb[8].mxu1 %vm863_vm2, %v974_v15 }
 0x178   : > { %2542 = vmatpush3.bf16.xpose.msra.mxu1 %v1093_v18  ;;  %2543 = vmatprep.mubr.msk.bf16.mxu1 %vm2752_vm0, %v2751_v1 }
 0x179   : > { %2553 = vmatprep.subr.bf16.mxu1 %v2751_v1 }
 0x17f   : > { %2544 = vmatmul.mubr.msk.bf16.vlgmr.msra.gmra.mrb[12].mxu1 %vm863_vm2, %v1086_v20 }
 0x180   : > { %2554 = vmatpush3.bf16.xpose.msra.mxu1 %v1205_v21  ;;  %2555 = vmatprep.mubr.msk.bf16.mxu1 %vm2752_vm0, %v2751_v1 }
 0x181   : > { %2565 = vmatprep.subr.bf16.mxu1 %v2751_v1 }
 0x187   : > { %2556 = vmatmul.mubr.msk.bf16.vlgmr.msra.gmra.mrb[16].mxu1 %vm863_vm2, %v1198_v22 }
 0x188   : > { %2569 = vmatprep.mubr.msk.bf16.mxu1 %vm2752_vm0, %v2751_v1 }
 0x242   : > { %v904_v24 = vpop.f32.mrb[4].mxu1 }
 0x243   : > { %v910_v25 = vmul.f32 0.35355338, %v904_v24  ;;  %v2521_v26 = vpop.f32.mrb[5].mxu1 }
 0x244   : > { %v907_v27 = vpop.f32.mrb[6].mxu1 }
 0x245   : > { %v2522_v28 = vpop.f32.mrb[7].mxu1  ;;  %v911_v29 = vsel %vm788_vm3, %v910_v25, -1e+09 }
 0x246   : > { %v912_v30 = vsel %vm863_vm2, %v911_v29, -inf }
 0x247   : > { %913 = vmax.xlane.f32.xlu1 %v912_v30 }
 0x24a   : > { %v1017_v31 = vpop.f32.mrb[8].mxu1 }
 0x24b   : > { %v1023_v32 = vmul.f32 0.35355338, %v1017_v31  ;;  %v2533_v33 = vpop.f32.mrb[9].mxu1 }
 0x24c   : > { %v1020_v34 = vpop.f32.mrb[10].mxu1 }
 0x24d   : > { %v2534_v35 = vpop.f32.mrb[11].mxu1  ;;  %v1024_v36 = vsel %vm788_vm3, %v1023_v32, -1e+09 }
 0x24e   : > { %v1025_v37 = vsel %vm863_vm2, %v1024_v36, -inf }
 0x24f   : > { %1026 = vmax.xlane.f32.xlu0 %v1025_v37 }
 0x252   : > { %v1129_v38 = vpop.f32.mrb[12].mxu1 }
 0x253   : > { %v1135_v39 = vmul.f32 0.35355338, %v1129_v38  ;;  %v2545_v40 = vpop.f32.mrb[13].mxu1 }
 0x254   : > { %v1132_v41 = vpop.f32.mrb[14].mxu1 }
 0x255   : > { %v2546_v42 = vpop.f32.mrb[15].mxu1  ;;  %v1136_v43 = vsel %vm788_vm3, %v1135_v39, -1e+09 }
 0x256   : > { %v1137_v44 = vsel %vm863_vm2, %v1136_v43, -inf }
 0x257   : > { %1138 = vmax.xlane.f32.xlu0 %v1137_v44 }
 0x25a   : > { %v1241_v45 = vpop.f32.mrb[16].mxu1 }
 0x25b   : > { %v1247_v46 = vmul.f32 0.35355338, %v1241_v45  ;;  %v2557_v47 = vpop.f32.mrb[17].mxu1 }
 0x25c   : > { %v1244_v48 = vpop.f32.mrb[18].mxu1 }
 0x25d   : > { %v2558_v49 = vpop.f32.mrb[19].mxu1  ;;  %v1248_v50 = vsel %vm788_vm3, %v1247_v46, -1e+09 }
 0x25e   : > { %v1249_v51 = vsel %vm863_vm2, %v1248_v50, -inf }
 0x25f   : > { %1250 = vmax.xlane.f32.xlu1 %v1249_v51 }
 0x2d4   : > { %v914_v52 = vpop.xlane.xlu1 %913 }
 0x2d5   : > { %v915_v53 = vsub.f32 %v911_v29, %v914_v52 }
 0x2d7   : > { %v916_v54 = vmul.f32 1.442695, %v915_v53 }
 0x2d9   : > { %2705 = vpow2.f32 %v916_v54 }
 0x2dc   : > { %v1027_v55 = vpop.xlane.xlu0 %1026 }
 0x2dd   : > { %v1028_v56 = vsub.f32 %v1024_v36, %v1027_v55 }
 0x2df   : > { %v1029_v57 = vmul.f32 1.442695, %v1028_v56 }
 0x2e1   : > { %2707 = vpow2.f32 %v1029_v57 }
 0x2e3   : > { %v2706_v58 = vpop.eup %2705 }
 0x2e4   : > { %v1139_v59 = vpop.xlane.xlu0 %1138  ;;  %v918_v60 = vsel %vm863_vm2, %v2706_v58, 0.0 }
 0x2e5   : > { %v1140_v61 = vsub.f32 %v1136_v43, %v1139_v59  ;;  %919 = vadd.xlane.f32.xlu0 %v918_v60 }
 0x2e7   : > { %v1141_v62 = vmul.f32 1.442695, %v1140_v61 }
 0x2e9   : > { %2709 = vpow2.f32 %v1141_v62 }
 0x2eb   : > { %v2708_v63 = vpop.eup %2707 }
 0x2ec   : > { %v1031_v0 = vsel %vm863_vm2, %v2708_v63, 0.0  ;;  %v1251_v5 = vpop.xlane.xlu1 %1250 }
 0x2ed   : > { %1032 = vadd.xlane.f32.xlu1 %v1031_v0  ;;  %v1252_v6 = vsub.f32 %v1248_v50, %v1251_v5 }
 0x2ef   : > { %v1253_v7 = vmul.f32 1.442695, %v1252_v6 }
 0x2f1   : > { %2711 = vpow2.f32 %v1253_v7 }
 0x2f3   : > { %v2710_v2 = vpop.eup %2709 }
 0x2f4   : > { %v1143_v4 = vsel %vm863_vm2, %v2710_v2, 0.0 }
 0x2f5   : > { %1144 = vadd.xlane.f32.xlu0 %v1143_v4 }
 0x2fb   : > { %v2712_v8 = vpop.eup %2711 }
 0x2fc   : > { %v1255_v9 = vsel %vm863_vm2, %v2712_v8, 0.0 }
 0x2fe   : > { %1037 = vrot.lane.b32.xlu1 %v2930_v10, %s2760_s1  ;;  %s3251_s1 = smov 24  }
 0x30b   : > { %924 = vrot.lane.b32.xlu0 %v2930_v10, %s2761_s3  ;;  %s3277_s3 = smov 88  }
 0x30f   : > { %1261 = vrot.lane.b32.xlu0 %v2930_v10, %s2762_s25  ;;  %s3269_s25 = sld [smem:[#allocation8_spill]] }
 0x315   : > { %v2691_v42 = vld [vmem:[%s3269_s25] sm:$0xff]   ;;  %v2692_v43 = vld [vmem:[%s3269_s25 + $0x8] sm:$0xff]  }
 0x316   : > { %2566 = vmatpush3.bf16.msra.mxu1 %v2691_v42 }
 0x317   : > { %2567 = vmatprep.subr.bf16.mxu1 %v2751_v1 }
 0x31a   : > { %2568 = vmatpush3.bf16.msra.mxu1 %v2692_v43 }
 0x31b   : > { %2581 = vmatprep.subr.bf16.mxu1 %v2751_v1 }
 0x322   : > { %1256 = vadd.xlane.f32.xlu1 %v1255_v9 }
 0x333   : > { %1149 = vrot.lane.b32.xlu1 %v2930_v10, %s2763_s8  ;;  %s3270_s8 = sld [smem:[#allocation9_spill]] }
 0x339   : > { %v2412_v59 = vld [vmem:[%s3270_s8] ss:$0 sm:$0xff]  ;;  %s3275_s8 = smov 80  }
 0x372   : > { %v920_v11 = vpop.xlane.xlu0 %919 }
 0x373   : > { %2713 = vrcp.f32 %v920_v11  ;;  %v2693_v11 = vld [vmem:[%s3234_s12] sm:$0xff]  }
 0x37a   : > { %v1033_v12 = vpop.xlane.xlu1 %1032 }
 0x37b   : > { %2715 = vrcp.f32 %v1033_v12  ;;  %v786_v12 = vld [vmem:[%s771_s27] sm:$0xff]  ;;  %s3278_s27 = smov 8  }
 0x37d   : > { %v2714_v13 = vpop.eup %2713 }
 0x37e   : > { %v922_v15 = vmul.f32 %v2714_v13, %v2706_v58  ;;  %v1038_v18 = vpop.permute.xlu1 %1037  ;;  %v1491_v13 = vpack.c.bf16 %v786_v12, %v786_v12 }
 0x37f   : > { %v1043_v21 = vsel %vm929_vm4, %v1038_v18, 0 }
 0x380   : > { %v923_v19 = vpack.c.bf16 %v922_v15, %v922_v15  ;;  %v2696_v15 = vld [vmem:[%s3232_s10 + $0x8] sm:$0xff]  }
 0x382   : > { %v1145_v14 = vpop.xlane.xlu0 %1144 }
 0x383   : > { %2717 = vrcp.f32 %v1145_v14  ;;  %v2695_v14 = vld [vmem:[%s3232_s10] sm:$0xff]  }
 0x385   : > { %v2716_v20 = vpop.eup %2715 }
 0x386   : > { %v925_v16 = vpop.permute.xlu0 %924  ;;  %v1035_v10 = vmul.f32 %v2716_v20, %v2708_v63 }
 0x387   : > { %v931_v17 = vsel %vm929_vm4, %v925_v16, 0 }
 0x388   : > { %2524 = vmatpush3.bf16.msra.mxu0 %v931_v17  ;;  %v1036_v22 = vpack.c.bf16 %v1035_v10, %v1035_v10  ;;  %v2417_v10 = vld [vmem:[%s3231_s9] ss:$0 sm:$0xff] }
 0x389   : > { %2535 = vmatprep.subr.bf16.mxu0 %v2751_v1 }
 0x38a   : > { %v1262_v28 = vpop.permute.xlu0 %1261 }
 0x38b   : > { %2526 = vmatmul.mubr.msk.bf16.vlgmr.msra.gmra.mrb[0].mxu0 %vm863_vm2, %v923_v19  ;;  %v1267_v30 = vsel %vm929_vm4, %v1262_v28, 0 }
 0x38c   : > { %2536 = vmatpush3.bf16.msra.mxu0 %v1043_v21  ;;  %2537 = vmatprep.mubr.msk.bf16.mxu0 %vm2752_vm0, %v2751_v1 }
 0x38d   : > { %2547 = vmatprep.subr.bf16.mxu0 %v2751_v1  ;;  %v2718_v23 = vpop.eup %2717 }
 0x38e   : > { %v1147_v25 = vmul.f32 %v2718_v23, %v2710_v2 }
 0x390   : > { %v1148_v29 = vpack.c.bf16 %v1147_v25, %v1147_v25  ;;  %v2422_v25 = vld [vmem:[%s3235_s13] ss:$0 sm:$0xff] }
 0x393   : > { %2538 = vmatmul.mubr.msk.bf16.vlgmr.msra.gmra.mrb[4].mxu0 %vm863_vm2, %v1036_v22 }
 0x394   : > { %2549 = vmatprep.mubr.msk.bf16.mxu0 %vm2752_vm0, %v2751_v1 }
 0x3af   : > { %v1257_v24 = vpop.xlane.xlu1 %1256 }
 0x3b0   : > { %2719 = vrcp.f32 %v1257_v24 }
 0x3b3   : > { %v1150_v26 = vpop.permute.xlu1 %1149 }
 0x3b4   : > { %v1155_v27 = vsel %vm929_vm4, %v1150_v26, 0 }
 0x3b5   : > { %2548 = vmatpush3.bf16.msra.mxu0 %v1155_v27 }
 0x3b6   : > { %2559 = vmatprep.subr.bf16.mxu0 %v2751_v1 }
 0x3b8   : > { %2550 = vmatmul.mubr.msk.bf16.vlgmr.msra.gmra.mrb[8].mxu0 %vm863_vm2, %v1148_v29 }
 0x3b9   : > { %2560 = vmatpush3.bf16.msra.mxu0 %v1267_v30  ;;  %2561 = vmatprep.mubr.msk.bf16.mxu0 %vm2752_vm0, %v2751_v1 }
 0x3ba   : > { %v2720_v31 = vpop.eup %2719  ;;  %2573 = vmatprep.subr.bf16.mxu0 %v2751_v1 }
 0x3bb   : > { %v1259_v32 = vmul.f32 %v2720_v31, %v2712_v8 }
 0x3bd   : > { %v1260_v33 = vpack.c.bf16 %v1259_v32, %v1259_v32 }
 0x3c0   : > { %2562 = vmatmul.mubr.msk.bf16.vlgmr.msra.gmra.mrb[12].mxu0 %vm863_vm2, %v1260_v33  ;;  %v2418_v33 = vld [vmem:[%s3233_s11] ss:$0 sm:$0xff] }
 0x3c1   : > { %2577 = vmatprep.mubr.msk.bf16.mxu0 %vm2752_vm0, %v2751_v1  ;;  %2574 = vmatpush3.bf16.msra.mxu0 %v2695_v14 }
 0x3c2   : > { %2575 = vmatprep.subr.bf16.mxu0 %v2751_v1 }
 0x3c5   : > { %2576 = vmatpush3.bf16.msra.mxu0 %v2696_v15 }
 0x3c6   : > { %2589 = vmatprep.subr.bf16.mxu0 %v2751_v1 }
 0x45e   : > { %v967_v34 = vpop.f32.mrb[0].mxu0 }
 0x45f   : > { %v2527_v35 = vpop.f32.mrb[1].mxu0 }
 0x460   : > { %v970_v36 = vpop.f32.mrb[2].mxu0 }
 0x461   : > { %v2528_v37 = vpop.f32.mrb[3].mxu0 }
 0x466   : > { %v1079_v38 = vpop.f32.mrb[4].mxu0 }
 0x467   : > { %1310 = vrot.lane.b32.xlu1 %v1079_v38, %s3253_s4  ;;  %v2539_v39 = vpop.f32.mrb[5].mxu0  ;;  %s3272_s4 = sld [smem:[#allocation10_spill]] }
 0x468   : > { %v1082_v40 = vpop.f32.mrb[6].mxu0 }
 0x469   : > { %v2540_v41 = vpop.f32.mrb[7].mxu0 }
 0x46d   : > { %v2416_v20 = vld [vmem:[%s3272_s4] ss:$0 sm:$0xff]  ;;  %s3274_s4 = smov 96  }
 0x48b   : > { %v1191_v44 = vpop.f32.mrb[8].mxu0 }
 0x48c   : > { %1314 = vrot.lane.b32.xlu0 %v1191_v44, %s3252_s29  ;;  %v2551_v45 = vpop.f32.mrb[9].mxu0 }
 0x48d   : > { %v1194_v46 = vpop.f32.mrb[10].mxu0 }
 0x48e   : > { %v2552_v47 = vpop.f32.mrb[11].mxu0 }
 0x493   : > { %v1303_v48 = vpop.f32.mrb[12].mxu0 }
 0x494   : > { %1318 = vrot.lane.b32.xlu1 %v1303_v48, %s3251_s1  ;;  %v2563_v49 = vpop.f32.mrb[13].mxu0 }
 0x495   : > { %v1306_v50 = vpop.f32.mrb[14].mxu0 }
 0x496   : > { %v2564_v51 = vpop.f32.mrb[15].mxu0 }
 0x4d9   : > { %v1311_v52 = vpop.permute.xlu1 %1310 }
 0x4da   : > { %v1321_v54 = vsel %vm863_vm2, %v967_v34, %v1311_v52 }
 0x4fe   : > { %v1315_v53 = vpop.permute.xlu0 %1314 }
 0x4ff   : > { %v1323_v55 = vsel %vm1322_vm5, %v1321_v54, %v1315_v53 }
 0x506   : > { %v1319_v56 = vpop.permute.xlu1 %1318 }
 0x507   : > { %v1325_v57 = vsel %vm1324_vm6, %v1323_v55, %v1319_v56 }
 0x508   : > { %v1326_v58 = vpack.c.bf16 %v1325_v57, %v1325_v57 }
 0x50a   : > { %2570 = vmatmul.mubr.msk.bf16.vlgmr.msra.gmra.mrb[20].mxu1 %vm815_vm1, %v1326_v58 }
 0x50b   : > { %2585 = vmatprep.mubr.msk.bf16.mxu1 %vm2752_vm0, %v2751_v1  ;;  %2582 = vmatpush3.bf16.msra.mxu1 %v2693_v11 }
 0x50c   : > { %2583 = vmatprep.subr.bf16.mxu1 %v2751_v1 }
 0x5dd   : > { %v1387_v60 = vpop.f32.mrb[20].mxu1 }
 0x5de   : > { %v1388_v61 = vadd.f32 %v2412_v59, %v1387_v60  ;;  %v2571_v62 = vpop.f32.mrb[21].mxu1 }
 0x5df   : > { %v1390_v63 = vpop.f32.mrb[22].mxu1 }
 0x5e0   : > { %v2572_v0 = vpop.f32.mrb[23].mxu1  ;;  %v1393_v2 = vadd.f32 %v1388_v61, %v2920_v3  ;;  %v2694_v3 = vld [vmem:[%s3234_s12 + $0x8] sm:$0xff]  }
 0x5e1   : > { %2584 = vmatpush3.bf16.msra.mxu1 %v2694_v3 }
 0x5e2   : > { %v1396_v4 = vsel %vm815_vm1, %v1393_v2, 0.0  ;;  %2595 = vmatprep.subr.bf16.mxu1 %v2751_v1 }
 0x5e3   : > { %1397 = vadd.xlane.f32.xlu0 %v1396_v4 }
 0x5e4   : > { %2586 = vmatmul.mubr.msk.bf16.vlgmr.msra.gmra.mrb[24].mxu1 %vm815_vm1, %v1491_v13 }
 0x5e5   : > { %2597 = vmatprep.mubr.msk.bf16.mxu1 %vm2752_vm0, %v2751_v1 }
 0x670   : > { %v1398_v5 = vpop.xlane.xlu0 %1397 }
 0x671   : > { %v1400_v6 = vmul.f32 0.03125, %v1398_v5 }
 0x673   : > { %v1401_v7 = vsub.f32 %v1393_v2, %v1400_v6 }
 0x675   : > { %v1402_v8 = vmul.f32 %v1401_v7, %v1401_v7 }
 0x677   : > { %v1403_v9 = vsel %vm815_vm1, %v1402_v8, 0.0 }
 0x678   : > { %1404 = vadd.xlane.f32.xlu1 %v1403_v9 }
 0x6b7   : > { %v1552_v26 = vpop.f32.mrb[24].mxu1 }
 0x6b8   : > { %v1553_v27 = vadd.f32 %v2422_v25, %v1552_v26  ;;  %v2587_v28 = vpop.f32.mrb[25].mxu1 }
 0x6b9   : > { %v1555_v29 = vpop.f32.mrb[26].mxu1 }
 0x6ba   : > { %v3069_v30 = vpack.c.bf16 %v1553_v27, %v1553_v27  ;;  %v2588_v31 = vpop.f32.mrb[27].mxu1 }
 0x6bc   : > { %1672 = vrot.lane.b32.xlu0 %v3069_v30, %s2753_s26  ;;  %v1564_v32 = vsel %vm863_vm2, %v3069_v30, 0 }
 0x6c0   : > { %1784 = vrot.lane.b32.xlu0 %v3069_v30, %s2758_s7 }
 0x6c4   : > { %1896 = vrot.lane.b32.xlu0 %v3069_v30, %s2759_s30 }
 0x705   : > { %v1405_v16 = vpop.xlane.xlu1 %1404 }
 0x706   : > { %v1406_v17 = vmul.f32 0.03125, %v1405_v16 }
 0x708   : > { %v1407_v18 = vadd.f32 1e-05, %v1406_v17 }
 0x70a   : > { %2721 = vrsqrt.f32 %v1407_v18 }
 0x714   : > { %v2722_v19 = vpop.eup %2721 }
 0x715   : > { %v1409_v21 = vmul.f32 %v2722_v19, %v1401_v7 }
 0x717   : > { %v1416_v22 = vmul.f32 %v2416_v20, %v1409_v21 }
 0x719   : > { %v3059_v23 = vadd.f32 %v2417_v10, %v1416_v22 }
 0x71b   : > { %v1424_v24 = vpack.c.bf16 %v3059_v23, %v3059_v23 }
 0x71d   : > { %2578 = vmatmul.mubr.msk.bf16.vlgmr.msra.gmra.mrb[16].mxu0 %vm815_vm1, %v1424_v24 }
 0x71e   : > { %2591 = vmatprep.mubr.msk.bf16.mxu0 %vm2752_vm0, %v2751_v1  ;;  %2590 = vmatpush3.bf16.xpose.msra.mxu0 %v1564_v32 }
 0x71f   : > { %2601 = vmatprep.subr.bf16.mxu0 %v2751_v1 }
 0x72e   : > { %v1673_v38 = vpop.permute.xlu0 %1672 }
 0x72f   : > { %v1678_v41 = vsel %vm863_vm2, %v1673_v38, 0 }
 0x732   : > { %v1785_v42 = vpop.permute.xlu0 %1784 }
 0x733   : > { %v1790_v44 = vsel %vm863_vm2, %v1785_v42, 0 }
 0x736   : > { %v1897_v45 = vpop.permute.xlu0 %1896 }
 0x737   : > { %v1902_v47 = vsel %vm863_vm2, %v1897_v45, 0 }
 0x7f0   : > { %v1485_v34 = vpop.f32.mrb[16].mxu0 }
 0x7f1   : > { %v1486_v35 = vadd.f32 %v2418_v33, %v1485_v34  ;;  %v2579_v36 = vpop.f32.mrb[17].mxu0 }
 0x7f2   : > { %v1488_v37 = vpop.f32.mrb[18].mxu0 }
 0x7f3   : > { %v1558_v39 = vpack.c.bf16 %v1486_v35, %v1486_v35  ;;  %v2580_v40 = vpop.f32.mrb[19].mxu0 }
 0x7f5   : > { %1670 = vrot.lane.b32.xlu1 %v1558_v39, %s2753_s26  ;;  %2592 = vmatmul.mubr.msk.bf16.vlgmr.msra.gmra.mrb[20].mxu0 %vm863_vm2, %v1558_v39 }
 0x7f6   : > { %2602 = vmatpush3.bf16.xpose.msra.mxu0 %v1678_v41  ;;  %2603 = vmatprep.mubr.msk.bf16.mxu0 %vm2752_vm0, %v2751_v1 }
 0x7f7   : > { %2613 = vmatprep.subr.bf16.mxu0 %v2751_v1 }
 0x7f9   : > { %1782 = vrot.lane.b32.xlu1 %v1558_v39, %s2758_s7 }
 0x7fd   : > { %1894 = vrot.lane.b32.xlu1 %v1558_v39, %s2759_s30  ;;  %s3273_s30 = sld [smem:[#allocation5_spill]] }
 0x803   : > { %s779_s28 = scalar_lea.vmem %s3273_s30, %s2913_s0  ;;  %s3279_s30 = smov 16  }
 0x804   : > { %v789_v49 = vld [vmem:[%s779_s28] sm:$0xff]  ;;  %s3280_s28 = smov 24  }
 0x805   : > { %vm790_vm7 = vcmp.gt.f32.partialorder %v789_v49, 0.0 }
 0x867   : > { %v1671_v43 = vpop.permute.xlu1 %1670 }
 0x868   : > { %2604 = vmatmul.mubr.msk.bf16.vlgmr.msra.gmra.mrb[24].mxu0 %vm863_vm2, %v1671_v43 }
 0x869   : > { %2614 = vmatpush3.bf16.xpose.msra.mxu0 %v1790_v44  ;;  %2615 = vmatprep.mubr.msk.bf16.mxu0 %vm2752_vm0, %v2751_v1 }
 0x86a   : > { %2625 = vmatprep.subr.bf16.mxu0 %v2751_v1 }
 0x86b   : > { %v1783_v46 = vpop.permute.xlu1 %1782 }
 0x86f   : > { %v1895_v48 = vpop.permute.xlu1 %1894 }
 0x870   : > { %2616 = vmatmul.mubr.msk.bf16.vlgmr.msra.gmra.mrb[28].mxu0 %vm863_vm2, %v1783_v46 }
 0x871   : > { %2626 = vmatpush3.bf16.xpose.msra.mxu0 %v1902_v47  ;;  %2627 = vmatprep.mubr.msk.bf16.mxu0 %vm2752_vm0, %v2751_v1 }
 0x872   : > { %2637 = vmatprep.subr.bf16.mxu0 %v2751_v1 }
 0x878   : > { %2628 = vmatmul.mubr.msk.bf16.vlgmr.msra.gmra.mrb[32].mxu0 %vm863_vm2, %v1895_v48 }
 0x879   : > { %2641 = vmatprep.mubr.msk.bf16.mxu0 %vm2752_vm0, %v2751_v1 }
 0x8c8   : > { %v1600_v50 = vpop.f32.mrb[20].mxu0 }
 0x8c9   : > { %v1606_v51 = vmul.f32 0.35355338, %v1600_v50  ;;  %v2593_v52 = vpop.f32.mrb[21].mxu0 }
 0x8ca   : > { %v1603_v53 = vpop.f32.mrb[22].mxu0 }
 0x8cb   : > { %v2594_v54 = vpop.f32.mrb[23].mxu0  ;;  %v1607_v55 = vsel %vm790_vm7, %v1606_v51, -1e+09 }
 0x8cc   : > { %v1608_v56 = vsel %vm863_vm2, %v1607_v55, -inf }
 0x8cd   : > { %1609 = vmax.xlane.f32.xlu0 %v1608_v56 }
 0x93b   : > { %v1714_v57 = vpop.f32.mrb[24].mxu0 }
 0x93c   : > { %v1720_v58 = vmul.f32 0.35355338, %v1714_v57  ;;  %v2605_v59 = vpop.f32.mrb[25].mxu0 }
 0x93d   : > { %v1717_v60 = vpop.f32.mrb[26].mxu0 }
 0x93e   : > { %v2606_v61 = vpop.f32.mrb[27].mxu0  ;;  %v1721_v62 = vsel %vm790_vm7, %v1720_v58, -1e+09 }
 0x93f   : > { %v1722_v63 = vsel %vm863_vm2, %v1721_v62, -inf }
 0x940   : > { %1723 = vmax.xlane.f32.xlu1 %v1722_v63 }
 0x943   : > { %v1826_v0 = vpop.f32.mrb[28].mxu0 }
 0x944   : > { %v1832_v2 = vmul.f32 0.35355338, %v1826_v0  ;;  %v2617_v4 = vpop.f32.mrb[29].mxu0  ;;  %v2697_v0 = vld [vmem:[%s3236_s14] sm:$0xff]  }
 0x945   : > { %v1829_v5 = vpop.f32.mrb[30].mxu0  ;;  %2638 = vmatpush3.bf16.msra.mxu0 %v2697_v0 }
 0x946   : > { %v2618_v6 = vpop.f32.mrb[31].mxu0  ;;  %v1833_v7 = vsel %vm790_vm7, %v1832_v2, -1e+09  ;;  %2639 = vmatprep.subr.bf16.mxu0 %v2751_v1 }
 0x947   : > { %v1834_v8 = vsel %vm863_vm2, %v1833_v7, -inf }
 0x948   : > { %1835 = vmax.xlane.f32.xlu0 %v1834_v8 }
 0x94b   : > { %v1938_v9 = vpop.f32.mrb[32].mxu0 }
 0x94c   : > { %v1944_v11 = vmul.f32 0.35355338, %v1938_v9  ;;  %v2629_v3 = vpop.f32.mrb[33].mxu0 }
 0x94d   : > { %v1941_v12 = vpop.f32.mrb[34].mxu0 }
 0x94e   : > { %v2630_v13 = vpop.f32.mrb[35].mxu0  ;;  %v1945_v14 = vsel %vm790_vm7, %v1944_v11, -1e+09 }
 0x94f   : > { %v1946_v15 = vsel %vm863_vm2, %v1945_v14, -inf }
 0x950   : > { %1947 = vmax.xlane.f32.xlu0 %v1946_v15 }
 0x95a   : > { %v1610_v16 = vpop.xlane.xlu0 %1609 }
 0x95b   : > { %v1611_v17 = vsub.f32 %v1607_v55, %v1610_v16 }
 0x95d   : > { %v1612_v18 = vmul.f32 1.442695, %v1611_v17 }
 0x95f   : > { %2723 = vpow2.f32 %v1612_v18 }
 0x969   : > { %v2724_v19 = vpop.eup %2723 }
 0x96a   : > { %v1614_v20 = vsel %vm863_vm2, %v2724_v19, 0.0 }
 0x96b   : > { %1615 = vadd.xlane.f32.xlu1 %v1614_v20 }
 0x97c   : > { %1621 = vrot.lane.b32.xlu1 %v3069_v30, %s3274_s4 }
 0x9cd   : > { %v1724_v21 = vpop.xlane.xlu1 %1723 }
 0x9ce   : > { %v1725_v10 = vsub.f32 %v1721_v62, %v1724_v21 }
 0x9d0   : > { %v1726_v22 = vmul.f32 1.442695, %v1725_v10 }
 0x9d2   : > { %2725 = vpow2.f32 %v1726_v22  ;;  %v2434_v22 = vld [vmem:[%s3237_s15] ss:$0 sm:$0xff] }
 0x9d5   : > { %v1836_v24 = vpop.xlane.xlu0 %1835 }
 0x9d6   : > { %v1837_v25 = vsub.f32 %v1833_v7, %v1836_v24  ;;  %v2698_v7 = vld [vmem:[%s3236_s14 + $0x8] sm:$0xff]  }
 0x9d7   : > { %2640 = vmatpush3.bf16.msra.mxu0 %v2698_v7 }
 0x9d8   : > { %v1838_v26 = vmul.f32 1.442695, %v1837_v25  ;;  %2653 = vmatprep.subr.bf16.mxu0 %v2751_v1 }
 0x9da   : > { %2727 = vpow2.f32 %v1838_v26 }
 0x9dc   : > { %v2726_v27 = vpop.eup %2725 }
 0x9dd   : > { %v1948_v28 = vpop.xlane.xlu0 %1947  ;;  %v1728_v29 = vsel %vm863_vm2, %v2726_v27, 0.0 }
 0x9de   : > { %v1949_v31 = vsub.f32 %v1945_v14, %v1948_v28  ;;  %1729 = vadd.xlane.f32.xlu0 %v1728_v29 }
 0x9e0   : > { %v1950_v32 = vmul.f32 1.442695, %v1949_v31 }
 0x9e2   : > { %2729 = vpow2.f32 %v1950_v32 }
 0x9e4   : > { %v2728_v33 = vpop.eup %2727 }
 0x9e5   : > { %v1840_v34 = vsel %vm863_vm2, %v2728_v33, 0.0 }
 0x9e6   : > { %1841 = vadd.xlane.f32.xlu1 %v1840_v34 }
 0x9ec   : > { %v2730_v35 = vpop.eup %2729 }
 0x9ed   : > { %v1952_v36 = vsel %vm863_vm2, %v2730_v35, 0.0 }
 0x9ee   : > { %1953 = vadd.xlane.f32.xlu0 %v1952_v36 }
 0x9f7   : > { %1846 = vrot.lane.b32.xlu1 %v3069_v30, %s3275_s8 }
 0x9f8   : > { %v1616_v37 = vpop.xlane.xlu1 %1615 }
 0x9f9   : > { %2731 = vrcp.f32 %v1616_v37  ;;  %v2699_v37 = vld [vmem:[%s3240_s18] sm:$0xff]  }
 0x9fb   : > { %1958 = vrot.lane.b32.xlu1 %v3069_v30, %s3276_s2 }
 0x9fc   : > { %v1622_v38 = vpop.permute.xlu1 %1621 }
 0x9fd   : > { %v1627_v39 = vsel %vm929_vm4, %v1622_v38, 0  ;;  %v2700_v38 = vld [vmem:[%s3240_s18 + $0x8] sm:$0xff]  }
 0x9fe   : > { %2596 = vmatpush3.bf16.msra.mxu1 %v1627_v39  ;;  %v2702_v39 = vld [vmem:[%s3242_s20 + $0x8] sm:$0xff]  }
 0x9ff   : > { %2607 = vmatprep.subr.bf16.mxu1 %v2751_v1 }
 0xa03   : > { %v2732_v40 = vpop.eup %2731 }
 0xa04   : > { %v1618_v41 = vmul.f32 %v2732_v40, %v2724_v19  ;;  %1734 = vrot.lane.b32.xlu0 %v3069_v30, %s3277_s3 }
 0xa06   : > { %v1619_v42 = vpack.c.bf16 %v1618_v41, %v1618_v41 }
 0xa08   : > { %2598 = vmatmul.mubr.msk.bf16.vlgmr.msra.gmra.mrb[28].mxu1 %vm863_vm2, %v1619_v42 }
 0xa09   : > { %2609 = vmatprep.mubr.msk.bf16.mxu1 %vm2752_vm0, %v2751_v1 }
 0xa6b   : > { %v1730_v43 = vpop.xlane.xlu0 %1729 }
 0xa6c   : > { %2733 = vrcp.f32 %v1730_v43 }
 0xa73   : > { %v1842_v44 = vpop.xlane.xlu1 %1841 }
 0xa74   : > { %2735 = vrcp.f32 %v1842_v44  ;;  %v2438_v44 = vld [vmem:[%s3238_s16] ss:$0 sm:$0xff] }
 0xa76   : > { %v2734_v45 = vpop.eup %2733 }
 0xa77   : > { %v1732_v47 = vmul.f32 %v2734_v45, %v2726_v27  ;;  %v1847_v50 = vpop.permute.xlu1 %1846 }
 0xa78   : > { %v1852_v52 = vsel %vm929_vm4, %v1847_v50, 0  ;;  %v2703_v50 = vld [vmem:[%s3242_s20 + $0x10] sm:$0xff]  }
 0xa79   : > { %v1733_v30 = vpack.c.bf16 %v1732_v47, %v1732_v47 }
 0xa7b   : > { %v1954_v46 = vpop.xlane.xlu0 %1953  ;;  %v1959_v54 = vpop.permute.xlu1 %1958 }
 0xa7c   : > { %2737 = vrcp.f32 %v1954_v46  ;;  %v1964_v57 = vsel %vm929_vm4, %v1959_v54, 0  ;;  %v2439_v46 = vld [vmem:[%s3239_s17] ss:$0 sm:$0xff] }
 0xa7e   : > { %v2736_v51 = vpop.eup %2735 }
 0xa7f   : > { %v1735_v48 = vpop.permute.xlu0 %1734  ;;  %v1844_v53 = vmul.f32 %v2736_v51, %v2728_v33  ;;  %v2440_v51 = vld [vmem:[%s3241_s19] ss:$0 sm:$0xff] }
 0xa80   : > { %v1740_v49 = vsel %vm929_vm4, %v1735_v48, 0 }
 0xa81   : > { %2608 = vmatpush3.bf16.msra.mxu1 %v1740_v49  ;;  %v1845_v55 = vpack.c.bf16 %v1844_v53, %v1844_v53 }
 0xa82   : > { %2619 = vmatprep.subr.bf16.mxu1 %v2751_v1 }
 0xa84   : > { %2610 = vmatmul.mubr.msk.bf16.vlgmr.msra.gmra.mrb[32].mxu1 %vm863_vm2, %v1733_v30  ;;  %v2704_v30 = vld [vmem:[%s3242_s20 + $0x18] sm:$0xff]  }
 0xa85   : > { %2620 = vmatpush3.bf16.msra.mxu1 %v1852_v52  ;;  %2621 = vmatprep.mubr.msk.bf16.mxu1 %vm2752_vm0, %v2751_v1 }
 0xa86   : > { %2631 = vmatprep.subr.bf16.mxu1 %v2751_v1  ;;  %v2738_v56 = vpop.eup %2737 }
 0xa87   : > { %v1956_v58 = vmul.f32 %v2738_v56, %v2730_v35 }
 0xa89   : > { %v1957_v59 = vpack.c.bf16 %v1956_v58, %v1956_v58 }
 0xa8c   : > { %2622 = vmatmul.mubr.msk.bf16.vlgmr.msra.gmra.mrb[36].mxu1 %vm863_vm2, %v1845_v55 }
 0xa8d   : > { %2632 = vmatpush3.bf16.msra.mxu1 %v1964_v57  ;;  %2633 = vmatprep.mubr.msk.bf16.mxu1 %vm2752_vm0, %v2751_v1 }
 0xa8e   : > { %2645 = vmatprep.subr.bf16.mxu1 %v2751_v1 }
 0xa94   : > { %2634 = vmatmul.mubr.msk.bf16.vlgmr.msra.gmra.mrb[40].mxu1 %vm863_vm2, %v1957_v59 }
 0xa95   : > { %2649 = vmatprep.mubr.msk.bf16.mxu1 %vm2752_vm0, %v2751_v1  ;;  %2646 = vmatpush3.bf16.msra.mxu1 %v2699_v37 }
 0xa96   : > { %2647 = vmatprep.subr.bf16.mxu1 %v2751_v1 }
 0xa99   : > { %2648 = vmatpush3.bf16.msra.mxu1 %v2700_v38 }
 0xadb   : > { %v1663_v60 = vpop.f32.mrb[28].mxu1 }
 0xadc   : > { %v2599_v61 = vpop.f32.mrb[29].mxu1 }
 0xadd   : > { %v1666_v62 = vpop.f32.mrb[30].mxu1 }
 0xade   : > { %v2600_v63 = vpop.f32.mrb[31].mxu1 }
 0xb57   : > { %v1776_v2 = vpop.f32.mrb[32].mxu1 }
 0xb58   : > { %2007 = vrot.lane.b32.xlu0 %v1776_v2, %s3278_s27  ;;  %v2611_v4 = vpop.f32.mrb[33].mxu1  ;;  %s783_s27 = scalar_lea.vmem %s3246_s24, %s2913_s0 }
 0xb59   : > { %v1779_v5 = vpop.f32.mrb[34].mxu1 }
 0xb5a   : > { %v2612_v6 = vpop.f32.mrb[35].mxu1 }
 0xb5f   : > { %v1888_v8 = vpop.f32.mrb[36].mxu1 }
 0xb60   : > { %2011 = vrot.lane.b32.xlu1 %v1888_v8, %s3279_s30  ;;  %v2623_v9 = vpop.f32.mrb[37].mxu1 }
 0xb61   : > { %v1891_v11 = vpop.f32.mrb[38].mxu1 }
 0xb62   : > { %v2624_v3 = vpop.f32.mrb[39].mxu1 }
 0xb67   : > { %v2000_v12 = vpop.f32.mrb[40].mxu1 }
 0xb68   : > { %2015 = vrot.lane.b32.xlu0 %v2000_v12, %s3280_s28  ;;  %v2635_v13 = vpop.f32.mrb[41].mxu1 }
 0xb69   : > { %v2003_v14 = vpop.f32.mrb[42].mxu1  ;;  %v2450_v13 = vld [vmem:[%s3244_s22] ss:$0 sm:$0xff] }
 0xb6a   : > { %v2636_v15 = vpop.f32.mrb[43].mxu1 }
 0xb6b   : > { %v2451_v15 = vld [vmem:[%s3245_s23] ss:$0 sm:$0xff] }
 0xbca   : > { %v2008_v16 = vpop.permute.xlu0 %2007 }
 0xbcb   : > { %v2018_v18 = vsel %vm863_vm2, %v1663_v60, %v2008_v16 }
 0xbd2   : > { %v2012_v17 = vpop.permute.xlu1 %2011 }
 0xbd3   : > { %v2019_v19 = vsel %vm1322_vm5, %v2018_v18, %v2012_v17 }
 0xbda   : > { %v2016_v20 = vpop.permute.xlu0 %2015 }
 0xbdb   : > { %v2020_v21 = vsel %vm1324_vm6, %v2019_v19, %v2016_v20 }
 0xbdc   : > { %v2021_v10 = vpack.c.bf16 %v2020_v21, %v2020_v21 }
 0xbde   : > { %2642 = vmatmul.mubr.msk.bf16.vlgmr.msra.gmra.mrb[36].mxu0 %vm815_vm1, %v2021_v10 }
 0xbdf   : > { %2661 = vmatprep.mubr.msk.bf16.mxu0 %vm2752_vm0, %v2751_v1 }
 0xcb1   : > { %v2082_v24 = vpop.f32.mrb[36].mxu0 }
 0xcb2   : > { %v2083_v25 = vadd.f32 %v2434_v22, %v2082_v24  ;;  %v2643_v26 = vpop.f32.mrb[37].mxu0 }
 0xcb3   : > { %v2085_v27 = vpop.f32.mrb[38].mxu0 }
 0xcb4   : > { %v2644_v28 = vpop.f32.mrb[39].mxu0  ;;  %v2088_v29 = vadd.f32 %v2083_v25, %v3059_v23  ;;  %v2701_v23 = vld [vmem:[%s3242_s20] sm:$0xff]  }
 0xcb5   : > { %2654 = vmatpush3.bf16.msra.mxu0 %v2701_v23 }
 0xcb6   : > { %v2091_v31 = vsel %vm815_vm1, %v2088_v29, 0.0  ;;  %2655 = vmatprep.subr.bf16.mxu0 %v2751_v1 }
 0xcb7   : > { %2092 = vadd.xlane.f32.xlu1 %v2091_v31 }
 0xcb9   : > { %2656 = vmatpush3.bf16.msra.mxu0 %v2702_v39 }
 0xcba   : > { %2657 = vmatprep.subr.bf16.mxu0 %v2751_v1 }
 0xcbd   : > { %2658 = vmatpush3.bf16.msra.mxu0 %v2703_v50 }
 0xcbe   : > { %2659 = vmatprep.subr.bf16.mxu0 %v2751_v1  ;;  %v2444_v1 = vld [vmem:[%s3243_s21] ss:$0 sm:$0xff] }
 0xcc1   : > { %2660 = vmatpush3.bf16.msra.mxu0 %v2704_v30 }
 0xd44   : > { %v2093_v32 = vpop.xlane.xlu1 %2092 }
 0xd45   : > { %v2094_v33 = vmul.f32 0.03125, %v2093_v32 }
 0xd47   : > { %v2095_v34 = vsub.f32 %v2088_v29, %v2094_v33 }
 0xd49   : > { %v2096_v35 = vmul.f32 %v2095_v34, %v2095_v34 }
 0xd4b   : > { %v2097_v36 = vsel %vm815_vm1, %v2096_v35, 0.0 }
 0xd4c   : > { %2098 = vadd.xlane.f32.xlu0 %v2097_v36 }
 0xdd9   : > { %v2099_v40 = vpop.xlane.xlu0 %2098 }
 0xdda   : > { %v2100_v41 = vmul.f32 0.03125, %v2099_v40 }
 0xddc   : > { %v2101_v42 = vadd.f32 1e-05, %v2100_v41 }
 0xdde   : > { %2739 = vrsqrt.f32 %v2101_v42 }
 0xde8   : > { %v2740_v43 = vpop.eup %2739 }
 0xde9   : > { %v2103_v45 = vmul.f32 %v2740_v43, %v2095_v34 }
 0xdeb   : > { %v2110_v47 = vmul.f32 %v2438_v44, %v2103_v45 }
 0xded   : > { %v2117_v48 = vadd.f32 %v2439_v46, %v2110_v47 }
 0xdef   : > { %v2118_v49 = vpack.c.bf16 %v2117_v48, %v2117_v48 }
 0xdf1   : > { %2650 = vmatmul.mubr.msk.bf16.vlgmr.msra.gmra.mrb[44].mxu1 %vm815_vm1, %v2118_v49 }
 0xec4   : > { %v2179_v52 = vpop.f32.mrb[44].mxu1 }
 0xec5   : > { %v2180_v53 = vadd.f32 %v2440_v51, %v2179_v52  ;;  %v2651_v54 = vpop.f32.mrb[45].mxu1 }
 0xec6   : > { %v2182_v55 = vpop.f32.mrb[46].mxu1 }
 0xec7   : > { %v2185_v56 = vmax.f32 %v2180_v53, 0.0  ;;  %v2652_v57 = vpop.f32.mrb[47].mxu1 }
 0xec9   : > { %v2186_v58 = vpack.c.bf16 %v2185_v56, %v2185_v56 }
 0xecb   : > { %2662 = vmatmul.mubr.msk.bf16.vlgmr.msra.gmra.mrb[40].mxu0 %vm2226_vm8, %v2186_v58 }
 0xf9e   : > { %v2264_v59 = vpop.f32.mrb[40].mxu0 }
 0xf9f   : > { %v2265_v60 = vadd.f32 %v2444_v1, %v2264_v59  ;;  %v2663_v61 = vpop.f32.mrb[41].mxu0 }
 0xfa0   : > { %v2267_v62 = vpop.f32.mrb[42].mxu0 }
 0xfa1   : > { %v2664_v63 = vpop.f32.mrb[43].mxu0  ;;  %v2270_v0 = vadd.f32 %v2265_v60, %v2117_v48 }
 0xfa3   : > { %v2273_v2 = vsel %vm815_vm1, %v2270_v0, 0.0 }
 0xfa4   : > { %2274 = vadd.xlane.f32.xlu0 %v2273_v2 }
0x1031   : > { %v2275_v4 = vpop.xlane.xlu0 %2274 }
0x1032   : > { %v2276_v5 = vmul.f32 0.03125, %v2275_v4 }
0x1034   : > { %v2277_v6 = vsub.f32 %v2270_v0, %v2276_v5 }
0x1036   : > { %v2278_v7 = vmul.f32 %v2277_v6, %v2277_v6 }
0x1038   : > { %v2279_v8 = vsel %vm815_vm1, %v2278_v7, 0.0 }
0x1039   : > { %2280 = vadd.xlane.f32.xlu1 %v2279_v8 }
0x10c6   : > { %v2281_v9 = vpop.xlane.xlu1 %2280 }
0x10c7   : > { %v2282_v11 = vmul.f32 0.03125, %v2281_v9 }
0x10c9   : > { %v2283_v3 = vadd.f32 1e-05, %v2282_v11 }
0x10cb   : > { %2741 = vrsqrt.f32 %v2283_v3 }
0x10d5   : > { %v2742_v12 = vpop.eup %2741 }
0x10d6   : > { %v2285_v14 = vmul.f32 %v2742_v12, %v2277_v6 }
0x10d8   : > { %v2292_v16 = vmul.f32 %v2450_v13, %v2285_v14 }
0x10da   : > { %v2299_v17 = vadd.f32 %v2451_v15, %v2292_v16 }
0x10dc   : > { %2300 = vst.msk [vmem:[%s783_s27] sm:$0xff] %vm815_vm1, %v2299_v17 }
0x10dd PF: > { %s34_s5 = sadd.s32 1, %s2749_s5  }
0x10de   : > { %p31_p4 = scmp.ge.s32.totalorder %s34_s5, 4  }
0x10e0   :  { %33 = sbr.rel (!%p31_p4) target bundleno = 10 (0xa), region = 155 }

// kernel: decoder_forward.3
= control target key start
LH: loop header
LB: loop body
LE: loop exit
PB: predicated region body
PF: predicated region fallthrough
CT: control target
= control target key end

     0   :  { %s3619_s0 = inlined_call_operand.vmem [shape: f32[2,8,32], index: 0, kind: input, shape index: {}]   ;;  %s3620_s1 = inlined_call_operand.vmem [shape: f32[2,8,32], index: 1, kind: input, shape index: {}]   ;;  %s3621_s2 = inlined_call_operand.vmem [shape: f32[2,8,8], index: 2, kind: input, shape index: {}]   ;;  %s3622_s3 = inlined_call_operand.vmem [shape: f32[2,8,8], index: 3, kind: input, shape index: {}]   ;;  %s3623_s4 = inlined_call_operand.vmem [shape: bf16[32,96], index: 4, kind: input, shape index: {}]   ;;  %s3624_s5 = inlined_call_operand.vmem [shape: f32[1,96], index: 5, kind: input, shape index: {}]   ;;  %s3625_s6 = inlined_call_operand.vmem [shape: bf16[32,32], index: 6, kind: input, shape index: {}]   ;;  %s3626_s7 = inlined_call_operand.vmem [shape: f32[1,32], index: 7, kind: input, shape index: {}]   ;;  %s3627_s8 = inlined_call_operand.vmem [shape: f32[1,32], index: 8, kind: input, shape index: {}]   ;;  %s3628_s9 = inlined_call_operand.vmem [shape: f32[1,32], index: 9, kind: input, shape index: {}]   ;;  %s3629_s10 = inlined_call_operand.vmem [shape: bf16[32,32], index: 10, kind: input, shape index: {}]   ;;  %s3630_s11 = inlined_call_operand.vmem [shape: f32[1,32], index: 11, kind: input, shape index: {}]   ;;  %s3631_s12 = inlined_call_operand.vmem [shape: bf16[32,64], index: 12, kind: input, shape index: {}]   ;;  %s3632_s13 = inlined_call_operand.vmem [shape: f32[1,64], index: 13, kind: input, shape index: {}]   ;;  %s3633_s14 = inlined_call_operand.vmem [shape: bf16[32,32], index: 14, kind: input, shape index: {}]   ;;  %s3634_s15 = inlined_call_operand.vmem [shape: f32[1,32], index: 15, kind: input, shape index: {}]   ;;  %s3635_s16 = inlined_call_operand.vmem [shape: f32[1,32], index: 16, kind: input, shape index: {}]   ;;  %s3636_s17 = inlined_call_operand.vmem [shape: f32[1,32], index: 17, kind: input, shape index: {}]   ;;  %s3637_s18 = inlined_call_operand.vmem [shape: bf16[32,64], index: 18, kind: input, shape index: {}]   ;;  %s3638_s19 = inlined_call_operand.vmem [shape: f32[1,64], index: 19, kind: input, shape index: {}]   ;;  %s3639_s20 = inlined_call_operand.vmem [shape: bf16[64,32], index: 20, kind: input, shape index: {}]   ;;  %s3640_s21 = inlined_call_operand.vmem [shape: f32[1,32], index: 21, kind: input, shape index: {}]   ;;  %s3641_s22 = inlined_call_operand.hbm [shape: f32[1,32], index: 22, kind: input, shape index: {}]   ;;  %s3642_s23 = inlined_call_operand.hbm [shape: f32[1,32], index: 23, kind: input, shape index: {}]   ;;  %s3643_s24 = inlined_call_operand.hbm [shape: f32[2,8,32], index: 24, kind: output, shape index: {}]  }
   0x1   :  { %3666 = sst [smem:[#allocation17_spill]] %s3619_s0 }
   0x2   :  { %3667 = sst [smem:[#allocation18_spill]] %s3620_s1 }
   0x3   :  { %3668 = sst [smem:[#allocation19_spill]] %s3621_s2 }
   0x4   :  { %3669 = sst [smem:[#allocation20_spill]] %s3622_s3 }
   0x5   :  { %3670 = sst [smem:[#allocation21_spill]] %s3623_s4 }
   0x6   :  { %3671 = sst [smem:[#allocation22_spill]] %s3624_s5 }
   0x7   :  { %3672 = sst [smem:[#allocation23_spill]] %s3625_s6 }
   0x8   :  { %3673 = sst [smem:[#allocation24_spill]] %s3626_s7 }
   0x9   :  { %3674 = sst [smem:[#allocation25_spill]] %s3627_s8 }
   0xa   :  { %3675 = sst [smem:[#allocation26_spill]] %s3643_s24 }
   0xb   :  { %29 = vsyncpa [#allocation3], 0 }
   0xc   :  { %30 = vsyncpa [#allocation6], 0 }
   0xd   :  { %31 = vsyncpa [#allocation4], 0 }
   0xe   :  { %33 = vsyncpa [#allocation4 + $0x1], 0  ;;  %s3140_s5 = smov 0   ;;  %s3142_s26 = smov 0  }
   0xf   :  { %s3144_s27 = smov 0   ;;  %s3146_s28 = smov 0  }
  0x10 LB: > { %3676 = sst [smem:[#allocation11_spill]] %s2982_s5  ;;  %s3161_s6 = sadd.s32 4294967295, %s2994_s28   ;;  %s2994_s28 = sphi %s3146_s28, %s3715_s28   ;;  %s2990_s27 = sphi %s3144_s27, %s3717_s27   ;;  %s2986_s26 = sphi %s3142_s26, %s3719_s26   ;;  %s2982_s5 = sphi %s3140_s5, %s3718_s5  }
  0x11   : > { %3677 = sst [smem:[#allocation12_spill]] %s2990_s27  ;;  %s2458_s2 = sadd.s32 4294967294, %s2994_s28  }
  0x12   : > { %3678 = sst [smem:[#allocation13_spill]] %s2994_s28  ;;  %s3165_s29 = sadd.s32 1, %s2994_s28  }
  0x13   : > { %3679 = sst [smem:[#allocation14_spill]] %s3165_s29  ;;  %s570_s0 = sadd.s32 1, %s2990_s27 }
  0x14   : > { %s567_s7 = ssub.s32 %s2994_s28, %s3165_s29  ;;  %p580_p0 = scmp.ne.s32.totalorder %s2990_s27, %s2986_s26 }
  0x15   : > { %p568_p1 = scmp.eq.s32.totalorder %s567_s7, 0  ;;  %p581_p2 = scmp.eq.s32.totalorder %s3161_s6, 1 }
  0x16   : > { %p586_p3 = scmp.ne.s32.totalorder %s2986_s26, %s2982_s5  ;;  %p587_p4 = scmp.eq.s32.totalorder %s2458_s2, 1 }
  0x17   : > { %s3176_s30 = scalar_select %p568_p1, %s2990_s27, %s570_s0  }
  0x18   : > { %p3178_p5 = por %p581_p2, %p580_p0  ;;  %p3182_p6 = por %p587_p4, %p586_p3 }
  0x19   : > { %3680 = sst [smem:[#allocation15_spill]] %s3176_s30  ;;  %p2459_p7 = scmp.ge.s32.totalorder %s2994_s28, 1 }
  0x1a   : > { %s3681_s3 = scalar_select %p3178_p5, 1, 0 }
  0x1b   : > { %s3682_s25 = scalar_select %p3182_p6, 1, 0 }
  0x1c   : > { %p594_p8 = scmp.lt.s32.totalorder %s2994_s28, 3  ;;  %p3652_p9 = scmp.eq.s32.totalorder %s3161_s6, 0 }
  0x1d   : > { %3683 = sst [smem:[#allocation16_spill]] %s3682_s25  ;;  %s2996_s4 = smov [#allocation2]  }
  0x1e   : > { %p3189_p10 = pnand %p2459_p7, %p594_p8  ;;  %s661_s1 = sshll.u32 %s2996_s4, 4  ;;  %s662_s1 = int_to_ptr.vmem [resolvable:$true] %s661_s1 }
  0x1f   : > { %s2997_s2 = smov [#allocation5]   ;;  %s2868_s29 = scalar_lea.hbm %s3641_s22, 16 }
  0x20   : > { %s3684_s8 = scalar_select %p3189_p10, 1, 0 }
  0x21   : > { %p2748_p11 = pneg %p3189_p10  ;;  %s672_s0 = sshll.u32 %s2997_s2, 4  ;;  %s3201_s0 = int_to_ptr.vmem [resolvable:$true] %s672_s0 }
  0x22   : > { %p2869_p13 = scmp.ne.s32.totalorder %s3641_s22, %s2868_s29  ;;  %p2875_p3 = scmp.lt.u32.totalorder %s2868_s29, %s3641_s22 }
  0x23   : > { %p3197_p12 = pnand %p3652_p9, %p2748_p11 }
  0x25   : > { %p2870_p0 = pneg %p3197_p12 }
  0x27   : > { %p2871_p1 = pnand %p2870_p0, %p2869_p13 }
  0x29   : > { %p2872_p2 = pneg %p2871_p1 }
  0x2b   : > { %p2877_p4 = pnand %p2875_p3, %p2872_p2 }
  0x2d   : > { %2880 = shalt.err (!%p2877_p4)
}
  0x2e   : > { %s2881_s28 = scalar_lea.vmem %s662_s1, 16  ;;  %s2888_s27 = scalar_lea.vmem %s662_s1, 32 }
  0x2f   : > { %p2882_p7 = scmp.ne.s32.totalorder %s662_s1, %s2881_s28  ;;  %p2889_p9 = scmp.lt.s32.totalorder %s662_s1, %s662_s1 }
  0x30   : > { %p2890_p6 = scmp.lt.s32.totalorder %s2888_s27, %s2881_s28 }
  0x31   : > { %p2884_p8 = pnand %p2882_p7, %p2870_p0 }
  0x32   : > { %p2891_p5 = por %p2890_p6, %p2889_p9 }
  0x33   : > { %p2885_p11 = pneg %p2884_p8 }
  0x35   : > { %p2892_p10 = pnand %p2891_p5, %p2885_p11 }
  0x37   : > { %2895 = shalt.err (!%p2892_p10)
}
  0x38   : > { %2751 = dma.hbm_to_vmem [thread:$0]  (!%p3197_p12), %s3641_s22, 16, %s662_s1, [#allocation3]  }
  0x39   : > { %s2896_s4 = scalar_lea.hbm %s3642_s23, 16 }
  0x3a   : > { %p2897_p13 = scmp.ne.s32.totalorder %s3642_s23, %s2896_s4  ;;  %p2903_p9 = scmp.lt.u32.totalorder %s2896_s4, %s3642_s23 }
  0x3c   : > { %p2899_p6 = pnand %p2897_p13, %p2870_p0 }
  0x3e   : > { %p2900_p5 = pneg %p2899_p6 }
  0x40   : > { %p2905_p10 = pnand %p2903_p9, %p2900_p5 }
  0x42   : > { %2908 = shalt.err (!%p2905_p10)
}
  0x43   : > { %s2909_s1 = scalar_lea.vmem %s3201_s0, 16  ;;  %s2916_s24 = scalar_lea.vmem %s3201_s0, 32 }
  0x44   : > { %p2910_p1 = scmp.ne.s32.totalorder %s3201_s0, %s2909_s1  ;;  %p2917_p4 = scmp.lt.s32.totalorder %s3201_s0, %s3201_s0 }
  0x45   : > { %p2918_p7 = scmp.lt.s32.totalorder %s2916_s24, %s2909_s1 }
  0x46   : > { %p2912_p2 = pnand %p2910_p1, %p2870_p0 }
  0x47   : > { %p2919_p8 = por %p2918_p7, %p2917_p4 }
  0x48   : > { %p2913_p3 = pneg %p2912_p2 }
  0x4a   : > { %p2920_p11 = pnand %p2919_p8, %p2913_p3 }
  0x4c   : > { %2923 = shalt.err (!%p2920_p11)
}
  0x4d   : > { %2754 = dma.hbm_to_vmem [thread:$0]  (!%p3197_p12), %s3642_s23, 16, %s3201_s0, [#allocation6]  }
  0x4e   : > { %p3686_p13 = scmp.ne.s32.totalorder %s3684_s8, 0 }
  0x4f   : > { %p3687_p0 = scmp.eq.s32.totalorder (!%p3686_p13), %s3161_s6, 0 }
  0x50   : > { %713 = sbr.rel (%p3686_p13) target bundleno = 4408 (0x1138), region = 116 }
  0x57   : > { %2969 = dma.done.wait (%p3687_p0), [#allocation3], 16   ;;  %p3688_p6 = pmov %p3687_p0 }
  0x58   : > { %p3689_p5 = pmov %p3687_p0 }
  0x59   : > { %2971 = vsyncadd (%p3688_p6), [#allocation3], 4294967280 }
  0x5a   : > { %2973 = dma.done.wait (%p3689_p5), [#allocation6], 16   ;;  %p3690_p9 = pmov %p3687_p0 }
  0x5b   : > { %p794_p10 = scmp.lt.s32.totalorder %s3161_s6, 1  ;;  %v2998_v0 = vmov 0.0   ;;  %vm2999_vm0 = vmmov 0   ;;  %s3691_s25 = sld [smem:[#allocation17_spill]]  ;;  %vm841_vm1 = vcmask 261120   ;;  %vm889_vm2 = vcmask 64512  }
  0x5c   : > { %2975 = vsyncadd (%p3690_p9), [#allocation6], 4294967280  ;;  %2582 = vmatprep.subr.bf16.mxu1 %v2998_v0  ;;  %2586 = vmatprep.mubr.msk.bf16.mxu1 %vm2999_vm0, %v2998_v0  ;;  %s3692_s27 = sld [smem:[#allocation21_spill]]  ;;  %s3694_s7 = sld [smem:[#allocation22_spill]]  ;;  %vm955_vm4 = vcmask 1043456   ;;  %vm1348_vm5 = vcmask 130048  }
  0x5d   : > { %s795_s8 = scalar_select %p794_p10, %s3161_s6, 1  ;;  %2596 = vmatprep.subr.bf16.mxu0 %v2998_v0  ;;  %2598 = vmatprep.mubr.msk.bf16.mxu0 %vm2999_vm0, %v2998_v0  ;;  %vm1350_vm6 = vcmask 195584   ;;  %vm2252_vm8 = vcmask 523264  }
  0x5e   : > { %s3000_s29 = smov 120   ;;  %s3656_s2 = smov 88  }
  0x5f   : > { %s3269_s0 = sshll.u32 %s795_s8, 3  ;;  %s3657_s28 = smov 72  }
  0x60   : > { %s3663_s24 = smov 104   ;;  %s3695_s8 = sld [smem:[#allocation19_spill]] }
  0x61   : > { %s797_s4 = scalar_lea.vmem %s3691_s25, %s3269_s0  ;;  %s3662_s25 = smov 96  }
  0x62   : > { %s3693_s1 = smov %s3692_s27  ;;  %v2814_v1 = vld [vmem:[%s3692_s27] sm:$0xff]   ;;  %s3005_s27 = smov 112  }
  0x63   : > { %2583 = vmatpush3.bf16.msra.mxu1 %v2814_v1  ;;  %v2815_v2 = vld [vmem:[%s3693_s1 + $0x8] sm:$0xff]   ;;  %v3281_v3 = vld [vmem:[%s797_s4] sm:$0xff]  ;;  %s3658_s4 = smov 80   ;;  %s3007_s30 = smov 56  }
  0x64   : > { %2584 = vmatprep.subr.bf16.mxu1 %v2998_v0  ;;  %v817_v4 = vpack.c.bf16 %v3281_v3, %v3281_v3  ;;  %v2471_v5 = vld [vmem:[%s3694_s7] ss:$0 sm:$0xff]  ;;  %s3008_s5 = smov 64   ;;  %p3710_p1 = scmp.ne.s32.totalorder %s3681_s3, 0 }
  0x66   : > { %s805_s7 = scalar_lea.vmem %s3695_s8, %s3269_s0  ;;  %s3009_s8 = smov 40  }
  0x67   : > { %2585 = vmatpush3.bf16.msra.mxu1 %v2815_v2  ;;  %v813_v23 = vld [vmem:[%s805_s7] sm:$0xff]  ;;  %s3010_s7 = smov 48  }
  0x68   : > { %2590 = vmatprep.subr.bf16.mxu1 %v2998_v0  ;;  %vm814_vm3 = vcmp.gt.f32.partialorder %v813_v23, 0.0 }
  0x6a   : > { %2587 = vmatmul.mubr.msk.bf16.vlgmr.msra.gmra.mrb[0].mxu1 %vm841_vm1, %v817_v4 }
  0x6b   : > { %2592 = vmatprep.mubr.msk.bf16.mxu1 %vm2999_vm0, %v2998_v0 }
 0x13d   : > { %v879_v6 = vpop.f32.mrb[0].mxu1 }
 0x13e   : > { %v880_v7 = vadd.f32 %v2471_v5, %v879_v6  ;;  %v2588_v8 = vpop.f32.mrb[1].mxu1 }
 0x13f   : > { %v882_v9 = vpop.f32.mrb[2].mxu1 }
 0x140   : > { %v3293_v10 = vpack.c.bf16 %v880_v7, %v880_v7  ;;  %v2589_v11 = vpop.f32.mrb[3].mxu1 }
 0x142   : > { %999 = vrot.lane.b32.xlu1 %v3293_v10, %s3000_s29  ;;  %887 = vrot.lane.b32.xlu0 %v3293_v10, %s3662_s25  ;;  %s3698_s25 = sld [smem:[#allocation18_spill]] }
 0x146   : > { %1113 = vrot.lane.b32.xlu1 %v3293_v10, %s3658_s4  ;;  %1001 = vrot.lane.b32.xlu0 %v3293_v10, %s3656_s2  ;;  %s3660_s4 = smov 16   ;;  %s3703_s2 = smov 80  }
 0x14a   : > { %1225 = vrot.lane.b32.xlu1 %v3293_v10, %s3657_s28  ;;  %1111 = vrot.lane.b32.xlu0 %v3293_v10, %s3005_s27  ;;  %s3704_s28 = smov 72  }
 0x14e   : > { %1223 = vrot.lane.b32.xlu0 %v3293_v10, %s3663_s24  ;;  %s801_s24 = scalar_lea.vmem %s3698_s25, %s3269_s0 }
 0x1b4   : > { %v888_v12 = vpop.permute.xlu0 %887  ;;  %v1000_v15 = vpop.permute.xlu1 %999 }
 0x1b5   : > { %v894_v13 = vsel %vm889_vm2, %v888_v12, 0 }
 0x1b6   : > { %2591 = vmatpush3.bf16.xpose.msra.mxu1 %v894_v13 }
 0x1b7   : > { %2602 = vmatprep.subr.bf16.mxu1 %v2998_v0 }
 0x1b8   : > { %v1002_v14 = vpop.permute.xlu0 %1001  ;;  %v1114_v17 = vpop.permute.xlu1 %1113 }
 0x1b9   : > { %v1007_v16 = vsel %vm889_vm2, %v1002_v14, 0  ;;  %v1119_v18 = vsel %vm889_vm2, %v1114_v17, 0 }
 0x1bc   : > { %v1226_v19 = vpop.permute.xlu1 %1225  ;;  %v1112_v20 = vpop.permute.xlu0 %1111 }
 0x1bd   : > { %2593 = vmatmul.mubr.msk.bf16.vlgmr.msra.gmra.mrb[4].mxu1 %vm889_vm2, %v3293_v10  ;;  %v1231_v21 = vsel %vm889_vm2, %v1226_v19, 0 }
 0x1be   : > { %2603 = vmatpush3.bf16.xpose.msra.mxu1 %v1007_v16  ;;  %2604 = vmatprep.mubr.msk.bf16.mxu1 %vm2999_vm0, %v2998_v0 }
 0x1bf   : > { %2614 = vmatprep.subr.bf16.mxu1 %v2998_v0 }
 0x1c0   : > { %v1224_v22 = vpop.permute.xlu0 %1223 }
 0x1c5   : > { %2605 = vmatmul.mubr.msk.bf16.vlgmr.msra.gmra.mrb[8].mxu1 %vm889_vm2, %v1000_v15 }
 0x1c6   : > { %2615 = vmatpush3.bf16.xpose.msra.mxu1 %v1119_v18  ;;  %2616 = vmatprep.mubr.msk.bf16.mxu1 %vm2999_vm0, %v2998_v0 }
 0x1c7   : > { %2626 = vmatprep.subr.bf16.mxu1 %v2998_v0 }
 0x1cd   : > { %2617 = vmatmul.mubr.msk.bf16.vlgmr.msra.gmra.mrb[12].mxu1 %vm889_vm2, %v1112_v20 }
 0x1ce   : > { %2627 = vmatpush3.bf16.xpose.msra.mxu1 %v1231_v21  ;;  %2628 = vmatprep.mubr.msk.bf16.mxu1 %vm2999_vm0, %v2998_v0 }
 0x1cf   : > { %2638 = vmatprep.subr.bf16.mxu1 %v2998_v0 }
 0x1d5   : > { %2629 = vmatmul.mubr.msk.bf16.vlgmr.msra.gmra.mrb[16].mxu1 %vm889_vm2, %v1224_v22 }
 0x1d6   : > { %2642 = vmatprep.mubr.msk.bf16.mxu1 %vm2999_vm0, %v2998_v0 }
 0x290   : > { %v930_v24 = vpop.f32.mrb[4].mxu1 }
 0x291   : > { %v936_v25 = vmul.f32 0.35355338, %v930_v24  ;;  %v2594_v26 = vpop.f32.mrb[5].mxu1 }
 0x292   : > { %v933_v27 = vpop.f32.mrb[6].mxu1 }
 0x293   : > { %v2595_v28 = vpop.f32.mrb[7].mxu1  ;;  %v937_v29 = vsel %vm814_vm3, %v936_v25, -1e+09 }
 0x294   : > { %v938_v30 = vsel %vm889_vm2, %v937_v29, -inf }
 0x295   : > { %939 = vmax.xlane.f32.xlu1 %v938_v30 }
 0x298   : > { %v1043_v31 = vpop.f32.mrb[8].mxu1 }
 0x299   : > { %v1049_v32 = vmul.f32 0.35355338, %v1043_v31  ;;  %v2606_v33 = vpop.f32.mrb[9].mxu1 }
 0x29a   : > { %v1046_v34 = vpop.f32.mrb[10].mxu1 }
 0x29b   : > { %v2607_v35 = vpop.f32.mrb[11].mxu1  ;;  %v1050_v36 = vsel %vm814_vm3, %v1049_v32, -1e+09 }
 0x29c   : > { %v1051_v37 = vsel %vm889_vm2, %v1050_v36, -inf }
 0x29d   : > { %1052 = vmax.xlane.f32.xlu0 %v1051_v37 }
 0x2a0   : > { %v1155_v38 = vpop.f32.mrb[12].mxu1 }
 0x2a1   : > { %v1161_v39 = vmul.f32 0.35355338, %v1155_v38  ;;  %v2618_v40 = vpop.f32.mrb[13].mxu1 }
 0x2a2   : > { %v1158_v41 = vpop.f32.mrb[14].mxu1 }
 0x2a3   : > { %v2619_v42 = vpop.f32.mrb[15].mxu1  ;;  %v1162_v43 = vsel %vm814_vm3, %v1161_v39, -1e+09 }
 0x2a4   : > { %v1163_v44 = vsel %vm889_vm2, %v1162_v43, -inf }
 0x2a5   : > { %1164 = vmax.xlane.f32.xlu0 %v1163_v44 }
 0x2a8   : > { %v1267_v45 = vpop.f32.mrb[16].mxu1 }
 0x2a9   : > { %v1273_v46 = vmul.f32 0.35355338, %v1267_v45  ;;  %v2630_v47 = vpop.f32.mrb[17].mxu1 }
 0x2aa   : > { %v1270_v48 = vpop.f32.mrb[18].mxu1 }
 0x2ab   : > { %v2631_v49 = vpop.f32.mrb[19].mxu1  ;;  %v1274_v50 = vsel %vm814_vm3, %v1273_v46, -1e+09 }
 0x2ac   : > { %v1275_v51 = vsel %vm889_vm2, %v1274_v50, -inf }
 0x2ad   : > { %1276 = vmax.xlane.f32.xlu1 %v1275_v51 }
 0x322   : > { %v940_v52 = vpop.xlane.xlu1 %939 }
 0x323   : > { %v941_v53 = vsub.f32 %v937_v29, %v940_v52 }
 0x325   : > { %v942_v54 = vmul.f32 1.442695, %v941_v53 }
 0x327   : > { %2830 = vpow2.f32 %v942_v54 }
 0x32a   : > { %v1053_v55 = vpop.xlane.xlu0 %1052 }
 0x32b   : > { %v1054_v56 = vsub.f32 %v1050_v36, %v1053_v55 }
 0x32d   : > { %v1055_v57 = vmul.f32 1.442695, %v1054_v56 }
 0x32f   : > { %2832 = vpow2.f32 %v1055_v57 }
 0x331   : > { %v2831_v58 = vpop.eup %2830 }
 0x332   : > { %v1165_v59 = vpop.xlane.xlu0 %1164  ;;  %v944_v60 = vsel %vm889_vm2, %v2831_v58, 0.0 }
 0x333   : > { %v1166_v61 = vsub.f32 %v1162_v43, %v1165_v59  ;;  %945 = vadd.xlane.f32.xlu0 %v944_v60 }
 0x335   : > { %v1167_v62 = vmul.f32 1.442695, %v1166_v61 }
 0x337   : > { %2834 = vpow2.f32 %v1167_v62 }
 0x339   : > { %v2833_v63 = vpop.eup %2832 }
 0x33a   : > { %v1057_v1 = vsel %vm889_vm2, %v2833_v63, 0.0  ;;  %v1277_v5 = vpop.xlane.xlu1 %1276 }
 0x33b   : > { %1058 = vadd.xlane.f32.xlu1 %v1057_v1  ;;  %v1278_v6 = vsub.f32 %v1274_v50, %v1277_v5 }
 0x33d   : > { %v1279_v7 = vmul.f32 1.442695, %v1278_v6 }
 0x33f   : > { %2836 = vpow2.f32 %v1279_v7 }
 0x341   : > { %v2835_v2 = vpop.eup %2834 }
 0x342   : > { %v1169_v4 = vsel %vm889_vm2, %v2835_v2, 0.0 }
 0x343   : > { %1170 = vadd.xlane.f32.xlu0 %v1169_v4 }
 0x349   : > { %v2837_v8 = vpop.eup %2836 }
 0x34a   : > { %v1281_v9 = vsel %vm889_vm2, %v2837_v8, 0.0 }
 0x34c   : > { %1063 = vrot.lane.b32.xlu1 %v3293_v10, %s3007_s30  ;;  %s3661_s30 = smov 8  }
 0x359   : > { %950 = vrot.lane.b32.xlu0 %v3293_v10, %s3008_s5  ;;  %s3659_s5 = smov 24  }
 0x35d   : > { %1287 = vrot.lane.b32.xlu0 %v3293_v10, %s3009_s8  ;;  %s3697_s8 = sld [smem:[#allocation24_spill]] }
 0x363   : > { %v2483_v59 = vld [vmem:[%s3697_s8] ss:$0 sm:$0xff] }
 0x370   : > { %1282 = vadd.xlane.f32.xlu1 %v1281_v9 }
 0x381   : > { %1175 = vrot.lane.b32.xlu1 %v3293_v10, %s3010_s7  ;;  %s3696_s7 = sld [smem:[#allocation23_spill]] }
 0x387   : > { %v2816_v42 = vld [vmem:[%s3696_s7] sm:$0xff]   ;;  %v2817_v43 = vld [vmem:[%s3696_s7 + $0x8] sm:$0xff]  }
 0x388   : > { %2639 = vmatpush3.bf16.msra.mxu1 %v2816_v42 }
 0x389   : > { %2640 = vmatprep.subr.bf16.mxu1 %v2998_v0 }
 0x38c   : > { %2641 = vmatpush3.bf16.msra.mxu1 %v2817_v43 }
 0x38d   : > { %2654 = vmatprep.subr.bf16.mxu1 %v2998_v0 }
 0x3c0   : > { %v946_v11 = vpop.xlane.xlu0 %945 }
 0x3c1   : > { %2838 = vrcp.f32 %v946_v11  ;;  %v2818_v11 = vld [vmem:[%s3631_s12] sm:$0xff]  }
 0x3c8   : > { %v1059_v12 = vpop.xlane.xlu1 %1058 }
 0x3c9   : > { %2840 = vrcp.f32 %v1059_v12  ;;  %v812_v12 = vld [vmem:[%s801_s24] sm:$0xff]  ;;  %s3706_s24 = smov 8  }
 0x3cb   : > { %v2839_v13 = vpop.eup %2838 }
 0x3cc   : > { %v948_v15 = vmul.f32 %v2839_v13, %v2831_v58  ;;  %v1064_v18 = vpop.permute.xlu1 %1063  ;;  %v1517_v13 = vpack.c.bf16 %v812_v12, %v812_v12 }
 0x3cd   : > { %v1069_v21 = vsel %vm955_vm4, %v1064_v18, 0 }
 0x3ce   : > { %v949_v19 = vpack.c.bf16 %v948_v15, %v948_v15  ;;  %v2821_v15 = vld [vmem:[%s3629_s10 + $0x8] sm:$0xff]  }
 0x3d0   : > { %v1171_v14 = vpop.xlane.xlu0 %1170 }
 0x3d1   : > { %2842 = vrcp.f32 %v1171_v14  ;;  %v2820_v14 = vld [vmem:[%s3629_s10] sm:$0xff]  }
 0x3d3   : > { %v2841_v20 = vpop.eup %2840 }
 0x3d4   : > { %v951_v16 = vpop.permute.xlu0 %950  ;;  %v1061_v10 = vmul.f32 %v2841_v20, %v2833_v63 }
 0x3d5   : > { %v957_v17 = vsel %vm955_vm4, %v951_v16, 0 }
 0x3d6   : > { %2597 = vmatpush3.bf16.msra.mxu0 %v957_v17  ;;  %v1062_v22 = vpack.c.bf16 %v1061_v10, %v1061_v10  ;;  %v2488_v10 = vld [vmem:[%s3628_s9] ss:$0 sm:$0xff] }
 0x3d7   : > { %2608 = vmatprep.subr.bf16.mxu0 %v2998_v0 }
 0x3d8   : > { %v1288_v28 = vpop.permute.xlu0 %1287 }
 0x3d9   : > { %2599 = vmatmul.mubr.msk.bf16.vlgmr.msra.gmra.mrb[0].mxu0 %vm889_vm2, %v949_v19  ;;  %v1293_v30 = vsel %vm955_vm4, %v1288_v28, 0 }
 0x3da   : > { %2609 = vmatpush3.bf16.msra.mxu0 %v1069_v21  ;;  %2610 = vmatprep.mubr.msk.bf16.mxu0 %vm2999_vm0, %v2998_v0 }
 0x3db   : > { %2620 = vmatprep.subr.bf16.mxu0 %v2998_v0  ;;  %v2843_v23 = vpop.eup %2842 }
 0x3dc   : > { %v1173_v25 = vmul.f32 %v2843_v23, %v2835_v2 }
 0x3de   : > { %v1174_v29 = vpack.c.bf16 %v1173_v25, %v1173_v25  ;;  %v2493_v25 = vld [vmem:[%s3632_s13] ss:$0 sm:$0xff] }
 0x3e1   : > { %2611 = vmatmul.mubr.msk.bf16.vlgmr.msra.gmra.mrb[4].mxu0 %vm889_vm2, %v1062_v22 }
 0x3e2   : > { %2622 = vmatprep.mubr.msk.bf16.mxu0 %vm2999_vm0, %v2998_v0 }
 0x3fd   : > { %v1283_v24 = vpop.xlane.xlu1 %1282 }
 0x3fe   : > { %2844 = vrcp.f32 %v1283_v24 }
 0x401   : > { %v1176_v26 = vpop.permute.xlu1 %1175 }
 0x402   : > { %v1181_v27 = vsel %vm955_vm4, %v1176_v26, 0 }
 0x403   : > { %2621 = vmatpush3.bf16.msra.mxu0 %v1181_v27 }
 0x404   : > { %2632 = vmatprep.subr.bf16.mxu0 %v2998_v0 }
 0x406   : > { %2623 = vmatmul.mubr.msk.bf16.vlgmr.msra.gmra.mrb[8].mxu0 %vm889_vm2, %v1174_v29 }
 0x407   : > { %2633 = vmatpush3.bf16.msra.mxu0 %v1293_v30  ;;  %2634 = vmatprep.mubr.msk.bf16.mxu0 %vm2999_vm0, %v2998_v0 }
 0x408   : > { %v2845_v31 = vpop.eup %2844  ;;  %2646 = vmatprep.subr.bf16.mxu0 %v2998_v0 }
 0x409   : > { %v1285_v32 = vmul.f32 %v2845_v31, %v2837_v8 }
 0x40b   : > { %v1286_v33 = vpack.c.bf16 %v1285_v32, %v1285_v32 }
 0x40e   : > { %2635 = vmatmul.mubr.msk.bf16.vlgmr.msra.gmra.mrb[12].mxu0 %vm889_vm2, %v1286_v33  ;;  %v2489_v33 = vld [vmem:[%s3630_s11] ss:$0 sm:$0xff] }
 0x40f   : > { %2650 = vmatprep.mubr.msk.bf16.mxu0 %vm2999_vm0, %v2998_v0  ;;  %2647 = vmatpush3.bf16.msra.mxu0 %v2820_v14 }
 0x410   : > { %2648 = vmatprep.subr.bf16.mxu0 %v2998_v0 }
 0x413   : > { %2649 = vmatpush3.bf16.msra.mxu0 %v2821_v15 }
 0x414   : > { %2662 = vmatprep.subr.bf16.mxu0 %v2998_v0 }
 0x4ac   : > { %v993_v34 = vpop.f32.mrb[0].mxu0 }
 0x4ad   : > { %v2600_v35 = vpop.f32.mrb[1].mxu0 }
 0x4ae   : > { %v996_v36 = vpop.f32.mrb[2].mxu0 }
 0x4af   : > { %v2601_v37 = vpop.f32.mrb[3].mxu0 }
 0x4b4   : > { %v1105_v38 = vpop.f32.mrb[4].mxu0 }
 0x4b5   : > { %1336 = vrot.lane.b32.xlu1 %v1105_v38, %s3661_s30  ;;  %v2612_v39 = vpop.f32.mrb[5].mxu0  ;;  %s3699_s30 = sld [smem:[#allocation25_spill]] }
 0x4b6   : > { %v1108_v40 = vpop.f32.mrb[6].mxu0 }
 0x4b7   : > { %v2613_v41 = vpop.f32.mrb[7].mxu0 }
 0x4bb   : > { %v2487_v20 = vld [vmem:[%s3699_s30] ss:$0 sm:$0xff]  ;;  %s3701_s30 = sld [smem:[#allocation20_spill]] }
 0x4c1   : > { %s809_s8 = scalar_lea.vmem %s3701_s30, %s3269_s0  ;;  %s3702_s0 = smov 96  }
 0x4c2   : > { %s3707_s30 = smov 16  }
 0x4d9   : > { %v1217_v44 = vpop.f32.mrb[8].mxu0 }
 0x4da   : > { %1340 = vrot.lane.b32.xlu0 %v1217_v44, %s3660_s4  ;;  %v2624_v45 = vpop.f32.mrb[9].mxu0  ;;  %s3700_s4 = smov 104  }
 0x4db   : > { %v1220_v46 = vpop.f32.mrb[10].mxu0 }
 0x4dc   : > { %v2625_v47 = vpop.f32.mrb[11].mxu0 }
 0x4e1   : > { %v1329_v48 = vpop.f32.mrb[12].mxu0 }
 0x4e2   : > { %1344 = vrot.lane.b32.xlu1 %v1329_v48, %s3659_s5  ;;  %v2636_v49 = vpop.f32.mrb[13].mxu0  ;;  %s3705_s5 = smov 88  }
 0x4e3   : > { %v1332_v50 = vpop.f32.mrb[14].mxu0  ;;  %v815_v49 = vld [vmem:[%s809_s8] sm:$0xff]  ;;  %s3708_s8 = smov 24  }
 0x4e4   : > { %v2637_v51 = vpop.f32.mrb[15].mxu0  ;;  %vm816_vm7 = vcmp.gt.f32.partialorder %v815_v49, 0.0 }
 0x527   : > { %v1337_v52 = vpop.permute.xlu1 %1336 }
 0x528   : > { %v1347_v54 = vsel %vm889_vm2, %v993_v34, %v1337_v52 }
 0x54c   : > { %v1341_v53 = vpop.permute.xlu0 %1340 }
 0x54d   : > { %v1349_v55 = vsel %vm1348_vm5, %v1347_v54, %v1341_v53 }
 0x554   : > { %v1345_v56 = vpop.permute.xlu1 %1344 }
 0x555   : > { %v1351_v57 = vsel %vm1350_vm6, %v1349_v55, %v1345_v56 }
 0x556   : > { %v1352_v58 = vpack.c.bf16 %v1351_v57, %v1351_v57 }
 0x558   : > { %2643 = vmatmul.mubr.msk.bf16.vlgmr.msra.gmra.mrb[20].mxu1 %vm841_vm1, %v1352_v58 }
 0x559   : > { %2658 = vmatprep.mubr.msk.bf16.mxu1 %vm2999_vm0, %v2998_v0  ;;  %2655 = vmatpush3.bf16.msra.mxu1 %v2818_v11 }
 0x55a   : > { %2656 = vmatprep.subr.bf16.mxu1 %v2998_v0 }
 0x62b   : > { %v1413_v60 = vpop.f32.mrb[20].mxu1 }
 0x62c   : > { %v1414_v61 = vadd.f32 %v2483_v59, %v1413_v60  ;;  %v2644_v62 = vpop.f32.mrb[21].mxu1 }
 0x62d   : > { %v1416_v63 = vpop.f32.mrb[22].mxu1 }
 0x62e   : > { %v2645_v1 = vpop.f32.mrb[23].mxu1  ;;  %v1419_v2 = vadd.f32 %v1414_v61, %v3281_v3  ;;  %v2819_v3 = vld [vmem:[%s3631_s12 + $0x8] sm:$0xff]  }
 0x62f   : > { %2657 = vmatpush3.bf16.msra.mxu1 %v2819_v3 }
 0x630   : > { %v1422_v4 = vsel %vm841_vm1, %v1419_v2, 0.0  ;;  %2668 = vmatprep.subr.bf16.mxu1 %v2998_v0 }
 0x631   : > { %1423 = vadd.xlane.f32.xlu0 %v1422_v4 }
 0x632   : > { %2659 = vmatmul.mubr.msk.bf16.vlgmr.msra.gmra.mrb[24].mxu1 %vm841_vm1, %v1517_v13 }
 0x633   : > { %2670 = vmatprep.mubr.msk.bf16.mxu1 %vm2999_vm0, %v2998_v0 }
 0x6be   : > { %v1424_v5 = vpop.xlane.xlu0 %1423 }
 0x6bf   : > { %v1426_v6 = vmul.f32 0.03125, %v1424_v5 }
 0x6c1   : > { %v1427_v7 = vsub.f32 %v1419_v2, %v1426_v6 }
 0x6c3   : > { %v1428_v8 = vmul.f32 %v1427_v7, %v1427_v7 }
 0x6c5   : > { %v1429_v9 = vsel %vm841_vm1, %v1428_v8, 0.0 }
 0x6c6   : > { %1430 = vadd.xlane.f32.xlu1 %v1429_v9 }
 0x705   : > { %v1578_v26 = vpop.f32.mrb[24].mxu1 }
 0x706   : > { %v1579_v27 = vadd.f32 %v2493_v25, %v1578_v26  ;;  %v2660_v28 = vpop.f32.mrb[25].mxu1 }
 0x707   : > { %v1581_v29 = vpop.f32.mrb[26].mxu1 }
 0x708   : > { %v3432_v30 = vpack.c.bf16 %v1579_v27, %v1579_v27  ;;  %v2661_v31 = vpop.f32.mrb[27].mxu1 }
 0x70a   : > { %1698 = vrot.lane.b32.xlu0 %v3432_v30, %s3000_s29  ;;  %v1590_v32 = vsel %vm889_vm2, %v3432_v30, 0 }
 0x70e   : > { %1810 = vrot.lane.b32.xlu0 %v3432_v30, %s3005_s27 }
 0x712   : > { %1922 = vrot.lane.b32.xlu0 %v3432_v30, %s3700_s4 }
 0x753   : > { %v1431_v16 = vpop.xlane.xlu1 %1430 }
 0x754   : > { %v1432_v17 = vmul.f32 0.03125, %v1431_v16 }
 0x756   : > { %v1433_v18 = vadd.f32 1e-05, %v1432_v17 }
 0x758   : > { %2846 = vrsqrt.f32 %v1433_v18 }
 0x762   : > { %v2847_v19 = vpop.eup %2846 }
 0x763   : > { %v1435_v21 = vmul.f32 %v2847_v19, %v1427_v7 }
 0x765   : > { %v1442_v22 = vmul.f32 %v2487_v20, %v1435_v21 }
 0x767   : > { %v3422_v23 = vadd.f32 %v2488_v10, %v1442_v22 }
 0x769   : > { %v1450_v24 = vpack.c.bf16 %v3422_v23, %v3422_v23 }
 0x76b   : > { %2651 = vmatmul.mubr.msk.bf16.vlgmr.msra.gmra.mrb[16].mxu0 %vm841_vm1, %v1450_v24 }
 0x76c   : > { %2664 = vmatprep.mubr.msk.bf16.mxu0 %vm2999_vm0, %v2998_v0  ;;  %2663 = vmatpush3.bf16.xpose.msra.mxu0 %v1590_v32 }
 0x76d   : > { %2674 = vmatprep.subr.bf16.mxu0 %v2998_v0 }
 0x77c   : > { %v1699_v38 = vpop.permute.xlu0 %1698 }
 0x77d   : > { %v1704_v41 = vsel %vm889_vm2, %v1699_v38, 0 }
 0x780   : > { %v1811_v42 = vpop.permute.xlu0 %1810 }
 0x781   : > { %v1816_v44 = vsel %vm889_vm2, %v1811_v42, 0 }
 0x784   : > { %v1923_v45 = vpop.permute.xlu0 %1922 }
 0x785   : > { %v1928_v47 = vsel %vm889_vm2, %v1923_v45, 0 }
 0x83e   : > { %v1511_v34 = vpop.f32.mrb[16].mxu0 }
 0x83f   : > { %v1512_v35 = vadd.f32 %v2489_v33, %v1511_v34  ;;  %v2652_v36 = vpop.f32.mrb[17].mxu0 }
 0x840   : > { %v1514_v37 = vpop.f32.mrb[18].mxu0 }
 0x841   : > { %v1584_v39 = vpack.c.bf16 %v1512_v35, %v1512_v35  ;;  %v2653_v40 = vpop.f32.mrb[19].mxu0 }
 0x843   : > { %1696 = vrot.lane.b32.xlu1 %v1584_v39, %s3000_s29  ;;  %2665 = vmatmul.mubr.msk.bf16.vlgmr.msra.gmra.mrb[20].mxu0 %vm889_vm2, %v1584_v39  ;;  %s3709_s29 = sld [smem:[#allocation26_spill]] }
 0x844   : > { %2675 = vmatpush3.bf16.xpose.msra.mxu0 %v1704_v41  ;;  %2676 = vmatprep.mubr.msk.bf16.mxu0 %vm2999_vm0, %v2998_v0 }
 0x845   : > { %2686 = vmatprep.subr.bf16.mxu0 %v2998_v0 }
 0x847   : > { %1808 = vrot.lane.b32.xlu1 %v1584_v39, %s3005_s27 }
 0x84b   : > { %1920 = vrot.lane.b32.xlu1 %v1584_v39, %s3700_s4 }
 0x8b5   : > { %v1697_v43 = vpop.permute.xlu1 %1696 }
 0x8b6   : > { %2677 = vmatmul.mubr.msk.bf16.vlgmr.msra.gmra.mrb[24].mxu0 %vm889_vm2, %v1697_v43 }
 0x8b7   : > { %2687 = vmatpush3.bf16.xpose.msra.mxu0 %v1816_v44  ;;  %2688 = vmatprep.mubr.msk.bf16.mxu0 %vm2999_vm0, %v2998_v0 }
 0x8b8   : > { %2698 = vmatprep.subr.bf16.mxu0 %v2998_v0 }
 0x8b9   : > { %v1809_v46 = vpop.permute.xlu1 %1808 }
 0x8bd   : > { %v1921_v48 = vpop.permute.xlu1 %1920 }
 0x8be   : > { %2689 = vmatmul.mubr.msk.bf16.vlgmr.msra.gmra.mrb[28].mxu0 %vm889_vm2, %v1809_v46 }
 0x8bf   : > { %2699 = vmatpush3.bf16.xpose.msra.mxu0 %v1928_v47  ;;  %2700 = vmatprep.mubr.msk.bf16.mxu0 %vm2999_vm0, %v2998_v0 }
 0x8c0   : > { %2710 = vmatprep.subr.bf16.mxu0 %v2998_v0 }
 0x8c6   : > { %2701 = vmatmul.mubr.msk.bf16.vlgmr.msra.gmra.mrb[32].mxu0 %vm889_vm2, %v1921_v48 }
 0x8c7   : > { %2714 = vmatprep.mubr.msk.bf16.mxu0 %vm2999_vm0, %v2998_v0 }
 0x916   : > { %v1626_v50 = vpop.f32.mrb[20].mxu0 }
 0x917   : > { %v1632_v51 = vmul.f32 0.35355338, %v1626_v50  ;;  %v2666_v52 = vpop.f32.mrb[21].mxu0 }
 0x918   : > { %v1629_v53 = vpop.f32.mrb[22].mxu0 }
 0x919   : > { %v2667_v54 = vpop.f32.mrb[23].mxu0  ;;  %v1633_v55 = vsel %vm816_vm7, %v1632_v51, -1e+09 }
 0x91a   : > { %v1634_v56 = vsel %vm889_vm2, %v1633_v55, -inf }
 0x91b   : > { %1635 = vmax.xlane.f32.xlu0 %v1634_v56 }
 0x989   : > { %v1740_v57 = vpop.f32.mrb[24].mxu0 }
 0x98a   : > { %v1746_v58 = vmul.f32 0.35355338, %v1740_v57  ;;  %v2678_v59 = vpop.f32.mrb[25].mxu0 }
 0x98b   : > { %v1743_v60 = vpop.f32.mrb[26].mxu0 }
 0x98c   : > { %v2679_v61 = vpop.f32.mrb[27].mxu0  ;;  %v1747_v62 = vsel %vm816_vm7, %v1746_v58, -1e+09 }
 0x98d   : > { %v1748_v63 = vsel %vm889_vm2, %v1747_v62, -inf }
 0x98e   : > { %1749 = vmax.xlane.f32.xlu1 %v1748_v63 }
 0x991   : > { %v1852_v1 = vpop.f32.mrb[28].mxu0 }
 0x992   : > { %v1858_v2 = vmul.f32 0.35355338, %v1852_v1  ;;  %v2690_v4 = vpop.f32.mrb[29].mxu0  ;;  %v2822_v1 = vld [vmem:[%s3633_s14] sm:$0xff]  }
 0x993   : > { %v1855_v5 = vpop.f32.mrb[30].mxu0  ;;  %2711 = vmatpush3.bf16.msra.mxu0 %v2822_v1 }
 0x994   : > { %v2691_v6 = vpop.f32.mrb[31].mxu0  ;;  %v1859_v7 = vsel %vm816_vm7, %v1858_v2, -1e+09  ;;  %2712 = vmatprep.subr.bf16.mxu0 %v2998_v0 }
 0x995   : > { %v1860_v8 = vsel %vm889_vm2, %v1859_v7, -inf }
 0x996   : > { %1861 = vmax.xlane.f32.xlu0 %v1860_v8 }
 0x999   : > { %v1964_v9 = vpop.f32.mrb[32].mxu0 }
 0x99a   : > { %v1970_v11 = vmul.f32 0.35355338, %v1964_v9  ;;  %v2702_v3 = vpop.f32.mrb[33].mxu0 }
 0x99b   : > { %v1967_v12 = vpop.f32.mrb[34].mxu0 }
 0x99c   : > { %v2703_v13 = vpop.f32.mrb[35].mxu0  ;;  %v1971_v14 = vsel %vm816_vm7, %v1970_v11, -1e+09 }
 0x99d   : > { %v1972_v15 = vsel %vm889_vm2, %v1971_v14, -inf }
 0x99e   : > { %1973 = vmax.xlane.f32.xlu0 %v1972_v15 }
 0x9a8   : > { %v1636_v16 = vpop.xlane.xlu0 %1635 }
 0x9a9   : > { %v1637_v17 = vsub.f32 %v1633_v55, %v1636_v16 }
 0x9ab   : > { %v1638_v18 = vmul.f32 1.442695, %v1637_v17 }
 0x9ad   : > { %2848 = vpow2.f32 %v1638_v18 }
 0x9b7   : > { %v2849_v19 = vpop.eup %2848 }
 0x9b8   : > { %v1640_v20 = vsel %vm889_vm2, %v2849_v19, 0.0 }
 0x9b9   : > { %1641 = vadd.xlane.f32.xlu1 %v1640_v20 }
 0x9ca   : > { %1647 = vrot.lane.b32.xlu1 %v3432_v30, %s3702_s0  ;;  %s791_s0 = sand.u32 1, %s2986_s26  }
 0xa1b   : > { %v1750_v21 = vpop.xlane.xlu1 %1749 }
 0xa1c   : > { %v1751_v10 = vsub.f32 %v1747_v62, %v1750_v21 }
 0xa1e   : > { %v1752_v22 = vmul.f32 1.442695, %v1751_v10 }
 0xa20   : > { %2850 = vpow2.f32 %v1752_v22  ;;  %v2505_v22 = vld [vmem:[%s3634_s15] ss:$0 sm:$0xff] }
 0xa23   : > { %v1862_v24 = vpop.xlane.xlu0 %1861 }
 0xa24   : > { %v1863_v25 = vsub.f32 %v1859_v7, %v1862_v24  ;;  %v2823_v7 = vld [vmem:[%s3633_s14 + $0x8] sm:$0xff]  }
 0xa25   : > { %2713 = vmatpush3.bf16.msra.mxu0 %v2823_v7 }
 0xa26   : > { %v1864_v26 = vmul.f32 1.442695, %v1863_v25  ;;  %2726 = vmatprep.subr.bf16.mxu0 %v2998_v0 }
 0xa28   : > { %2852 = vpow2.f32 %v1864_v26 }
 0xa2a   : > { %v2851_v27 = vpop.eup %2850 }
 0xa2b   : > { %v1974_v28 = vpop.xlane.xlu0 %1973  ;;  %v1754_v29 = vsel %vm889_vm2, %v2851_v27, 0.0 }
 0xa2c   : > { %v1975_v31 = vsub.f32 %v1971_v14, %v1974_v28  ;;  %1755 = vadd.xlane.f32.xlu0 %v1754_v29 }
 0xa2e   : > { %v1976_v32 = vmul.f32 1.442695, %v1975_v31 }
 0xa30   : > { %2854 = vpow2.f32 %v1976_v32 }
 0xa32   : > { %v2853_v33 = vpop.eup %2852 }
 0xa33   : > { %v1866_v34 = vsel %vm889_vm2, %v2853_v33, 0.0 }
 0xa34   : > { %1867 = vadd.xlane.f32.xlu1 %v1866_v34 }
 0xa3a   : > { %v2855_v35 = vpop.eup %2854 }
 0xa3b   : > { %v1978_v36 = vsel %vm889_vm2, %v2855_v35, 0.0 }
 0xa3c   : > { %1979 = vadd.xlane.f32.xlu0 %v1978_v36 }
 0xa45   : > { %1872 = vrot.lane.b32.xlu1 %v3432_v30, %s3703_s2  ;;  %s2466_s2 = sshll.u32 %s791_s0, 3 }
 0xa46   : > { %v1642_v37 = vpop.xlane.xlu1 %1641 }
 0xa47   : > { %2856 = vrcp.f32 %v1642_v37  ;;  %v2824_v37 = vld [vmem:[%s3637_s18] sm:$0xff]  }
 0xa49   : > { %1984 = vrot.lane.b32.xlu1 %v3432_v30, %s3704_s28  ;;  %s2524_s28 = sshll.u32 %s3161_s6, 7  ;;  %s3014_s6 = smov [#allocation7]  }
 0xa4a   : > { %v1648_v38 = vpop.permute.xlu1 %1647  ;;  %s3576_s27 = scalar_lea.hbm %s3709_s29, %s2524_s28 }
 0xa4b   : > { %v1653_v39 = vsel %vm955_vm4, %v1648_v38, 0  ;;  %v2825_v38 = vld [vmem:[%s3637_s18 + $0x8] sm:$0xff]  }
 0xa4c   : > { %2669 = vmatpush3.bf16.msra.mxu1 %v1653_v39  ;;  %v2827_v39 = vld [vmem:[%s3639_s20 + $0x8] sm:$0xff]  }
 0xa4d   : > { %2680 = vmatprep.subr.bf16.mxu1 %v2998_v0 }
 0xa51   : > { %v2857_v40 = vpop.eup %2856 }
 0xa52   : > { %v1644_v41 = vmul.f32 %v2857_v40, %v2849_v19  ;;  %1760 = vrot.lane.b32.xlu0 %v3432_v30, %s3705_s5  ;;  %s793_s5 = scalar_lea.vmem [#allocation7], %s2466_s2  ;;  %s2928_s2 = sshll.u32 %s3014_s6, 4  ;;  %s2929_s2 = int_to_ptr.vmem [resolvable:$false] %s2928_s2 }
 0xa53   : > { %s2341_s4 = sshll.u32 %s793_s5, 4  ;;  %s2930_s1 = scalar_lea.vmem %s2929_s2, 256  ;;  %s3578_s4 = int_to_ptr.vmem [resolvable:$true] %s2341_s4 }
 0xa54   : > { %v1645_v42 = vpack.c.bf16 %v1644_v41, %v1644_v41  ;;  %p2931_p4 = scmp.lt.s32.totalorder %s3578_s4, %s2929_s2 }
 0xa56   : > { %2671 = vmatmul.mubr.msk.bf16.vlgmr.msra.gmra.mrb[28].mxu1 %vm889_vm2, %v1645_v42 }
 0xa57   : > { %2682 = vmatprep.mubr.msk.bf16.mxu1 %vm2999_vm0, %v2998_v0 }
 0xab9   : > { %v1756_v43 = vpop.xlane.xlu0 %1755 }
 0xaba   : > { %2858 = vrcp.f32 %v1756_v43 }
 0xac1   : > { %v1868_v44 = vpop.xlane.xlu1 %1867 }
 0xac2   : > { %2860 = vrcp.f32 %v1868_v44  ;;  %v2509_v44 = vld [vmem:[%s3635_s16] ss:$0 sm:$0xff] }
 0xac4   : > { %v2859_v45 = vpop.eup %2858 }
 0xac5   : > { %v1758_v47 = vmul.f32 %v2859_v45, %v2851_v27  ;;  %v1873_v50 = vpop.permute.xlu1 %1872 }
 0xac6   : > { %v1878_v52 = vsel %vm955_vm4, %v1873_v50, 0  ;;  %v2828_v50 = vld [vmem:[%s3639_s20 + $0x10] sm:$0xff]  }
 0xac7   : > { %v1759_v30 = vpack.c.bf16 %v1758_v47, %v1758_v47 }
 0xac9   : > { %v1980_v46 = vpop.xlane.xlu0 %1979  ;;  %v1985_v54 = vpop.permute.xlu1 %1984 }
 0xaca   : > { %2862 = vrcp.f32 %v1980_v46  ;;  %v1990_v57 = vsel %vm955_vm4, %v1985_v54, 0  ;;  %v2510_v46 = vld [vmem:[%s3636_s17] ss:$0 sm:$0xff] }
 0xacc   : > { %v2861_v51 = vpop.eup %2860 }
 0xacd   : > { %v1761_v48 = vpop.permute.xlu0 %1760  ;;  %v1870_v53 = vmul.f32 %v2861_v51, %v2853_v33  ;;  %v2511_v51 = vld [vmem:[%s3638_s19] ss:$0 sm:$0xff] }
 0xace   : > { %v1766_v49 = vsel %vm955_vm4, %v1761_v48, 0 }
 0xacf   : > { %2681 = vmatpush3.bf16.msra.mxu1 %v1766_v49  ;;  %v1871_v55 = vpack.c.bf16 %v1870_v53, %v1870_v53 }
 0xad0   : > { %2692 = vmatprep.subr.bf16.mxu1 %v2998_v0 }
 0xad2   : > { %2683 = vmatmul.mubr.msk.bf16.vlgmr.msra.gmra.mrb[32].mxu1 %vm889_vm2, %v1759_v30  ;;  %v2829_v30 = vld [vmem:[%s3639_s20 + $0x18] sm:$0xff]  }
 0xad3   : > { %2693 = vmatpush3.bf16.msra.mxu1 %v1878_v52  ;;  %2694 = vmatprep.mubr.msk.bf16.mxu1 %vm2999_vm0, %v2998_v0 }
 0xad4   : > { %2704 = vmatprep.subr.bf16.mxu1 %v2998_v0  ;;  %v2863_v56 = vpop.eup %2862 }
 0xad5   : > { %v1982_v58 = vmul.f32 %v2863_v56, %v2855_v35 }
 0xad7   : > { %v1983_v59 = vpack.c.bf16 %v1982_v58, %v1982_v58 }
 0xada   : > { %2695 = vmatmul.mubr.msk.bf16.vlgmr.msra.gmra.mrb[36].mxu1 %vm889_vm2, %v1871_v55 }
 0xadb   : > { %2705 = vmatpush3.bf16.msra.mxu1 %v1990_v57  ;;  %2706 = vmatprep.mubr.msk.bf16.mxu1 %vm2999_vm0, %v2998_v0 }
 0xadc   : > { %2718 = vmatprep.subr.bf16.mxu1 %v2998_v0 }
 0xae2   : > { %2707 = vmatmul.mubr.msk.bf16.vlgmr.msra.gmra.mrb[40].mxu1 %vm889_vm2, %v1983_v59 }
 0xae3   : > { %2722 = vmatprep.mubr.msk.bf16.mxu1 %vm2999_vm0, %v2998_v0  ;;  %2719 = vmatpush3.bf16.msra.mxu1 %v2824_v37 }
 0xae4   : > { %2720 = vmatprep.subr.bf16.mxu1 %v2998_v0 }
 0xae7   : > { %2721 = vmatpush3.bf16.msra.mxu1 %v2825_v38 }
 0xb29   : > { %v1689_v60 = vpop.f32.mrb[28].mxu1 }
 0xb2a   : > { %v2672_v61 = vpop.f32.mrb[29].mxu1 }
 0xb2b   : > { %v1692_v62 = vpop.f32.mrb[30].mxu1 }
 0xb2c   : > { %v2673_v63 = vpop.f32.mrb[31].mxu1 }
 0xba5   : > { %v1802_v2 = vpop.f32.mrb[32].mxu1 }
 0xba6   : > { %2033 = vrot.lane.b32.xlu0 %v1802_v2, %s3706_s24  ;;  %v2684_v4 = vpop.f32.mrb[33].mxu1 }
 0xba7   : > { %v1805_v5 = vpop.f32.mrb[34].mxu1 }
 0xba8   : > { %v2685_v6 = vpop.f32.mrb[35].mxu1 }
 0xbad   : > { %v1914_v8 = vpop.f32.mrb[36].mxu1 }
 0xbae   : > { %2037 = vrot.lane.b32.xlu1 %v1914_v8, %s3707_s30  ;;  %v2696_v9 = vpop.f32.mrb[37].mxu1  ;;  %s2328_s30 = scalar_lea.sflag [#allocation4], %s791_s0 }
 0xbaf   : > { %v1917_v11 = vpop.f32.mrb[38].mxu1 }
 0xbb0   : > { %v2697_v3 = vpop.f32.mrb[39].mxu1 }
 0xbb5   : > { %v2026_v12 = vpop.f32.mrb[40].mxu1 }
 0xbb6   : > { %2041 = vrot.lane.b32.xlu0 %v2026_v12, %s3708_s8  ;;  %v2708_v13 = vpop.f32.mrb[41].mxu1  ;;  %s2924_s8 = scalar_lea.vmem %s3578_s4, 128 }
 0xbb7   : > { %v2029_v14 = vpop.f32.mrb[42].mxu1  ;;  %v2521_v13 = vld [vmem:[#allocation2] ss:$0 sm:$0xff]  ;;  %p2925_p12 = scmp.ne.s32.totalorder %s3578_s4, %s2924_s8  ;;  %p2932_p7 = scmp.lt.s32.totalorder %s2930_s1, %s2924_s8 }
 0xbb8   : > { %v2709_v15 = vpop.f32.mrb[43].mxu1 }
 0xbb9   : > { %v2522_v15 = vld [vmem:[#allocation5] ss:$0 sm:$0xff]  ;;  %p2926_p2 = pnand %p2925_p12, %p3710_p1  ;;  %p2933_p8 = por %p2932_p7, %p2931_p4 }
 0xbbb   : > { %p2927_p3 = pneg %p2926_p2 }
 0xbbd   : > { %p2934_p11 = pnand %p2933_p8, %p2927_p3 }
 0xc18   : > { %v2034_v16 = vpop.permute.xlu0 %2033 }
 0xc19   : > { %v2044_v18 = vsel %vm889_vm2, %v1689_v60, %v2034_v16 }
 0xc20   : > { %v2038_v17 = vpop.permute.xlu1 %2037 }
 0xc21   : > { %v2045_v19 = vsel %vm1348_vm5, %v2044_v18, %v2038_v17 }
 0xc28   : > { %v2042_v20 = vpop.permute.xlu0 %2041 }
 0xc29   : > { %v2046_v21 = vsel %vm1350_vm6, %v2045_v19, %v2042_v20 }
 0xc2a   : > { %v2047_v10 = vpack.c.bf16 %v2046_v21, %v2046_v21 }
 0xc2c   : > { %2715 = vmatmul.mubr.msk.bf16.vlgmr.msra.gmra.mrb[36].mxu0 %vm841_vm1, %v2047_v10 }
 0xc2d   : > { %2734 = vmatprep.mubr.msk.bf16.mxu0 %vm2999_vm0, %v2998_v0 }
 0xcff   : > { %v2108_v24 = vpop.f32.mrb[36].mxu0 }
 0xd00   : > { %v2109_v25 = vadd.f32 %v2505_v22, %v2108_v24  ;;  %v2716_v26 = vpop.f32.mrb[37].mxu0 }
 0xd01   : > { %v2111_v27 = vpop.f32.mrb[38].mxu0 }
 0xd02   : > { %v2717_v28 = vpop.f32.mrb[39].mxu0  ;;  %v2114_v29 = vadd.f32 %v2109_v25, %v3422_v23  ;;  %v2826_v23 = vld [vmem:[%s3639_s20] sm:$0xff]  }
 0xd03   : > { %2727 = vmatpush3.bf16.msra.mxu0 %v2826_v23 }
 0xd04   : > { %v2117_v31 = vsel %vm841_vm1, %v2114_v29, 0.0  ;;  %2728 = vmatprep.subr.bf16.mxu0 %v2998_v0 }
 0xd05   : > { %2118 = vadd.xlane.f32.xlu1 %v2117_v31 }
 0xd07   : > { %2729 = vmatpush3.bf16.msra.mxu0 %v2827_v39 }
 0xd08   : > { %2730 = vmatprep.subr.bf16.mxu0 %v2998_v0 }
 0xd0b   : > { %2731 = vmatpush3.bf16.msra.mxu0 %v2828_v50 }
 0xd0c   : > { %2732 = vmatprep.subr.bf16.mxu0 %v2998_v0  ;;  %v2515_v0 = vld [vmem:[%s3640_s21] ss:$0 sm:$0xff] }
 0xd0f   : > { %2733 = vmatpush3.bf16.msra.mxu0 %v2829_v30 }
 0xd92   : > { %v2119_v32 = vpop.xlane.xlu1 %2118 }
 0xd93   : > { %v2120_v33 = vmul.f32 0.03125, %v2119_v32 }
 0xd95   : > { %v2121_v34 = vsub.f32 %v2114_v29, %v2120_v33 }
 0xd97   : > { %v2122_v35 = vmul.f32 %v2121_v34, %v2121_v34 }
 0xd99   : > { %v2123_v36 = vsel %vm841_vm1, %v2122_v35, 0.0 }
 0xd9a   : > { %2124 = vadd.xlane.f32.xlu0 %v2123_v36 }
 0xe27   : > { %v2125_v40 = vpop.xlane.xlu0 %2124 }
 0xe28   : > { %v2126_v41 = vmul.f32 0.03125, %v2125_v40 }
 0xe2a   : > { %v2127_v42 = vadd.f32 1e-05, %v2126_v41 }
 0xe2c   : > { %2864 = vrsqrt.f32 %v2127_v42 }
 0xe36   : > { %v2865_v43 = vpop.eup %2864 }
 0xe37   : > { %v2129_v45 = vmul.f32 %v2865_v43, %v2121_v34 }
 0xe39   : > { %v2136_v47 = vmul.f32 %v2509_v44, %v2129_v45 }
 0xe3b   : > { %v2143_v48 = vadd.f32 %v2510_v46, %v2136_v47 }
 0xe3d   : > { %v2144_v49 = vpack.c.bf16 %v2143_v48, %v2143_v48 }
 0xe3f   : > { %2723 = vmatmul.mubr.msk.bf16.vlgmr.msra.gmra.mrb[44].mxu1 %vm841_vm1, %v2144_v49 }
 0xf12   : > { %v2205_v52 = vpop.f32.mrb[44].mxu1 }
 0xf13   : > { %v2206_v53 = vadd.f32 %v2511_v51, %v2205_v52  ;;  %v2724_v54 = vpop.f32.mrb[45].mxu1 }
 0xf14   : > { %v2208_v55 = vpop.f32.mrb[46].mxu1 }
 0xf15   : > { %v2211_v56 = vmax.f32 %v2206_v53, 0.0  ;;  %v2725_v57 = vpop.f32.mrb[47].mxu1 }
 0xf17   : > { %v2212_v58 = vpack.c.bf16 %v2211_v56, %v2211_v56 }
 0xf19   : > { %2735 = vmatmul.mubr.msk.bf16.vlgmr.msra.gmra.mrb[40].mxu0 %vm2252_vm8, %v2212_v58 }
 0xfec   : > { %v2290_v59 = vpop.f32.mrb[40].mxu0 }
 0xfed   : > { %v2291_v60 = vadd.f32 %v2515_v0, %v2290_v59  ;;  %v2736_v61 = vpop.f32.mrb[41].mxu0 }
 0xfee   : > { %v2293_v62 = vpop.f32.mrb[42].mxu0 }
 0xfef   : > { %v2737_v63 = vpop.f32.mrb[43].mxu0  ;;  %v2296_v1 = vadd.f32 %v2291_v60, %v2143_v48 }
 0xff1   : > { %v2299_v2 = vsel %vm841_vm1, %v2296_v1, 0.0 }
 0xff2   : > { %2300 = vadd.xlane.f32.xlu0 %v2299_v2 }
0x107f   : > { %v2301_v4 = vpop.xlane.xlu0 %2300 }
0x1080   : > { %v2302_v5 = vmul.f32 0.03125, %v2301_v4 }
0x1082   : > { %v2303_v6 = vsub.f32 %v2296_v1, %v2302_v5 }
0x1084   : > { %v2304_v7 = vmul.f32 %v2303_v6, %v2303_v6 }
0x1086   : > { %v2305_v8 = vsel %vm841_vm1, %v2304_v7, 0.0 }
0x1087   : > { %2306 = vadd.xlane.f32.xlu1 %v2305_v8 }
0x1114   : > { %v2307_v9 = vpop.xlane.xlu1 %2306 }
0x1115   : > { %v2308_v11 = vmul.f32 0.03125, %v2307_v9 }
0x1117   : > { %v2309_v3 = vadd.f32 1e-05, %v2308_v11 }
0x1119   : > { %2866 = vrsqrt.f32 %v2309_v3 }
0x1123   : > { %v2867_v12 = vpop.eup %2866 }
0x1124   : > { %v2311_v14 = vmul.f32 %v2867_v12, %v2303_v6 }
0x1126   : > { %v2318_v16 = vmul.f32 %v2521_v13, %v2311_v14 }
0x1128   : > { %v2325_v17 = vadd.f32 %v2522_v15, %v2318_v16 }
0x112a   : > { %2326 = vst.msk [vmem:[%s793_s5] sm:$0xff] %vm841_vm1, %v2325_v17 }
0x112b   : > { %2937 = shalt.err (!%p2934_p11)
}
0x112c   : > { %s2938_s0 = scalar_lea.hbm %s3576_s27, 128  ;;  %s2942_s25 = scalar_lea.hbm %s3709_s29, 256 }
0x112d   : > { %p2939_p13 = scmp.ne.s32.totalorder %s3576_s27, %s2938_s0  ;;  %p2943_p5 = scmp.lt.u32.totalorder %s3576_s27, %s3709_s29 }
0x112e   : > { %p2944_p9 = scmp.lt.u32.totalorder %s2942_s25, %s2938_s0  ;;  %p2946_p12 = scmp.lt.u32.totalorder %s2938_s0, %s3576_s27 }
0x112f   : > { %p2940_p0 = pnand %p2939_p13, %p3710_p1 }
0x1130   : > { %p2945_p10 = por %p2944_p9, %p2943_p5 }
0x1131   : > { %p2941_p6 = pneg %p2940_p0 }
0x1132   : > { %p2947_p2 = por %p2946_p12, %p2945_p10 }
0x1134   : > { %p2948_p3 = pnand %p2947_p2, %p2941_p6 }
0x1136   : > { %2951 = shalt.err (!%p2948_p3)
}
0x1137   : > { %2746 = dma.vmem_to_hbm [thread:$0]  (%p3710_p1), %s3578_s4, 128, %s3576_s27, %s2328_s30  }
0x1138 PF: > { %s3711_s1 = sld [smem:[#allocation13_spill]]  ;;  %s3712_s8 = sld [smem:[#allocation11_spill]] }
0x1139   : > { %s3713_s2 = sld [smem:[#allocation16_spill]] }
0x113e   : > { %p2763_p4 = scmp.ge.s32.totalorder %s3711_s1, 2  ;;  %s2353_s28 = sand.u32 1, %s3712_s8  }
0x113f   : > { %p3714_p7 = scmp.ne.s32.totalorder %s3713_s2, 0  ;;  %s2354_s5 = scalar_lea.sflag [#allocation4], %s2353_s28 }
0x1141   : > { %p2756_p8 = pnand %p2763_p4, %p3714_p7 }
0x1143   : > { %2977 = dma.done.wait (!%p2756_p8), %s2354_s5, 128  }
0x1144   : > { %2979 = vsyncadd (!%p2756_p8), %s2354_s5, 4294967168  ;;  %s3715_s28 = sld [smem:[#allocation14_spill]]  ;;  %s3716_s0 = sld [smem:[#allocation12_spill]] }
0x1145   : > { %s3717_s27 = sld [smem:[#allocation15_spill]]  ;;  %s3718_s5 = smov %s2986_s26 }
0x114a   : > { %p36_p11 = scmp.ge.s32.totalorder %s3715_s28, 4   ;;  %s3719_s26 = smov %s3716_s0 }
0x114c   :  { %38 = sbr.rel (!%p36_p11) target bundleno = 16 (0x10), region = 169 }
0x1153   :  { %2359 = vsyncpa [#allocation3], 1 }
0x1154   :  { %2361 = vsyncpa [#allocation3 + $0x1], 1 }
0x1155   :  { %2362 = vsyncpa [#allocation6], 1 }
0x1156   :  { %2363 = vsyncpa [#allocation4], 1 }
0x1157   :  { %2365 = vsyncpa [#allocation4 + $0x1], 1 }

</bundles_post_ra>
